<compile_context>
chip_gen: v7x
topology: tpu7x:2x2x1
jax: 0.10.0
libtpu: 0.0.40
codegen_flags: <defaults>
</compile_context>

<pallas_src>
import functools

import jax
import jax.numpy as jnp
from jax.experimental import pallas as pl
from jax.experimental.pallas import tpu as pltpu


def _round_up(x, m):
    return ((x + m - 1) // m) * m


# ----------------------------------------------------------------------------
# Pallas kernel: fused GEMM (bf16 in, f32 accumulate) + bias + activation
# ----------------------------------------------------------------------------
def _matmul_bias_act_kernel(x_ref, w_ref, b_ref, o_ref, *, activation):
    # MXU: bf16 x bf16 -> f32 accumulate
    acc = jnp.dot(x_ref[...], w_ref[...], preferred_element_type=jnp.float32)
    acc = acc + b_ref[...]                    # (1, TN) f32 broadcast over rows
    if activation == "relu":
        acc = jnp.maximum(acc, 0.0)
    elif activation == "sigmoid":
        acc = jax.nn.sigmoid(acc)             # EUP, f32 (v5e-safe epilogue)
    o_ref[...] = acc.astype(o_ref.dtype)


def matmul_bias_act(x, w, b, activation, n_out):
    """y = act(x @ w + b) on the MXU.

    x: (M, K) float (cast to bf16 here), w: (K, Npad) bf16 pre-packed,
    b: (Npad,) f32.  Npad is a multiple of 128 (lane-dense stores).
    Returns (M, n_out) f32.
    """
    M, K = x.shape
    K2, Np = w.shape
    assert K == K2 and Np % 128 == 0

    TN = 128                                   # matches 128-wide MXU lanes (v5e too)
    TM = min(256, _round_up(M, 8))             # <=256-row tiles, sublane aligned
    Mp = _round_up(M, TM)

    x = x.astype(jnp.bfloat16)
    if Mp != M:
        x = jnp.pad(x, ((0, Mp - M), (0, 0)))

    grid = (Mp // TM, Np // TN)
    kernel = functools.partial(_matmul_bias_act_kernel, activation=activation)

    y = pl.pallas_call(
        kernel,
        out_shape=jax.ShapeDtypeStruct((Mp, Np), jnp.float32),
        grid=grid,
        in_specs=[
            pl.BlockSpec((TM, K), lambda i, j: (i, 0)),     # activations / patches
            pl.BlockSpec((K, TN), lambda i, j: (0, j)),     # packed weight slab
            pl.BlockSpec((1, TN), lambda i, j: (0, j)),     # bias
        ],
        out_specs=pl.BlockSpec((TM, TN), lambda i, j: (i, j)),
        compiler_params=pltpu.CompilerParams(
            dimension_semantics=("parallel", "parallel"),
            # let XLA fuse the im2col slice/stack/reshape producer into the
            # kernel's input DMA (avoids materializing patches in HBM).
            allow_input_fusion=[True, False, False],
            vmem_limit_bytes=32 * 1024 * 1024,
        ),
    )(x, w, b.reshape(1, Np))

    if Mp != M or n_out != Np:
        y = y[:M, :n_out]
    return y


# ----------------------------------------------------------------------------
# Plain-JAX glue: patch extraction (hinted for input fusion into the kernel)
# ----------------------------------------------------------------------------
def _extract_patches(x_nhwc, kh, kw, stride, pad):
    """(N, Ho, Wo, kh*kw*C) patches; last dim ordered (kh, kw, C)."""
    if pad:
        x_nhwc = jnp.pad(x_nhwc, ((0, 0), (pad, pad), (pad, pad), (0, 0)))
    N, H, W, C = x_nhwc.shape
    Ho = (H - kh) // stride + 1
    Wo = (W - kw) // stride + 1
    taps = []
    for i in range(kh):
        for j in range(kw):
            taps.append(
                x_nhwc[:, i:i + stride * Ho:stride, j:j + stride * Wo:stride, :])
    p = jnp.stack(taps, axis=3)                 # (N, Ho, Wo, kh*kw, C)
    return p.reshape(N, Ho, Wo, kh * kw * C)


# TODO(synk): do the 9-tap gather fully inside the kernel with overlapping
# row-window BlockSpecs instead of relying on XLA input fusion.
def conv2d_s2(x_nhwc, w_packed, b_packed, *, cout, activation):
    """PyTorch Conv2d(k=3, stride=2, padding=1) with pre-packed weights."""
    patches = _extract_patches(x_nhwc, 3, 3, stride=2, pad=1)
    N, Ho, Wo, K = patches.shape
    Kp = w_packed.shape[0]
    p2 = patches.reshape(N * Ho * Wo, K)
    if Kp != K:                                 # K padded to sublane multiple (e1: 27->32)
        p2 = jnp.pad(p2, ((0, 0), (0, Kp - K)))
    y = matmul_bias_act(p2, w_packed, b_packed, activation, n_out=cout)
    return y.reshape(N, Ho, Wo, cout)


def conv_transpose2d_s2(x_nhwc, w_packed, b_packed, *, cout, activation):
    """PyTorch ConvTranspose2d(k=3, stride=2, padding=1, output_padding=1)
    via sub-pixel decomposition: one GEMM over 2x2 patches producing the 4
    output phases, then pixel-shuffle interleave. No zero-dilation FLOPs."""
    N, H, W, Cin = x_nhwc.shape
    xp = jnp.pad(x_nhwc, ((0, 0), (0, 1), (0, 1), (0, 0)))   # bottom/right halo
    patches = _extract_patches(xp, 2, 2, stride=1, pad=0)     # (N, H, W, 4*Cin)
    y = matmul_bias_act(patches.reshape(N * H * W, 4 * Cin),
                        w_packed, b_packed, activation, n_out=4 * cout)
    y = y.reshape(N, H, W, 2, 2, cout)                        # (.., rh, rw, cout)
    return jnp.transpose(y, (0, 1, 3, 2, 4, 5)).reshape(N, 2 * H, 2 * W, cout)


# ----------------------------------------------------------------------------
# One-time weight packing (transpose/reshape, K/N padding, bf16 cast)
# ----------------------------------------------------------------------------
def _pack_conv2d(w_oihw, b):
    Cout, Cin, kh, kw = w_oihw.shape
    K = kh * kw * Cin
    Kp = _round_up(K, 8)
    Np = _round_up(Cout, 128)
    wm = jnp.transpose(w_oihw, (2, 3, 1, 0)).reshape(K, Cout)   # (kh,kw,cin) x cout
    wm = jnp.pad(wm, ((0, Kp - K), (0, Np - Cout))).astype(jnp.bfloat16)
    bp = jnp.pad(b, (0, Np - Cout)).astype(jnp.float32)
    return {"w": wm, "b": bp}


def _pack_convT2d(w_iohw, b):
    """Pack ConvTranspose2d(k=3, s=2, p=1, op=1) weight into a (4*Cin, 4*Cout)
    sub-pixel slab.  Rows: 2x2 patch tap (dh, dw, cin); cols: phase (rh, rw, cout).
    Kernel-tap map (per spatial dim): phase 0 uses tap 1 at offset 0;
    phase 1 uses tap 2 at offset 0 and tap 0 at offset 1."""
    Cin, Cout, kh, kw = w_iohw.shape
    assert kh == 3 and kw == 3
    tap = {(0, 0): 1, (1, 0): 2, (1, 1): 0}     # (phase r, patch offset d) -> tap t
    Wc = jnp.zeros((2, 2, Cin, 2, 2, Cout), jnp.float32)
    for dh in range(2):
        for dw in range(2):
            for rh in range(2):
                for rw in range(2):
                    th = tap.get((rh, dh))
                    tw = tap.get((rw, dw))
                    if th is not None and tw is not None:
                        Wc = Wc.at[dh, dw, :, rh, rw, :].set(w_iohw[:, :, th, tw])
    K = 4 * Cin
    Nc = 4 * Cout
    Np = _round_up(Nc, 128)
    wm = jnp.pad(Wc.reshape(K, Nc), ((0, 0), (0, Np - Nc))).astype(jnp.bfloat16)
    bp = jnp.pad(jnp.tile(b, 4), (0, Np - Nc)).astype(jnp.float32)
    return {"w": wm, "b": bp}


# ----------------------------------------------------------------------------
# Parameters (raw PyTorch-layout for the reference, packed for the kernels)
# ----------------------------------------------------------------------------
def init_raw_params(key):
    def uni(k, shape, bound):
        return jax.random.uniform(k, shape, jnp.float32, -bound, bound)

    ks = jax.random.split(key, 12)

    def conv(kw_, kb_, cout, cin, k=3):
        bound = 1.0 / (cin * k * k) ** 0.5
        return uni(kw_, (cout, cin, k, k), bound), uni(kb_, (cout,), bound)

    def convT(kw_, kb_, cin, cout, k=3):
        bound = 1.0 / (cout * k * k) ** 0.5
        return uni(kw_, (cin, cout, k, k), bound), uni(kb_, (cout,), bound)

    e1w, e1b = conv(ks[0], ks[1], 64, 3)
    e2w, e2b = conv(ks[2], ks[3], 128, 64)
    e3w, e3b = conv(ks[4], ks[5], 256, 128)
    d1w, d1b = convT(ks[6], ks[7], 256, 128)
    d2w, d2b = convT(ks[8], ks[9], 128, 64)
    d3w, d3b = convT(ks[10], ks[11], 64, 3)
    return {"e1_w": e1w, "e1_b": e1b, "e2_w": e2w, "e2_b": e2b,
            "e3_w": e3w, "e3_b": e3b, "d1_w": d1w, "d1_b": d1b,
            "d2_w": d2w, "d2_b": d2b, "d3_w": d3w, "d3_b": d3b}


def pack_params(raw):
    return {
        "e1": _pack_conv2d(raw["e1_w"], raw["e1_b"]),
        "e2": _pack_conv2d(raw["e2_w"], raw["e2_b"]),
        "e3": _pack_conv2d(raw["e3_w"], raw["e3_b"]),
        "d1": _pack_convT2d(raw["d1_w"], raw["d1_b"]),
        "d2": _pack_convT2d(raw["d2_w"], raw["d2_b"]),
        "d3": _pack_convT2d(raw["d3_w"], raw["d3_b"]),
    }


# ----------------------------------------------------------------------------
# Forward pass (Pallas path)
# ----------------------------------------------------------------------------
def simple_autoencoder_forward(x_nchw, params, reconstruct=True):
    x = jnp.transpose(x_nchw, (0, 2, 3, 1)).astype(jnp.float32)   # NCHW -> NHWC
    x = conv2d_s2(x, params["e1"]["w"], params["e1"]["b"], cout=64, activation="relu")
    x = conv2d_s2(x, params["e2"]["w"], params["e2"]["b"], cout=128, activation="relu")
    x = conv2d_s2(x, params["e3"]["w"], params["e3"]["b"], cout=256, activation="relu")
    if not reconstruct:
        return jnp.transpose(x, (0, 3, 1, 2))
    x = conv_transpose2d_s2(x, params["d1"]["w"], params["d1"]["b"], cout=128, activation="relu")
    x = conv_transpose2d_s2(x, params["d2"]["w"], params["d2"]["b"], cout=64, activation="relu")
    x = conv_transpose2d_s2(x, params["d3"]["w"], params["d3"]["b"], cout=3, activation="sigmoid")
    return jnp.transpose(x, (0, 3, 1, 2))


# ----------------------------------------------------------------------------
# Plain-XLA reference (for numerical verification only)
# ----------------------------------------------------------------------------
def _ref_conv(x_nhwc, w_oihw, b, stride, pad):
    y = jax.lax.conv_general_dilated(
        x_nhwc, jnp.transpose(w_oihw, (2, 3, 1, 0)),
        window_strides=(stride, stride), padding=((pad, pad), (pad, pad)),
        dimension_numbers=("NHWC", "HWIO", "NHWC"))
    return y + b


def _ref_convT(x_nhwc, w_iohw, b, stride, pad, output_padding):
    kh, kw = w_iohw.shape[2], w_iohw.shape[3]
    w_flip = jnp.transpose(w_iohw[:, :, ::-1, ::-1], (2, 3, 0, 1))
    y = jax.lax.conv_general_dilated(
        x_nhwc, w_flip, window_strides=(1, 1),
        padding=((kh - 1 - pad, kh - 1 - pad + output_padding),
                 (kw - 1 - pad, kw - 1 - pad + output_padding)),
        lhs_dilation=(stride, stride),
        dimension_numbers=("NHWC", "HWIO", "NHWC"))
    return y + b


def reference_forward(x_nchw, raw):
    x = jnp.transpose(x_nchw, (0, 2, 3, 1)).astype(jnp.float32)
    x = jax.nn.relu(_ref_conv(x, raw["e1_w"], raw["e1_b"], 2, 1))
    x = jax.nn.relu(_ref_conv(x, raw["e2_w"], raw["e2_b"], 2, 1))
    x = jax.nn.relu(_ref_conv(x, raw["e3_w"], raw["e3_b"], 2, 1))
    enc = jnp.transpose(x, (0, 3, 1, 2))
    x = jax.nn.relu(_ref_convT(x, raw["d1_w"], raw["d1_b"], 2, 1, 1))
    x = jax.nn.relu(_ref_convT(x, raw["d2_w"], raw["d2_b"], 2, 1, 1))
    x = jax.nn.sigmoid(_ref_convT(x, raw["d3_w"], raw["d3_b"], 2, 1, 1))
    dec = jnp.transpose(x, (0, 3, 1, 2))
    return dec, enc


if __name__ == "__main__":
    key = jax.random.PRNGKey(0)
    pkey, xkey = jax.random.split(key)
    raw = init_raw_params(pkey)
    params = pack_params(raw)

    # small deterministic input: batch=2, channels=3, spatial=16x16 (NCHW)
    x = jax.random.normal(xkey, (2, 3, 16, 16), dtype=jnp.float32)

    fwd = jax.jit(simple_autoencoder_forward, static_argnames=("reconstruct",))

    decoded = jax.block_until_ready(fwd(x, params, reconstruct=True))
    encoded = jax.block_until_ready(fwd(x, params, reconstruct=False))

    assert decoded.shape == (2, 3, 16, 16), decoded.shape
    assert encoded.shape == (2, 256, 2, 2), encoded.shape
    assert bool(jnp.all(jnp.isfinite(decoded)))
    assert bool(jnp.all((decoded >= 0.0) & (decoded <= 1.0)))   # sigmoid range

    # numerical check vs plain-XLA reference (bf16 MXU inputs, f32 accumulate)
    ref_dec, ref_enc = reference_forward(x, raw)
    assert bool(jnp.allclose(encoded, ref_enc, atol=5e-2, rtol=5e-2)), "encoder mismatch"
    assert bool(jnp.allclose(decoded, ref_dec, atol=5e-2, rtol=5e-2)), "decoder mismatch"

    print("KERNEL_OK")
</pallas_src>

<mosaic_0001>
module attributes {stable_mosaic.version = 11 : i64} {
  func.func @_matmul_bias_act_kernel(%arg0: i32, %arg1: i32, %arg2: memref<128x32xbf16, #tpu.memory_space<vmem>>, %arg3: memref<32x128xbf16, #tpu.memory_space<vmem>>, %arg4: memref<1x128xf32, #tpu.memory_space<vmem>>, %arg5: memref<128x128xf32, #tpu.memory_space<vmem>>) attributes {dimension_semantics = [#tpu.dimension_semantics<parallel>, #tpu.dimension_semantics<parallel>], iteration_bounds = array<i64: 1, 1>, scalar_prefetch = 0 : i64, scratch_operands = 0 : i64, tpu.core_type = #tpu.core_type<tc>, window_params = [{transform_indices = @transform_0, window_bounds = array<i64: 128, 32>}, {transform_indices = @transform_1, window_bounds = array<i64: 32, 128>}, {transform_indices = @transform_2, window_bounds = array<i64: 1, 128>}, {transform_indices = @transform_3, window_bounds = array<i64: 128, 128>}]} {
    %c0 = arith.constant 0 : index
    %c0_0 = arith.constant 0 : index
    %0 = vector.load %arg2[%c0, %c0_0] : memref<128x32xbf16, #tpu.memory_space<vmem>>, vector<128x32xbf16>
    %c0_1 = arith.constant 0 : index
    %c0_2 = arith.constant 0 : index
    %1 = vector.load %arg3[%c0_1, %c0_2] : memref<32x128xbf16, #tpu.memory_space<vmem>>, vector<32x128xbf16>
    %cst = arith.constant dense<0.000000e+00> : vector<128x128xf32>
    %2 = tpu.matmul %0, %1, %cst {dimension_numbers = #tpu.dot_dimension_numbers<[1], [0], [0], [1], [0, 0, 1, 1], [], []>} : vector<128x32xbf16>, vector<32x128xbf16>, vector<128x128xf32> -> vector<128x128xf32>
    %c0_3 = arith.constant 0 : index
    %c0_4 = arith.constant 0 : index
    %3 = vector.load %arg4[%c0_3, %c0_4] : memref<1x128xf32, #tpu.memory_space<vmem>>, vector<1x128xf32>
    %4 = vector.broadcast %3 : vector<1x128xf32> to vector<128x128xf32>
    %5 = arith.addf %2, %4 : vector<128x128xf32>
    %cst_5 = arith.constant 0.000000e+00 : f32
    %6 = vector.broadcast %cst_5 : f32 to vector<128x128xf32>
    %7 = arith.maximumf %5, %6 : vector<128x128xf32>
    %c0_6 = arith.constant 0 : index
    %c0_7 = arith.constant 0 : index
    %8 = vector.load %arg5[%c0_6, %c0_7] : memref<128x128xf32, #tpu.memory_space<vmem>>, vector<128x128xf32>
    tpu.vector_store %arg5[%c0_6, %c0_7], %7 {strides = array<i32>} : memref<128x128xf32, #tpu.memory_space<vmem>>, vector<128x128xf32>,
    return
  }
  func.func @transform_0(%arg0: i32, %arg1: i32) -> (i32, i32) {
    %c0_i32 = arith.constant 0 : i32
    %c0_i32_0 = arith.constant 0 : i32
    return %arg0, %c0_i32 : i32, i32
  }
  func.func @transform_1(%arg0: i32, %arg1: i32) -> (i32, i32) {
    %c0_i32 = arith.constant 0 : i32
    %c0_i32_0 = arith.constant 0 : i32
    return %c0_i32, %arg1 : i32, i32
  }
  func.func @transform_2(%arg0: i32, %arg1: i32) -> (i32, i32) {
    %c0_i32 = arith.constant 0 : i32
    %c0_i32_0 = arith.constant 0 : i32
    return %c0_i32, %arg1 : i32, i32
  }
  func.func @transform_3(%arg0: i32, %arg1: i32) -> (i32, i32) {
    %c0_i32 = arith.constant 0 : i32
    return %arg0, %arg1 : i32, i32
  }
}

module attributes {stable_mosaic.version = 11 : i64} {
  func.func @_matmul_bias_act_kernel(%arg0: i32, %arg1: i32, %arg2: memref<32x576xbf16, #tpu.memory_space<vmem>>, %arg3: memref<576x128xbf16, #tpu.memory_space<vmem>>, %arg4: memref<1x128xf32, #tpu.memory_space<vmem>>, %arg5: memref<32x128xf32, #tpu.memory_space<vmem>>) attributes {dimension_semantics = [#tpu.dimension_semantics<parallel>, #tpu.dimension_semantics<parallel>], iteration_bounds = array<i64: 1, 1>, scalar_prefetch = 0 : i64, scratch_operands = 0 : i64, tpu.core_type = #tpu.core_type<tc>, window_params = [{transform_indices = @transform_0, window_bounds = array<i64: 32, 576>}, {transform_indices = @transform_1, window_bounds = array<i64: 576, 128>}, {transform_indices = @transform_2, window_bounds = array<i64: 1, 128>}, {transform_indices = @transform_3, window_bounds = array<i64: 32, 128>}]} {
    %c0 = arith.constant 0 : index
    %c0_0 = arith.constant 0 : index
    %0 = vector.load %arg2[%c0, %c0_0] : memref<32x576xbf16, #tpu.memory_space<vmem>>, vector<32x576xbf16>
    %c0_1 = arith.constant 0 : index
    %c0_2 = arith.constant 0 : index
    %1 = vector.load %arg3[%c0_1, %c0_2] : memref<576x128xbf16, #tpu.memory_space<vmem>>, vector<576x128xbf16>
    %cst = arith.constant dense<0.000000e+00> : vector<32x128xf32>
    %2 = tpu.matmul %0, %1, %cst {dimension_numbers = #tpu.dot_dimension_numbers<[1], [0], [0], [1], [0, 0, 1, 1], [], []>} : vector<32x576xbf16>, vector<576x128xbf16>, vector<32x128xf32> -> vector<32x128xf32>
    %c0_3 = arith.constant 0 : index
    %c0_4 = arith.constant 0 : index
    %3 = vector.load %arg4[%c0_3, %c0_4] : memref<1x128xf32, #tpu.memory_space<vmem>>, vector<1x128xf32>
    %4 = vector.broadcast %3 : vector<1x128xf32> to vector<32x128xf32>
    %5 = arith.addf %2, %4 : vector<32x128xf32>
    %cst_5 = arith.constant 0.000000e+00 : f32
    %6 = vector.broadcast %cst_5 : f32 to vector<32x128xf32>
    %7 = arith.maximumf %5, %6 : vector<32x128xf32>
    %c0_6 = arith.constant 0 : index
    %c0_7 = arith.constant 0 : index
    %8 = vector.load %arg5[%c0_6, %c0_7] : memref<32x128xf32, #tpu.memory_space<vmem>>, vector<32x128xf32>
    tpu.vector_store %arg5[%c0_6, %c0_7], %7 {strides = array<i32>} : memref<32x128xf32, #tpu.memory_space<vmem>>, vector<32x128xf32>,
    return
  }
  func.func @transform_0(%arg0: i32, %arg1: i32) -> (i32, i32) {
    %c0_i32 = arith.constant 0 : i32
    %c0_i32_0 = arith.constant 0 : i32
    return %arg0, %c0_i32 : i32, i32
  }
  func.func @transform_1(%arg0: i32, %arg1: i32) -> (i32, i32) {
    %c0_i32 = arith.constant 0 : i32
    %c0_i32_0 = arith.constant 0 : i32
    return %c0_i32, %arg1 : i32, i32
  }
  func.func @transform_2(%arg0: i32, %arg1: i32) -> (i32, i32) {
    %c0_i32 = arith.constant 0 : i32
    %c0_i32_0 = arith.constant 0 : i32
    return %c0_i32, %arg1 : i32, i32
  }
  func.func @transform_3(%arg0: i32, %arg1: i32) -> (i32, i32) {
    %c0_i32 = arith.constant 0 : i32
    return %arg0, %arg1 : i32, i32
  }
}

module attributes {stable_mosaic.version = 11 : i64} {
  func.func @_matmul_bias_act_kernel(%arg0: i32, %arg1: i32, %arg2: memref<8x1152xbf16, #tpu.memory_space<vmem>>, %arg3: memref<1152x128xbf16, #tpu.memory_space<vmem>>, %arg4: memref<1x128xf32, #tpu.memory_space<vmem>>, %arg5: memref<8x128xf32, #tpu.memory_space<vmem>>) attributes {dimension_semantics = [#tpu.dimension_semantics<parallel>, #tpu.dimension_semantics<parallel>], iteration_bounds = array<i64: 1, 2>, scalar_prefetch = 0 : i64, scratch_operands = 0 : i64, tpu.core_type = #tpu.core_type<tc>, window_params = [{transform_indices = @transform_0, window_bounds = array<i64: 8, 1152>}, {transform_indices = @transform_1, window_bounds = array<i64: 1152, 128>}, {transform_indices = @transform_2, window_bounds = array<i64: 1, 128>}, {transform_indices = @transform_3, window_bounds = array<i64: 8, 128>}]} {
    %c0 = arith.constant 0 : index
    %c0_0 = arith.constant 0 : index
    %0 = vector.load %arg2[%c0, %c0_0] : memref<8x1152xbf16, #tpu.memory_space<vmem>>, vector<8x1152xbf16>
    %c0_1 = arith.constant 0 : index
    %c0_2 = arith.constant 0 : index
    %1 = vector.load %arg3[%c0_1, %c0_2] : memref<1152x128xbf16, #tpu.memory_space<vmem>>, vector<1152x128xbf16>
    %cst = arith.constant dense<0.000000e+00> : vector<8x128xf32>
    %2 = tpu.matmul %0, %1, %cst {dimension_numbers = #tpu.dot_dimension_numbers<[1], [0], [0], [1], [0, 0, 1, 1], [], []>} : vector<8x1152xbf16>, vector<1152x128xbf16>, vector<8x128xf32> -> vector<8x128xf32>
    %c0_3 = arith.constant 0 : index
    %c0_4 = arith.constant 0 : index
    %3 = vector.load %arg4[%c0_3, %c0_4] : memref<1x128xf32, #tpu.memory_space<vmem>>, vector<1x128xf32>
    %4 = vector.broadcast %3 : vector<1x128xf32> to vector<8x128xf32>
    %5 = arith.addf %2, %4 : vector<8x128xf32>
    %cst_5 = arith.constant 0.000000e+00 : f32
    %6 = vector.broadcast %cst_5 : f32 to vector<8x128xf32>
    %7 = arith.maximumf %5, %6 : vector<8x128xf32>
    %c0_6 = arith.constant 0 : index
    %c0_7 = arith.constant 0 : index
    %8 = vector.load %arg5[%c0_6, %c0_7] : memref<8x128xf32, #tpu.memory_space<vmem>>, vector<8x128xf32>
    tpu.vector_store %arg5[%c0_6, %c0_7], %7 {strides = array<i32>} : memref<8x128xf32, #tpu.memory_space<vmem>>, vector<8x128xf32>,
    return
  }
  func.func @transform_0(%arg0: i32, %arg1: i32) -> (i32, i32) {
    %c0_i32 = arith.constant 0 : i32
    %c0_i32_0 = arith.constant 0 : i32
    return %arg0, %c0_i32 : i32, i32
  }
  func.func @transform_1(%arg0: i32, %arg1: i32) -> (i32, i32) {
    %c0_i32 = arith.constant 0 : i32
    %c0_i32_0 = arith.constant 0 : i32
    return %c0_i32, %arg1 : i32, i32
  }
  func.func @transform_2(%arg0: i32, %arg1: i32) -> (i32, i32) {
    %c0_i32 = arith.constant 0 : i32
    %c0_i32_0 = arith.constant 0 : i32
    return %c0_i32, %arg1 : i32, i32
  }
  func.func @transform_3(%arg0: i32, %arg1: i32) -> (i32, i32) {
    %c0_i32 = arith.constant 0 : i32
    return %arg0, %arg1 : i32, i32
  }
}

module attributes {stable_mosaic.version = 11 : i64} {
  func.func @_matmul_bias_act_kernel(%arg0: i32, %arg1: i32, %arg2: memref<8x1024xbf16, #tpu.memory_space<vmem>>, %arg3: memref<1024x128xbf16, #tpu.memory_space<vmem>>, %arg4: memref<1x128xf32, #tpu.memory_space<vmem>>, %arg5: memref<8x128xf32, #tpu.memory_space<vmem>>) attributes {dimension_semantics = [#tpu.dimension_semantics<parallel>, #tpu.dimension_semantics<parallel>], iteration_bounds = array<i64: 1, 4>, scalar_prefetch = 0 : i64, scratch_operands = 0 : i64, tpu.core_type = #tpu.core_type<tc>, window_params = [{transform_indices = @transform_0, window_bounds = array<i64: 8, 1024>}, {transform_indices = @transform_1, window_bounds = array<i64: 1024, 128>}, {transform_indices = @transform_2, window_bounds = array<i64: 1, 128>}, {transform_indices = @transform_3, window_bounds = array<i64: 8, 128>}]} {
    %c0 = arith.constant 0 : index
    %c0_0 = arith.constant 0 : index
    %0 = vector.load %arg2[%c0, %c0_0] : memref<8x1024xbf16, #tpu.memory_space<vmem>>, vector<8x1024xbf16>
    %c0_1 = arith.constant 0 : index
    %c0_2 = arith.constant 0 : index
    %1 = vector.load %arg3[%c0_1, %c0_2] : memref<1024x128xbf16, #tpu.memory_space<vmem>>, vector<1024x128xbf16>
    %cst = arith.constant dense<0.000000e+00> : vector<8x128xf32>
    %2 = tpu.matmul %0, %1, %cst {dimension_numbers = #tpu.dot_dimension_numbers<[1], [0], [0], [1], [0, 0, 1, 1], [], []>} : vector<8x1024xbf16>, vector<1024x128xbf16>, vector<8x128xf32> -> vector<8x128xf32>
    %c0_3 = arith.constant 0 : index
    %c0_4 = arith.constant 0 : index
    %3 = vector.load %arg4[%c0_3, %c0_4] : memref<1x128xf32, #tpu.memory_space<vmem>>, vector<1x128xf32>
    %4 = vector.broadcast %3 : vector<1x128xf32> to vector<8x128xf32>
    %5 = arith.addf %2, %4 : vector<8x128xf32>
    %cst_5 = arith.constant 0.000000e+00 : f32
    %6 = vector.broadcast %cst_5 : f32 to vector<8x128xf32>
    %7 = arith.maximumf %5, %6 : vector<8x128xf32>
    %c0_6 = arith.constant 0 : index
    %c0_7 = arith.constant 0 : index
    %8 = vector.load %arg5[%c0_6, %c0_7] : memref<8x128xf32, #tpu.memory_space<vmem>>, vector<8x128xf32>
    tpu.vector_store %arg5[%c0_6, %c0_7], %7 {strides = array<i32>} : memref<8x128xf32, #tpu.memory_space<vmem>>, vector<8x128xf32>,
    return
  }
  func.func @transform_0(%arg0: i32, %arg1: i32) -> (i32, i32) {
    %c0_i32 = arith.constant 0 : i32
    %c0_i32_0 = arith.constant 0 : i32
    return %arg0, %c0_i32 : i32, i32
  }
  func.func @transform_1(%arg0: i32, %arg1: i32) -> (i32, i32) {
    %c0_i32 = arith.constant 0 : i32
    %c0_i32_0 = arith.constant 0 : i32
    return %c0_i32, %arg1 : i32, i32
  }
  func.func @transform_2(%arg0: i32, %arg1: i32) -> (i32, i32) {
    %c0_i32 = arith.constant 0 : i32
    %c0_i32_0 = arith.constant 0 : i32
    return %c0_i32, %arg1 : i32, i32
  }
  func.func @transform_3(%arg0: i32, %arg1: i32) -> (i32, i32) {
    %c0_i32 = arith.constant 0 : i32
    return %arg0, %arg1 : i32, i32
  }
}

module attributes {stable_mosaic.version = 11 : i64} {
  func.func @_matmul_bias_act_kernel(%arg0: i32, %arg1: i32, %arg2: memref<32x512xbf16, #tpu.memory_space<vmem>>, %arg3: memref<512x128xbf16, #tpu.memory_space<vmem>>, %arg4: memref<1x128xf32, #tpu.memory_space<vmem>>, %arg5: memref<32x128xf32, #tpu.memory_space<vmem>>) attributes {dimension_semantics = [#tpu.dimension_semantics<parallel>, #tpu.dimension_semantics<parallel>], iteration_bounds = array<i64: 1, 2>, scalar_prefetch = 0 : i64, scratch_operands = 0 : i64, tpu.core_type = #tpu.core_type<tc>, window_params = [{transform_indices = @transform_0, window_bounds = array<i64: 32, 512>}, {transform_indices = @transform_1, window_bounds = array<i64: 512, 128>}, {transform_indices = @transform_2, window_bounds = array<i64: 1, 128>}, {transform_indices = @transform_3, window_bounds = array<i64: 32, 128>}]} {
    %c0 = arith.constant 0 : index
    %c0_0 = arith.constant 0 : index
    %0 = vector.load %arg2[%c0, %c0_0] : memref<32x512xbf16, #tpu.memory_space<vmem>>, vector<32x512xbf16>
    %c0_1 = arith.constant 0 : index
    %c0_2 = arith.constant 0 : index
    %1 = vector.load %arg3[%c0_1, %c0_2] : memref<512x128xbf16, #tpu.memory_space<vmem>>, vector<512x128xbf16>
    %cst = arith.constant dense<0.000000e+00> : vector<32x128xf32>
    %2 = tpu.matmul %0, %1, %cst {dimension_numbers = #tpu.dot_dimension_numbers<[1], [0], [0], [1], [0, 0, 1, 1], [], []>} : vector<32x512xbf16>, vector<512x128xbf16>, vector<32x128xf32> -> vector<32x128xf32>
    %c0_3 = arith.constant 0 : index
    %c0_4 = arith.constant 0 : index
    %3 = vector.load %arg4[%c0_3, %c0_4] : memref<1x128xf32, #tpu.memory_space<vmem>>, vector<1x128xf32>
    %4 = vector.broadcast %3 : vector<1x128xf32> to vector<32x128xf32>
    %5 = arith.addf %2, %4 : vector<32x128xf32>
    %cst_5 = arith.constant 0.000000e+00 : f32
    %6 = vector.broadcast %cst_5 : f32 to vector<32x128xf32>
    %7 = arith.maximumf %5, %6 : vector<32x128xf32>
    %c0_6 = arith.constant 0 : index
    %c0_7 = arith.constant 0 : index
    %8 = vector.load %arg5[%c0_6, %c0_7] : memref<32x128xf32, #tpu.memory_space<vmem>>, vector<32x128xf32>
    tpu.vector_store %arg5[%c0_6, %c0_7], %7 {strides = array<i32>} : memref<32x128xf32, #tpu.memory_space<vmem>>, vector<32x128xf32>,
    return
  }
  func.func @transform_0(%arg0: i32, %arg1: i32) -> (i32, i32) {
    %c0_i32 = arith.constant 0 : i32
    %c0_i32_0 = arith.constant 0 : i32
    return %arg0, %c0_i32 : i32, i32
  }
  func.func @transform_1(%arg0: i32, %arg1: i32) -> (i32, i32) {
    %c0_i32 = arith.constant 0 : i32
    %c0_i32_0 = arith.constant 0 : i32
    return %c0_i32, %arg1 : i32, i32
  }
  func.func @transform_2(%arg0: i32, %arg1: i32) -> (i32, i32) {
    %c0_i32 = arith.constant 0 : i32
    %c0_i32_0 = arith.constant 0 : i32
    return %c0_i32, %arg1 : i32, i32
  }
  func.func @transform_3(%arg0: i32, %arg1: i32) -> (i32, i32) {
    %c0_i32 = arith.constant 0 : i32
    return %arg0, %arg1 : i32, i32
  }
}

module attributes {stable_mosaic.version = 11 : i64} {
  func.func @_matmul_bias_act_kernel(%arg0: i32, %arg1: i32, %arg2: memref<128x256xbf16, #tpu.memory_space<vmem>>, %arg3: memref<256x128xbf16, #tpu.memory_space<vmem>>, %arg4: memref<1x128xf32, #tpu.memory_space<vmem>>, %arg5: memref<128x128xf32, #tpu.memory_space<vmem>>) attributes {dimension_semantics = [#tpu.dimension_semantics<parallel>, #tpu.dimension_semantics<parallel>], iteration_bounds = array<i64: 1, 1>, scalar_prefetch = 0 : i64, scratch_operands = 0 : i64, tpu.core_type = #tpu.core_type<tc>, window_params = [{transform_indices = @transform_0, window_bounds = array<i64: 128, 256>}, {transform_indices = @transform_1, window_bounds = array<i64: 256, 128>}, {transform_indices = @transform_2, window_bounds = array<i64: 1, 128>}, {transform_indices = @transform_3, window_bounds = array<i64: 128, 128>}]} {
    %c0 = arith.constant 0 : index
    %c0_0 = arith.constant 0 : index
    %0 = vector.load %arg2[%c0, %c0_0] : memref<128x256xbf16, #tpu.memory_space<vmem>>, vector<128x256xbf16>
    %c0_1 = arith.constant 0 : index
    %c0_2 = arith.constant 0 : index
    %1 = vector.load %arg3[%c0_1, %c0_2] : memref<256x128xbf16, #tpu.memory_space<vmem>>, vector<256x128xbf16>
    %cst = arith.constant dense<0.000000e+00> : vector<128x128xf32>
    %2 = tpu.matmul %0, %1, %cst {dimension_numbers = #tpu.dot_dimension_numbers<[1], [0], [0], [1], [0, 0, 1, 1], [], []>} : vector<128x256xbf16>, vector<256x128xbf16>, vector<128x128xf32> -> vector<128x128xf32>
    %c0_3 = arith.constant 0 : index
    %c0_4 = arith.constant 0 : index
    %3 = vector.load %arg4[%c0_3, %c0_4] : memref<1x128xf32, #tpu.memory_space<vmem>>, vector<1x128xf32>
    %4 = vector.broadcast %3 : vector<1x128xf32> to vector<128x128xf32>
    %5 = arith.addf %2, %4 : vector<128x128xf32>
    %6 = arith.negf %5 : vector<128x128xf32>
    %7 = math.exp %6 : vector<128x128xf32>
    %cst_5 = arith.constant 1.000000e+00 : f32
    %8 = vector.broadcast %cst_5 : f32 to vector<128x128xf32>
    %9 = arith.addf %8, %7 : vector<128x128xf32>
    %10 = arith.divf %8, %9 : vector<128x128xf32>
    %c0_6 = arith.constant 0 : index
    %c0_7 = arith.constant 0 : index
    %11 = vector.load %arg5[%c0_6, %c0_7] : memref<128x128xf32, #tpu.memory_space<vmem>>, vector<128x128xf32>
    tpu.vector_store %arg5[%c0_6, %c0_7], %10 {strides = array<i32>} : memref<128x128xf32, #tpu.memory_space<vmem>>, vector<128x128xf32>,
    return
  }
  func.func @transform_0(%arg0: i32, %arg1: i32) -> (i32, i32) {
    %c0_i32 = arith.constant 0 : i32
    %c0_i32_0 = arith.constant 0 : i32
    return %arg0, %c0_i32 : i32, i32
  }
  func.func @transform_1(%arg0: i32, %arg1: i32) -> (i32, i32) {
    %c0_i32 = arith.constant 0 : i32
    %c0_i32_0 = arith.constant 0 : i32
    return %c0_i32, %arg1 : i32, i32
  }
  func.func @transform_2(%arg0: i32, %arg1: i32) -> (i32, i32) {
    %c0_i32 = arith.constant 0 : i32
    %c0_i32_0 = arith.constant 0 : i32
    return %c0_i32, %arg1 : i32, i32
  }
  func.func @transform_3(%arg0: i32, %arg1: i32) -> (i32, i32) {
    %c0_i32 = arith.constant 0 : i32
    return %arg0, %arg1 : i32, i32
  }
}

</mosaic_0001>

<bundles_post_ra>
// kernel: simple_autoencoder_forward.13
= control target key start
LH: loop header
LB: loop body
LE: loop exit
PB: predicated region body
PF: predicated region fallthrough
CT: control target
= control target key end

     0   :  { %s858_s0 = inlined_call_operand.vmem [shape: bf16[32,128], index: 0, kind: input, shape index: {}]   ;;  %s859_s1 = inlined_call_operand.vmem [shape: f32[1,128], index: 1, kind: input, shape index: {}]   ;;  %s860_s2 = inlined_call_operand.vmem [shape: bf16[128,27], index: 2, kind: input, shape index: {}]   ;;  %s861_s3 = inlined_call_operand.<no memory space> [shape: bf16[], index: 3, kind: input, shape index: {}]   ;;  %s862_s4 = inlined_call_operand.vmem [shape: f32[128,128], index: 4, kind: output, shape index: {}]  }
   0x1   :  { %v9_v0 = vstv %s861_s3 }
   0x2   :  { %v716_v1 = vunpack.i.l.bf16 %v9_v0 }
   0x3   :  { %v677_v2 = vld [vmem:[%s858_s0] sm:$0xff]   ;;  %v32_v3 = vlaneseq  ;;  %v678_v4 = vld [vmem:[%s858_s0 + $0x8] sm:$0xff]   ;;  %v611_v21 = vld [vmem:[%s860_s2 + $0x10] sm:$0xff]   ;;  %v687_v22 = vmov 0.0   ;;  %vm450_vm1 = vcmask 261120  }
   0x4   :  { %652 = vmatprep.subr.bf16.mxu0 %v677_v2  ;;  %672 = vmatprep.subr.bf16.mxu1 %v677_v2  ;;  %v29_v5 = vld [vmem:[%s860_s2] sm:$0xff]   ;;  %v609_v8 = vld [vmem:[%s860_s2 + $0x8] sm:$0xff]   ;;  %v619_v27 = vld [vmem:[%s860_s2 + $0x30] sm:$0xff]   ;;  %v117_v36 = vunpack.c.l.bf16 %v611_v21  ;;  %v139_v38 = vunpack.c.h.bf16 %v611_v21 }
   0x5   :  { %v727_v6 = vand.u32 127, %v32_v3  ;;  %v615_v7 = vld [vmem:[%s860_s2 + $0x20] sm:$0xff]   ;;  %653 = vmatpush3.bf16.msra.mxu0 %v677_v2  ;;  %674 = vmatpush3.bf16.msra.mxu1 %v677_v2  ;;  %v30_v9 = vunpack.c.l.bf16 %v29_v5  ;;  %v51_v10 = vunpack.c.h.bf16 %v29_v5  ;;  %v617_v13 = vld [vmem:[%s860_s2 + $0x28] sm:$0xff]   ;;  %v73_v14 = vunpack.c.l.bf16 %v609_v8  ;;  %v613_v32 = vld [vmem:[%s860_s2 + $0x18] sm:$0xff]  }
   0x6   :  { %v205_v11 = vunpack.c.l.bf16 %v615_v7  ;;  %v227_v12 = vunpack.c.h.bf16 %v615_v7  ;;  %654 = vmatprep.subr.bf16.mxu0 %v678_v4  ;;  %673 = vmatprep.subr.bf16.mxu1 %v678_v4  ;;  %v95_v15 = vunpack.c.h.bf16 %v609_v8  ;;  %v249_v16 = vunpack.c.l.bf16 %v617_v13  ;;  %v621_v45 = vld [vmem:[%s860_s2 + $0x38] sm:$0xff]   ;;  %v623_v7 = vld [vmem:[%s859_s1] ss:$0 sm:$0xff] }
   0x7   :  { %vm35_vm0 = vcmp.lt.s32.totalorder %v727_v6, 27  ;;  %v271_v31 = vunpack.c.h.bf16 %v617_v13  ;;  %v293_v39 = vunpack.c.l.bf16 %v619_v27  ;;  %v315_v40 = vunpack.c.h.bf16 %v619_v27 }
   0x8   :  { %v36_v17 = vsel %vm35_vm0, %v30_v9, %v716_v1  ;;  %v57_v18 = vsel %vm35_vm0, %v51_v10, %v716_v1  ;;  %v211_v19 = vsel %vm35_vm0, %v205_v11, %v716_v1  ;;  %v233_v20 = vsel %vm35_vm0, %v227_v12, %v716_v1 }
   0x9   :  { %v37_v23 = vpack.c.bf16 %v687_v22, %v36_v17  ;;  %v59_v24 = vpack.c.bf16 %v687_v22, %v57_v18  ;;  %v213_v25 = vpack.c.bf16 %v687_v22, %v211_v19  ;;  %v235_v26 = vpack.c.bf16 %v687_v22, %v233_v20  ;;  %655 = vmatpush3.bf16.msra.mxu0 %v678_v4 }
   0xa   :  { %675 = vmatpush3.bf16.msra.mxu1 %v678_v4  ;;  %v79_v28 = vsel %vm35_vm0, %v73_v14, %v716_v1  ;;  %v101_v29 = vsel %vm35_vm0, %v95_v15, %v716_v1  ;;  %v255_v30 = vsel %vm35_vm0, %v249_v16, %v716_v1  ;;  %v277_v37 = vsel %vm35_vm0, %v271_v31, %v716_v1 }
   0xb   :  { %39 = vst [vmem:[#allocation7] sm:$0xf] %v37_v23  ;;  %61 = vst [vmem:[#allocation7 + $0x4] sm:$0xf] %v59_v24  ;;  %v81_v33 = vpack.c.bf16 %v687_v22, %v79_v28  ;;  %v103_v34 = vpack.c.bf16 %v687_v22, %v101_v29  ;;  %v257_v35 = vpack.c.bf16 %v687_v22, %v255_v30  ;;  %v161_v43 = vunpack.c.l.bf16 %v613_v32 }
   0xc   :  { %215 = vst [vmem:[#allocation7 + $0x20] sm:$0xf] %v213_v25  ;;  %237 = vst [vmem:[#allocation7 + $0x24] sm:$0xf] %v235_v26  ;;  %v279_v41 = vpack.c.bf16 %v687_v22, %v277_v37  ;;  %v123_v42 = vsel %vm35_vm0, %v117_v36, %v716_v1  ;;  %v183_v44 = vunpack.c.h.bf16 %v613_v32  ;;  %v145_v47 = vsel %vm35_vm0, %v139_v38, %v716_v1 }
   0xd   :  { %83 = vst [vmem:[#allocation7 + $0x8] sm:$0xf] %v81_v33  ;;  %105 = vst [vmem:[#allocation7 + $0xc] sm:$0xf] %v103_v34  ;;  %v125_v46 = vpack.c.bf16 %v687_v22, %v123_v42  ;;  %v299_v48 = vsel %vm35_vm0, %v293_v39, %v716_v1  ;;  %v321_v49 = vsel %vm35_vm0, %v315_v40, %v716_v1  ;;  %v337_v56 = vunpack.c.l.bf16 %v621_v45 }
   0xe   :  { %259 = vst [vmem:[#allocation7 + $0x28] sm:$0xf] %v257_v35  ;;  %281 = vst [vmem:[#allocation7 + $0x2c] sm:$0xf] %v279_v41  ;;  %v147_v50 = vpack.c.bf16 %v687_v22, %v145_v47  ;;  %v301_v51 = vpack.c.bf16 %v687_v22, %v299_v48  ;;  %v323_v52 = vpack.c.bf16 %v687_v22, %v321_v49  ;;  %v359_v57 = vunpack.c.h.bf16 %v621_v45 }
   0xf   :  { %v167_v53 = vsel %vm35_vm0, %v161_v43, %v716_v1  ;;  %127 = vst [vmem:[#allocation7 + $0x10] sm:$0xf] %v125_v46  ;;  %v189_v55 = vsel %vm35_vm0, %v183_v44, %v716_v1  ;;  %v343_v60 = vsel %vm35_vm0, %v337_v56, %v716_v1 }
  0x10   :  { %v169_v54 = vpack.c.bf16 %v687_v22, %v167_v53  ;;  %149 = vst [vmem:[#allocation7 + $0x14] sm:$0xf] %v147_v50  ;;  %303 = vst [vmem:[#allocation7 + $0x30] sm:$0xf] %v301_v51  ;;  %v191_v58 = vpack.c.bf16 %v687_v22, %v189_v55  ;;  %v365_v61 = vsel %vm35_vm0, %v359_v57, %v716_v1 }
  0x11   :  { %325 = vst [vmem:[#allocation7 + $0x34] sm:$0xf] %v323_v52  ;;  %v345_v63 = vpack.c.bf16 %v687_v22, %v343_v60  ;;  %v367_v0 = vpack.c.bf16 %v687_v22, %v365_v61 }
  0x12   :  { %v679_v59 = vld [vmem:[#allocation7] sm:$0xff]   ;;  %171 = vst [vmem:[#allocation7 + $0x18] sm:$0xf] %v169_v54  ;;  %193 = vst [vmem:[#allocation7 + $0x1c] sm:$0xf] %v191_v58 }
  0x13   :  { %v680_v62 = vld [vmem:[#allocation7 + $0x20] sm:$0xff]   ;;  %656 = vmatprep.mubr.msk.bf16.mxu0 %vm450_vm1, %v679_v59  ;;  %347 = vst [vmem:[#allocation7 + $0x38] sm:$0xf] %v345_v63  ;;  %369 = vst [vmem:[#allocation7 + $0x3c] sm:$0xf] %v367_v0 }
  0x14   :  { %v681_v2 = vld [vmem:[#allocation7 + $0x8] sm:$0xff]   ;;  %664 = vmatprep.mubr.msk.bf16.mxu1 %vm450_vm1, %v680_v62 }
  0x15   :  { %657 = vmatmul.mubr.msk.bf16.vlgmr.msra.gmra.mrb[0].mxu0 %vm450_vm1, %v681_v2  ;;  %v682_v3 = vld [vmem:[#allocation7 + $0x28] sm:$0xff]  }
  0x16   :  { %665 = vmatmul.mubr.msk.bf16.vlgmr.msra.gmra.mrb[0].mxu1 %vm450_vm1, %v682_v3 }
  0x17   :  { %v683_v4 = vld [vmem:[#allocation7 + $0x10] sm:$0xff]  }
  0x18   :  { %v684_v5 = vld [vmem:[#allocation7 + $0x30] sm:$0xff]   ;;  %660 = vmatprep.mubr.msk.bf16.mxu0 %vm450_vm1, %v683_v4 }
  0x19   :  { %v685_v1 = vld [vmem:[#allocation7 + $0x18] sm:$0xff]   ;;  %668 = vmatprep.mubr.msk.bf16.mxu1 %vm450_vm1, %v684_v5 }
  0x1a   :  { %v686_v6 = vld [vmem:[#allocation7 + $0x38] sm:$0xff]  }
  0x1d   :  { %661 = vmatmul.mubr.msk.bf16.gmra.mrb[4].mxu0 %vm450_vm1, %v685_v1 }
  0x1e   :  { %669 = vmatmul.mubr.msk.bf16.gmra.mrb[4].mxu1 %vm450_vm1, %v686_v6 }
  0xe8   :  { %v658_v8 = vpop.f32.mrb[0].mxu0 }
  0xe9   :  { %v518_v9 = vadd.f32 %v658_v8, %v623_v7  ;;  %v509_v10 = vpop.f32.mrb[1].mxu0  ;;  %v666_v11 = vpop.f32.mrb[0].mxu1 }
  0xea   :  { %v510_v12 = vadd.f32 %v623_v7, %v509_v10  ;;  %v659_v13 = vpop.f32.mrb[2].mxu0  ;;  %v550_v15 = vadd.f32 %v666_v11, %v623_v7  ;;  %v541_v16 = vpop.f32.mrb[1].mxu1 }
  0xeb   :  { %v574_v14 = vmax.f32 %v518_v9, 0.0  ;;  %v521_v17 = vadd.f32 %v659_v13, %v623_v7  ;;  %v512_v18 = vpop.f32.mrb[3].mxu0  ;;  %v542_v20 = vadd.f32 %v623_v7, %v541_v16  ;;  %v667_v21 = vpop.f32.mrb[2].mxu1 }
  0xec   :  { %v572_v19 = vmax.f32 %v510_v12, 0.0  ;;  %v513_v22 = vadd.f32 %v623_v7, %v512_v18  ;;  %v582_v23 = vmax.f32 %v550_v15, 0.0  ;;  %v553_v25 = vadd.f32 %v667_v21, %v623_v7  ;;  %v544_v26 = vpop.f32.mrb[3].mxu1 }
  0xed   :  { %590 = vst [vmem:[%s862_s4 + $0x10] sm:$0xff] %v574_v14  ;;  %v575_v24 = vmax.f32 %v521_v17, 0.0  ;;  %v580_v27 = vmax.f32 %v542_v20, 0.0  ;;  %v545_v29 = vadd.f32 %v623_v7, %v544_v26 }
  0xee   :  { %588 = vst [vmem:[%s862_s4] sm:$0xff] %v572_v19  ;;  %v573_v28 = vmax.f32 %v513_v22, 0.0  ;;  %598 = vst [vmem:[%s862_s4 + $0x50] sm:$0xff] %v582_v23  ;;  %v583_v30 = vmax.f32 %v553_v25, 0.0 }
  0xef   :  { %591 = vst [vmem:[%s862_s4 + $0x18] sm:$0xff] %v575_v24  ;;  %596 = vst [vmem:[%s862_s4 + $0x40] sm:$0xff] %v580_v27  ;;  %v581_v31 = vmax.f32 %v545_v29, 0.0 }
  0xf0   :  { %589 = vst [vmem:[%s862_s4 + $0x8] sm:$0xff] %v573_v28  ;;  %v662_v32 = vpop.f32.mrb[4].mxu0  ;;  %599 = vst [vmem:[%s862_s4 + $0x58] sm:$0xff] %v583_v30 }
  0xf1   :  { %v534_v33 = vadd.f32 %v662_v32, %v623_v7  ;;  %v525_v34 = vpop.f32.mrb[5].mxu0  ;;  %597 = vst [vmem:[%s862_s4 + $0x48] sm:$0xff] %v581_v31  ;;  %v670_v35 = vpop.f32.mrb[4].mxu1 }
  0xf2   :  { %v526_v36 = vadd.f32 %v623_v7, %v525_v34  ;;  %v663_v37 = vpop.f32.mrb[6].mxu0  ;;  %v566_v39 = vadd.f32 %v670_v35, %v623_v7  ;;  %v557_v40 = vpop.f32.mrb[5].mxu1 }
  0xf3   :  { %v578_v38 = vmax.f32 %v534_v33, 0.0  ;;  %v537_v41 = vadd.f32 %v663_v37, %v623_v7  ;;  %v528_v42 = vpop.f32.mrb[7].mxu0  ;;  %v558_v44 = vadd.f32 %v623_v7, %v557_v40  ;;  %v671_v45 = vpop.f32.mrb[6].mxu1 }
  0xf4   :  { %v576_v43 = vmax.f32 %v526_v36, 0.0  ;;  %v529_v46 = vadd.f32 %v623_v7, %v528_v42  ;;  %v586_v47 = vmax.f32 %v566_v39, 0.0  ;;  %v569_v49 = vadd.f32 %v671_v45, %v623_v7  ;;  %v560_v50 = vpop.f32.mrb[7].mxu1 }
  0xf5   :  { %594 = vst [vmem:[%s862_s4 + $0x30] sm:$0xff] %v578_v38  ;;  %v579_v48 = vmax.f32 %v537_v41, 0.0  ;;  %v584_v51 = vmax.f32 %v558_v44, 0.0  ;;  %v561_v53 = vadd.f32 %v623_v7, %v560_v50 }
  0xf6   :  { %592 = vst [vmem:[%s862_s4 + $0x20] sm:$0xff] %v576_v43  ;;  %v577_v52 = vmax.f32 %v529_v46, 0.0  ;;  %602 = vst [vmem:[%s862_s4 + $0x70] sm:$0xff] %v586_v47  ;;  %v587_v54 = vmax.f32 %v569_v49, 0.0 }
  0xf7   :  { %595 = vst [vmem:[%s862_s4 + $0x38] sm:$0xff] %v579_v48  ;;  %600 = vst [vmem:[%s862_s4 + $0x60] sm:$0xff] %v584_v51  ;;  %v585_v55 = vmax.f32 %v561_v53, 0.0 }
  0xf8   :  { %593 = vst [vmem:[%s862_s4 + $0x28] sm:$0xff] %v577_v52  ;;  %603 = vst [vmem:[%s862_s4 + $0x78] sm:$0xff] %v587_v54 }
  0xf9   :  { %601 = vst [vmem:[%s862_s4 + $0x68] sm:$0xff] %v585_v55 }

// kernel: simple_autoencoder_forward.8
= control target key start
LH: loop header
LB: loop body
LE: loop exit
PB: predicated region body
PF: predicated region fallthrough
CT: control target
= control target key end

     0   :  { %vm372_vm0 = vcmask 523264   ;;  %s884_s1 = inlined_call_operand.vmem [shape: bf16[576,128], index: 1, kind: input, shape index: {}]   ;;  %s885_s0 = inlined_call_operand.vmem [shape: bf16[32,576], index: 0, kind: input, shape index: {}]   ;;  %s886_s2 = inlined_call_operand.vmem [shape: f32[1,128], index: 2, kind: input, shape index: {}]   ;;  %s887_s3 = inlined_call_operand.vmem [shape: f32[32,128], index: 3, kind: output, shape index: {}]  }
   0x1   :  { %v661_v0 = vld [vmem:[%s884_s1 + $0x40] sm:$0xff]   ;;  %v665_v4 = vld [vmem:[%s884_s1 + $0x48] sm:$0xff]   ;;  %v669_v8 = vld [vmem:[%s884_s1 + $0x50] sm:$0xff]  }
   0x2   :  { %v662_v1 = vld [vmem:[%s884_s1] sm:$0xff]   ;;  %587 = vmatprep.subr.bf16.mxu0 %v661_v0  ;;  %v666_v5 = vld [vmem:[%s884_s1 + $0x8] sm:$0xff]   ;;  %v670_v9 = vld [vmem:[%s884_s1 + $0x10] sm:$0xff]  }
   0x3   :  { %v663_v2 = vld [vmem:[%s884_s1 + $0xc0] sm:$0xff]   ;;  %588 = vmatpush3.bf16.msra.mxu0 %v662_v1  ;;  %v667_v6 = vld [vmem:[%s884_s1 + $0xc8] sm:$0xff]   ;;  %v671_v10 = vld [vmem:[%s884_s1 + $0xd0] sm:$0xff]  }
   0x4   :  { %v664_v3 = vld [vmem:[%s884_s1 + $0x80] sm:$0xff]   ;;  %615 = vmatprep.subr.bf16.mxu1 %v663_v2  ;;  %589 = vmatprep.subr.bf16.mxu0 %v665_v4  ;;  %v668_v7 = vld [vmem:[%s884_s1 + $0x88] sm:$0xff]   ;;  %v672_v11 = vld [vmem:[%s884_s1 + $0x90] sm:$0xff]  }
   0x5   :  { %616 = vmatpush3.bf16.msra.mxu1 %v664_v3  ;;  %v673_v12 = vld [vmem:[%s884_s1 + $0x58] sm:$0xff]   ;;  %v677_v16 = vld [vmem:[%s884_s1 + $0x60] sm:$0xff]   ;;  %v681_v20 = vld [vmem:[%s884_s1 + $0x68] sm:$0xff]  }
   0x6   :  { %617 = vmatprep.subr.bf16.mxu1 %v667_v6  ;;  %v674_v13 = vld [vmem:[%s884_s1 + $0x18] sm:$0xff]   ;;  %v678_v17 = vld [vmem:[%s884_s1 + $0x20] sm:$0xff]   ;;  %v682_v21 = vld [vmem:[%s884_s1 + $0x28] sm:$0xff]  }
   0x7   :  { %590 = vmatpush3.bf16.msra.mxu0 %v666_v5  ;;  %v675_v14 = vld [vmem:[%s884_s1 + $0xd8] sm:$0xff]   ;;  %v679_v18 = vld [vmem:[%s884_s1 + $0xe0] sm:$0xff]   ;;  %v683_v22 = vld [vmem:[%s884_s1 + $0xe8] sm:$0xff]  }
   0x8   :  { %591 = vmatprep.subr.bf16.mxu0 %v669_v8  ;;  %v676_v15 = vld [vmem:[%s884_s1 + $0x98] sm:$0xff]   ;;  %v680_v19 = vld [vmem:[%s884_s1 + $0xa0] sm:$0xff]   ;;  %v684_v23 = vld [vmem:[%s884_s1 + $0xa8] sm:$0xff]  }
   0x9   :  { %618 = vmatpush3.bf16.msra.mxu1 %v668_v7  ;;  %v685_v24 = vld [vmem:[%s884_s1 + $0x70] sm:$0xff]   ;;  %v689_v28 = vld [vmem:[%s884_s1 + $0x78] sm:$0xff]   ;;  %v696_v34 = vld [vmem:[%s884_s1 + $0x100] sm:$0xff]  }
   0xa   :  { %619 = vmatprep.subr.bf16.mxu1 %v671_v10  ;;  %v686_v25 = vld [vmem:[%s884_s1 + $0x30] sm:$0xff]   ;;  %v690_v29 = vld [vmem:[%s884_s1 + $0x38] sm:$0xff]   ;;  %v699_v36 = vld [vmem:[%s885_s0 + $0xc] ss:$20 sps:$4 sm:$0xff]  }
   0xb   :  { %592 = vmatpush3.bf16.msra.mxu0 %v670_v9  ;;  %v687_v26 = vld [vmem:[%s884_s1 + $0xf0] sm:$0xff]   ;;  %v691_v30 = vld [vmem:[%s884_s1 + $0xf8] sm:$0xff]   ;;  %v700_v37 = vld [vmem:[%s884_s1 + $0x108] sm:$0xff]   ;;  %460 = vmatprep.mubr.bf16.mxu1 %v699_v36 }
   0xc   :  { %593 = vmatprep.subr.bf16.mxu0 %v673_v12  ;;  %v688_v27 = vld [vmem:[%s884_s1 + $0xb0] sm:$0xff]   ;;  %v694_v32 = vld [vmem:[%s885_s0 + $0x4] ss:$20 sps:$4 sm:$0xff]   ;;  %v697_v35 = vld [vmem:[%s885_s0 + $0x8] ss:$20 sps:$4 sm:$0xff]  }
   0xd   :  { %620 = vmatpush3.bf16.msra.mxu1 %v672_v11  ;;  %v692_v31 = vld [vmem:[%s885_s0] ss:$20 sps:$4 sm:$0xff]   ;;  %v695_v33 = vld [vmem:[%s884_s1 + $0xb8] sm:$0xff]   ;;  %411 = vmatprep.mubr.bf16.mxu0 %v694_v32  ;;  %v707_v42 = vld [vmem:[%s885_s0 + $0x30] ss:$20 sps:$4 sm:$0xff]  }
   0xe   :  { %621 = vmatprep.subr.bf16.mxu1 %v675_v14  ;;  %v701_v38 = vld [vmem:[%s885_s0 + $0x2c] ss:$20 sps:$4 sm:$0xff]   ;;  %v703_v39 = vld [vmem:[%s885_s0 + $0x28] ss:$20 sps:$4 sm:$0xff]   ;;  %v704_v40 = vld [vmem:[%s884_s1 + $0x110] sm:$0xff]  }
   0xf   :  { %594 = vmatpush3.bf16.msra.mxu0 %v674_v13  ;;  %v705_v41 = vld [vmem:[%s885_s0 + $0x34] ss:$20 sps:$4 sm:$0xff]   ;;  %v708_v43 = vld [vmem:[%s884_s1 + $0x118] sm:$0xff]   ;;  %v709_v44 = vld [vmem:[%s885_s0 + $0x10] ss:$20 sps:$4 sm:$0xff]  }
  0x10   :  { %595 = vmatprep.subr.bf16.mxu0 %v677_v16  ;;  %v710_v45 = vld [vmem:[%s885_s0 + $0x38] ss:$20 sps:$4 sm:$0xff]   ;;  %v538_v47 = vld [vmem:[%s886_s2] ss:$0 sm:$0xff] }
  0x11   :  { %622 = vmatpush3.bf16.msra.mxu1 %v676_v15 }
  0x12   :  { %623 = vmatprep.subr.bf16.mxu1 %v679_v18 }
  0x13   :  { %596 = vmatpush3.bf16.msra.mxu0 %v678_v17 }
  0x14   :  { %597 = vmatprep.subr.bf16.mxu0 %v681_v20 }
  0x15   :  { %624 = vmatpush3.bf16.msra.mxu1 %v680_v19 }
  0x16   :  { %625 = vmatprep.subr.bf16.mxu1 %v683_v22 }
  0x17   :  { %598 = vmatpush3.bf16.msra.mxu0 %v682_v21 }
  0x18   :  { %599 = vmatprep.subr.bf16.mxu0 %v685_v24 }
  0x19   :  { %626 = vmatpush3.bf16.msra.mxu1 %v684_v23 }
  0x1a   :  { %627 = vmatprep.subr.bf16.mxu1 %v687_v26 }
  0x1b   :  { %600 = vmatpush3.bf16.msra.mxu0 %v686_v25 }
  0x1c   :  { %601 = vmatprep.subr.bf16.mxu0 %v689_v28 }
  0x1d   :  { %628 = vmatpush3.bf16.msra.mxu1 %v688_v27 }
  0x1e   :  { %629 = vmatprep.subr.bf16.mxu1 %v691_v30 }
  0x1f   :  { %602 = vmatpush3.bf16.msra.mxu0 %v690_v29 }
  0x20   :  { %649 = vmatprep.subr.bf16.mxu0 %v696_v34 }
  0x21   :  { %630 = vmatpush3.bf16.msra.mxu1 %v695_v33 }
  0x22   :  { %412 = vmatmul.mubr.bf16.vlgmr.msra.gmra.mrb[0].mxu0 %v692_v31 }
  0x23   :  { %650 = vmatpush3.bf16.msra.mxu0 %v696_v34  ;;  %419 = vmatprep.mubr.bf16.mxu0 %v701_v38 }
  0x24   :  { %461 = vmatmul.mubr.bf16.vlgmr.msra.gmra.mrb[0].mxu1 %v697_v35  ;;  %651 = vmatprep.subr.bf16.mxu0 %v700_v37 }
  0x25   :  { %468 = vmatprep.mubr.bf16.mxu1 %v705_v41 }
  0x27   :  { %652 = vmatpush3.bf16.msra.mxu0 %v700_v37 }
  0x28   :  { %653 = vmatprep.subr.bf16.mxu0 %v704_v40 }
  0x2a   :  { %420 = vmatmul.mubr.bf16.gmra.mrb[4].mxu0 %v703_v39 }
  0x2b   :  { %657 = vmatprep.mubr.msk.bf16.mxu0 %vm372_vm0, %v709_v44  ;;  %654 = vmatpush3.bf16.msra.mxu0 %v704_v40 }
  0x2c   :  { %469 = vmatmul.mubr.bf16.gmra.mrb[4].mxu1 %v707_v42  ;;  %655 = vmatprep.subr.bf16.mxu0 %v708_v43 }
  0x2f   :  { %656 = vmatpush3.bf16.msra.mxu0 %v708_v43 }
  0x32   :  { %658 = vmatmul.mubr.msk.bf16.vlgmr.msra.gmra.mrb[8].mxu0 %vm372_vm0, %v710_v45 }
  0xf5   :  { %v603_v46 = vpop.f32.mrb[0].mxu0 }
  0xf6   :  { %v604_v48 = vpop.f32.mrb[1].mxu0 }
  0xf7   :  { %v605_v49 = vadd.f32 %v604_v48, %v603_v46  ;;  %v606_v50 = vpop.f32.mrb[2].mxu0  ;;  %v631_v51 = vpop.f32.mrb[0].mxu1 }
  0xf8   :  { %v607_v52 = vpop.f32.mrb[3].mxu0  ;;  %v632_v55 = vpop.f32.mrb[1].mxu1 }
  0xf9   :  { %v414_v53 = vadd.f32 %v605_v49, %v538_v47  ;;  %v608_v54 = vadd.f32 %v607_v52, %v606_v50  ;;  %v633_v56 = vadd.f32 %v632_v55, %v631_v51  ;;  %v634_v57 = vpop.f32.mrb[2].mxu1 }
  0xfa   :  { %v635_v59 = vpop.f32.mrb[3].mxu1 }
  0xfb   :  { %v417_v58 = vadd.f32 %v608_v54, %v538_v47  ;;  %v636_v60 = vadd.f32 %v635_v59, %v634_v57  ;;  %v463_v61 = vadd.f32 %v633_v56, %v414_v53 }
  0xfd   :  { %v609_v62 = vpop.f32.mrb[4].mxu0  ;;  %v466_v0 = vadd.f32 %v636_v60, %v417_v58 }
  0xfe   :  { %v610_v63 = vpop.f32.mrb[5].mxu0 }
  0xff   :  { %v611_v1 = vadd.f32 %v610_v63, %v609_v62  ;;  %v612_v2 = vpop.f32.mrb[6].mxu0  ;;  %v637_v3 = vpop.f32.mrb[4].mxu1 }
 0x100   :  { %v613_v4 = vpop.f32.mrb[7].mxu0  ;;  %v638_v7 = vpop.f32.mrb[5].mxu1 }
 0x101   :  { %v422_v5 = vadd.f32 %v611_v1, %v538_v47  ;;  %v614_v6 = vadd.f32 %v613_v4, %v612_v2  ;;  %v639_v8 = vadd.f32 %v638_v7, %v637_v3  ;;  %v640_v9 = vpop.f32.mrb[6].mxu1 }
 0x102   :  { %v641_v11 = vpop.f32.mrb[7].mxu1 }
 0x103   :  { %v425_v10 = vadd.f32 %v614_v6, %v538_v47  ;;  %v642_v12 = vadd.f32 %v641_v11, %v640_v9  ;;  %v471_v13 = vadd.f32 %v639_v8, %v422_v5 }
 0x105   :  { %v659_v14 = vpop.f32.mrb[8].mxu0  ;;  %v474_v15 = vadd.f32 %v642_v12, %v425_v10 }
 0x106   :  { %v520_v16 = vadd.f32 %v659_v14, %v471_v13  ;;  %v511_v17 = vpop.f32.mrb[9].mxu0 }
 0x107   :  { %v512_v18 = vadd.f32 %v511_v17, %v463_v61  ;;  %v660_v19 = vpop.f32.mrb[10].mxu0 }
 0x108   :  { %v528_v20 = vmax.f32 %v520_v16, 0.0  ;;  %v523_v21 = vadd.f32 %v660_v19, %v474_v15  ;;  %v514_v22 = vpop.f32.mrb[11].mxu0 }
 0x109   :  { %v526_v23 = vmax.f32 %v512_v18, 0.0  ;;  %v515_v24 = vadd.f32 %v514_v22, %v466_v0 }
 0x10a   :  { %532 = vst [vmem:[%s887_s3 + $0x10] sm:$0xff] %v528_v20  ;;  %v529_v25 = vmax.f32 %v523_v21, 0.0 }
 0x10b   :  { %530 = vst [vmem:[%s887_s3] sm:$0xff] %v526_v23  ;;  %v527_v26 = vmax.f32 %v515_v24, 0.0 }
 0x10c   :  { %533 = vst [vmem:[%s887_s3 + $0x18] sm:$0xff] %v529_v25 }
 0x10d   :  { %531 = vst [vmem:[%s887_s3 + $0x8] sm:$0xff] %v527_v26 }

// kernel: simple_autoencoder_forward.10
= control target key start
LH: loop header
LB: loop body
LE: loop exit
PB: predicated region body
PF: predicated region fallthrough
CT: control target
= control target key end

     0   :  { %s1941_s12 = smov 0   ;;  %s1943_s13 = smov 0   ;;  %s2376_s0 = inlined_call_operand.vmem [shape: bf16[8,1024], index: 0, kind: input, shape index: {}]   ;;  %s2377_s1 = inlined_call_operand.vmem [shape: bf16[1024,512], index: 1, kind: input, shape index: {}]   ;;  %s2378_s2 = inlined_call_operand.vmem [shape: f32[1,512], index: 2, kind: input, shape index: {}]   ;;  %s2379_s3 = inlined_call_operand.vmem [shape: f32[8,512], index: 3, kind: output, shape index: {}]  }
   0x1   :  { %s1945_s14 = smov 0   ;;  %s1947_s15 = smov 0  }
   0x2   :  { %s1949_s16 = smov 0  }
   0x3 LB: > { %s22_s17 = sadd.s32 1, %s1915_s15  ;;  %p65_p1 = scmp.ne.s32.totalorder %s1907_s13, %s1903_s12  ;;  %s1919_s16 = sphi %s1949_s16, %s13_s16   ;;  %s1915_s15 = sphi %s1947_s15, %s2383_s15   ;;  %s1911_s14 = sphi %s1945_s14, %s2382_s14   ;;  %s1907_s13 = sphi %s1943_s13, %s2381_s13   ;;  %s1903_s12 = sphi %s1941_s12, %s2380_s12  }
   0x4   : > { %p23_p0 = scmp.ge.s32.totalorder %s22_s17, 4  ;;  %p66_p2 = scmp.eq.s32.totalorder %s1919_s16, 0 }
   0x5   : > { %s58_s19 = sadd.s32 1, %s1907_s13  ;;  %p1600_p5 = scmp.ge.s32.totalorder %s1919_s16, 4 }
   0x6   : > { %s2385_s17 = smov (%p23_p0, %s22_s17), 0  ;;  %p67_p3 = por %p66_p2, %p65_p1 }
   0x7   : > { %s55_s18 = ssub.s32 %s1915_s15, %s2385_s17  ;;  %153 = sbr.rel (%p1600_p5) target bundleno = 103 (0x67), region = 20 }
   0x8   : > { %p56_p4 = scmp.eq.s32.totalorder %s55_s18, 0 }
   0xa   : > { %s1976_s20 = scalar_select %p56_p4, %s1907_s13, %s58_s19  }
   0xe   : > { %156 = sbr.rel (!%p67_p3) target bundleno = 103 (0x67), region = 24  ;;  %s158_s21 = sand.u32 (%p67_p3), 1, %s1907_s13  }
   0xf   : > { %s1602_s22 = sshll.u32 (%p67_p3), %s1915_s15, 2  ;;  %s1601_s23 = sshll.u32 (%p67_p3), %s158_s21, 9 }
  0x10   : > { %s1984_s26 = scalar_lea.vmem (%p67_p3), %s2377_s1, %s1602_s22  ;;  %s1988_s27 = scalar_lea.vmem (%p67_p3), [#allocation2], %s1601_s23 }
  0x11   : > { %v178_v0 = vld [vmem:[%s1984_s26] sm:$0xf] (%p67_p3)  ;;  %v180_v1 = vld [vmem:[%s1984_s26 + $0x10] sm:$0xf] (%p67_p3) }
  0x12   : > { %179 = vst [vmem:[%s1988_s27] sm:$0xf] (%p67_p3), %v178_v0  ;;  %181 = vst [vmem:[%s1988_s27 + $0x4] sm:$0xf] (%p67_p3), %v180_v1  ;;  %v182_v2 = vld [vmem:[%s1984_s26 + $0x20] sm:$0xf] (%p67_p3) }
  0x13   : > { %v184_v3 = vld [vmem:[%s1984_s26 + $0x30] sm:$0xf] (%p67_p3)  ;;  %v186_v4 = vld [vmem:[%s1984_s26 + $0x40] sm:$0xf] (%p67_p3)  ;;  %183 = vst [vmem:[%s1988_s27 + $0x8] sm:$0xf] (%p67_p3), %v182_v2 }
  0x14   : > { %185 = vst [vmem:[%s1988_s27 + $0xc] sm:$0xf] (%p67_p3), %v184_v3  ;;  %187 = vst [vmem:[%s1988_s27 + $0x10] sm:$0xf] (%p67_p3), %v186_v4  ;;  %v188_v5 = vld [vmem:[%s1984_s26 + $0x50] sm:$0xf] (%p67_p3) }
  0x15   : > { %v190_v6 = vld [vmem:[%s1984_s26 + $0x60] sm:$0xf]  ;;  %v192_v7 = vld [vmem:[%s1984_s26 + $0x70] sm:$0xf]  ;;  %189 = vst [vmem:[%s1988_s27 + $0x14] sm:$0xf] %v188_v5 }
  0x16   : > { %191 = vst [vmem:[%s1988_s27 + $0x18] sm:$0xf] %v190_v6  ;;  %193 = vst [vmem:[%s1988_s27 + $0x1c] sm:$0xf] %v192_v7  ;;  %v194_v8 = vld [vmem:[%s1984_s26 + $0x80] sm:$0xf] }
  0x17   : > { %v196_v9 = vld [vmem:[%s1984_s26 + $0x90] sm:$0xf]  ;;  %v198_v10 = vld [vmem:[%s1984_s26 + $0xa0] sm:$0xf]  ;;  %195 = vst [vmem:[%s1988_s27 + $0x20] sm:$0xf] %v194_v8 }
  0x18   : > { %197 = vst [vmem:[%s1988_s27 + $0x24] sm:$0xf] %v196_v9  ;;  %199 = vst [vmem:[%s1988_s27 + $0x28] sm:$0xf] %v198_v10  ;;  %v200_v11 = vld [vmem:[%s1984_s26 + $0xb0] sm:$0xf] }
  0x19   : > { %v202_v12 = vld [vmem:[%s1984_s26 + $0xc0] sm:$0xf]  ;;  %v204_v13 = vld [vmem:[%s1984_s26 + $0xd0] sm:$0xf]  ;;  %201 = vst [vmem:[%s1988_s27 + $0x2c] sm:$0xf] %v200_v11 }
  0x1a   : > { %203 = vst [vmem:[%s1988_s27 + $0x30] sm:$0xf] %v202_v12  ;;  %205 = vst [vmem:[%s1988_s27 + $0x34] sm:$0xf] %v204_v13  ;;  %v206_v14 = vld [vmem:[%s1984_s26 + $0xe0] sm:$0xf] }
  0x1b   : > { %v208_v15 = vld [vmem:[%s1984_s26 + $0xf0] sm:$0xf]  ;;  %v210_v16 = vld [vmem:[%s1984_s26 + $0x100] sm:$0xf]  ;;  %207 = vst [vmem:[%s1988_s27 + $0x38] sm:$0xf] %v206_v14 }
  0x1c   : > { %209 = vst [vmem:[%s1988_s27 + $0x3c] sm:$0xf] %v208_v15  ;;  %211 = vst [vmem:[%s1988_s27 + $0x40] sm:$0xf] %v210_v16  ;;  %v212_v17 = vld [vmem:[%s1984_s26 + $0x110] sm:$0xf] }
  0x1d   : > { %v214_v18 = vld [vmem:[%s1984_s26 + $0x120] sm:$0xf]  ;;  %v216_v19 = vld [vmem:[%s1984_s26 + $0x130] sm:$0xf]  ;;  %213 = vst [vmem:[%s1988_s27 + $0x44] sm:$0xf] %v212_v17 }
  0x1e   : > { %215 = vst [vmem:[%s1988_s27 + $0x48] sm:$0xf] %v214_v18  ;;  %217 = vst [vmem:[%s1988_s27 + $0x4c] sm:$0xf] %v216_v19  ;;  %v218_v20 = vld [vmem:[%s1984_s26 + $0x140] sm:$0xf] }
  0x1f   : > { %v220_v21 = vld [vmem:[%s1984_s26 + $0x150] sm:$0xf]  ;;  %v222_v22 = vld [vmem:[%s1984_s26 + $0x160] sm:$0xf]  ;;  %219 = vst [vmem:[%s1988_s27 + $0x50] sm:$0xf] %v218_v20 }
  0x20   : > { %221 = vst [vmem:[%s1988_s27 + $0x54] sm:$0xf] %v220_v21  ;;  %223 = vst [vmem:[%s1988_s27 + $0x58] sm:$0xf] %v222_v22  ;;  %v224_v23 = vld [vmem:[%s1984_s26 + $0x170] sm:$0xf] }
  0x21   : > { %v226_v24 = vld [vmem:[%s1984_s26 + $0x180] sm:$0xf]  ;;  %v228_v25 = vld [vmem:[%s1984_s26 + $0x190] sm:$0xf]  ;;  %225 = vst [vmem:[%s1988_s27 + $0x5c] sm:$0xf] %v224_v23 }
  0x22   : > { %227 = vst [vmem:[%s1988_s27 + $0x60] sm:$0xf] %v226_v24  ;;  %229 = vst [vmem:[%s1988_s27 + $0x64] sm:$0xf] %v228_v25  ;;  %v230_v26 = vld [vmem:[%s1984_s26 + $0x1a0] sm:$0xf] }
  0x23   : > { %v232_v27 = vld [vmem:[%s1984_s26 + $0x1b0] sm:$0xf]  ;;  %v234_v28 = vld [vmem:[%s1984_s26 + $0x1c0] sm:$0xf]  ;;  %231 = vst [vmem:[%s1988_s27 + $0x68] sm:$0xf] %v230_v26 }
  0x24   : > { %233 = vst [vmem:[%s1988_s27 + $0x6c] sm:$0xf] %v232_v27  ;;  %235 = vst [vmem:[%s1988_s27 + $0x70] sm:$0xf] %v234_v28  ;;  %v236_v29 = vld [vmem:[%s1984_s26 + $0x1d0] sm:$0xf] }
  0x25   : > { %v238_v30 = vld [vmem:[%s1984_s26 + $0x1e0] sm:$0xf]  ;;  %v240_v31 = vld [vmem:[%s1984_s26 + $0x1f0] sm:$0xf]  ;;  %237 = vst [vmem:[%s1988_s27 + $0x74] sm:$0xf] %v236_v29 }
  0x26   : > { %239 = vst [vmem:[%s1988_s27 + $0x78] sm:$0xf] %v238_v30  ;;  %241 = vst [vmem:[%s1988_s27 + $0x7c] sm:$0xf] %v240_v31  ;;  %v242_v32 = vld [vmem:[%s1984_s26 + $0x200] sm:$0xf] }
  0x27   : > { %v244_v33 = vld [vmem:[%s1984_s26 + $0x210] sm:$0xf]  ;;  %v246_v34 = vld [vmem:[%s1984_s26 + $0x220] sm:$0xf]  ;;  %243 = vst [vmem:[%s1988_s27 + $0x80] sm:$0xf] %v242_v32 }
  0x28   : > { %245 = vst [vmem:[%s1988_s27 + $0x84] sm:$0xf] %v244_v33  ;;  %247 = vst [vmem:[%s1988_s27 + $0x88] sm:$0xf] %v246_v34  ;;  %v248_v35 = vld [vmem:[%s1984_s26 + $0x230] sm:$0xf] }
  0x29   : > { %v250_v36 = vld [vmem:[%s1984_s26 + $0x240] sm:$0xf]  ;;  %v252_v37 = vld [vmem:[%s1984_s26 + $0x250] sm:$0xf]  ;;  %249 = vst [vmem:[%s1988_s27 + $0x8c] sm:$0xf] %v248_v35 }
  0x2a   : > { %251 = vst [vmem:[%s1988_s27 + $0x90] sm:$0xf] %v250_v36  ;;  %253 = vst [vmem:[%s1988_s27 + $0x94] sm:$0xf] %v252_v37  ;;  %v254_v38 = vld [vmem:[%s1984_s26 + $0x260] sm:$0xf] }
  0x2b   : > { %v256_v39 = vld [vmem:[%s1984_s26 + $0x270] sm:$0xf]  ;;  %v258_v40 = vld [vmem:[%s1984_s26 + $0x280] sm:$0xf]  ;;  %255 = vst [vmem:[%s1988_s27 + $0x98] sm:$0xf] %v254_v38 }
  0x2c   : > { %257 = vst [vmem:[%s1988_s27 + $0x9c] sm:$0xf] %v256_v39  ;;  %259 = vst [vmem:[%s1988_s27 + $0xa0] sm:$0xf] %v258_v40  ;;  %v260_v41 = vld [vmem:[%s1984_s26 + $0x290] sm:$0xf] }
  0x2d   : > { %v262_v42 = vld [vmem:[%s1984_s26 + $0x2a0] sm:$0xf]  ;;  %v264_v43 = vld [vmem:[%s1984_s26 + $0x2b0] sm:$0xf]  ;;  %261 = vst [vmem:[%s1988_s27 + $0xa4] sm:$0xf] %v260_v41 }
  0x2e   : > { %263 = vst [vmem:[%s1988_s27 + $0xa8] sm:$0xf] %v262_v42  ;;  %265 = vst [vmem:[%s1988_s27 + $0xac] sm:$0xf] %v264_v43  ;;  %v266_v44 = vld [vmem:[%s1984_s26 + $0x2c0] sm:$0xf] }
  0x2f   : > { %v268_v45 = vld [vmem:[%s1984_s26 + $0x2d0] sm:$0xf]  ;;  %v270_v46 = vld [vmem:[%s1984_s26 + $0x2e0] sm:$0xf]  ;;  %267 = vst [vmem:[%s1988_s27 + $0xb0] sm:$0xf] %v266_v44 }
  0x30   : > { %269 = vst [vmem:[%s1988_s27 + $0xb4] sm:$0xf] %v268_v45  ;;  %271 = vst [vmem:[%s1988_s27 + $0xb8] sm:$0xf] %v270_v46  ;;  %v272_v47 = vld [vmem:[%s1984_s26 + $0x2f0] sm:$0xf] }
  0x31   : > { %v274_v48 = vld [vmem:[%s1984_s26 + $0x300] sm:$0xf]  ;;  %v276_v49 = vld [vmem:[%s1984_s26 + $0x310] sm:$0xf]  ;;  %273 = vst [vmem:[%s1988_s27 + $0xbc] sm:$0xf] %v272_v47 }
  0x32   : > { %275 = vst [vmem:[%s1988_s27 + $0xc0] sm:$0xf] %v274_v48  ;;  %277 = vst [vmem:[%s1988_s27 + $0xc4] sm:$0xf] %v276_v49  ;;  %v278_v50 = vld [vmem:[%s1984_s26 + $0x320] sm:$0xf] }
  0x33   : > { %v280_v51 = vld [vmem:[%s1984_s26 + $0x330] sm:$0xf]  ;;  %v282_v52 = vld [vmem:[%s1984_s26 + $0x340] sm:$0xf]  ;;  %279 = vst [vmem:[%s1988_s27 + $0xc8] sm:$0xf] %v278_v50 }
  0x34   : > { %281 = vst [vmem:[%s1988_s27 + $0xcc] sm:$0xf] %v280_v51  ;;  %283 = vst [vmem:[%s1988_s27 + $0xd0] sm:$0xf] %v282_v52  ;;  %v284_v53 = vld [vmem:[%s1984_s26 + $0x350] sm:$0xf] }
  0x35   : > { %v286_v54 = vld [vmem:[%s1984_s26 + $0x360] sm:$0xf]  ;;  %v288_v55 = vld [vmem:[%s1984_s26 + $0x370] sm:$0xf]  ;;  %285 = vst [vmem:[%s1988_s27 + $0xd4] sm:$0xf] %v284_v53 }
  0x36   : > { %287 = vst [vmem:[%s1988_s27 + $0xd8] sm:$0xf] %v286_v54  ;;  %289 = vst [vmem:[%s1988_s27 + $0xdc] sm:$0xf] %v288_v55  ;;  %v290_v56 = vld [vmem:[%s1984_s26 + $0x380] sm:$0xf] }
  0x37   : > { %v292_v57 = vld [vmem:[%s1984_s26 + $0x390] sm:$0xf]  ;;  %v294_v58 = vld [vmem:[%s1984_s26 + $0x3a0] sm:$0xf]  ;;  %291 = vst [vmem:[%s1988_s27 + $0xe0] sm:$0xf] %v290_v56 }
  0x38   : > { %293 = vst [vmem:[%s1988_s27 + $0xe4] sm:$0xf] %v292_v57  ;;  %295 = vst [vmem:[%s1988_s27 + $0xe8] sm:$0xf] %v294_v58  ;;  %v296_v59 = vld [vmem:[%s1984_s26 + $0x3b0] sm:$0xf] }
  0x39   : > { %v298_v60 = vld [vmem:[%s1984_s26 + $0x3c0] sm:$0xf]  ;;  %v300_v61 = vld [vmem:[%s1984_s26 + $0x3d0] sm:$0xf]  ;;  %297 = vst [vmem:[%s1988_s27 + $0xec] sm:$0xf] %v296_v59 }
  0x3a   : > { %299 = vst [vmem:[%s1988_s27 + $0xf0] sm:$0xf] %v298_v60  ;;  %301 = vst [vmem:[%s1988_s27 + $0xf4] sm:$0xf] %v300_v61  ;;  %v302_v62 = vld [vmem:[%s1984_s26 + $0x3e0] sm:$0xf] }
  0x3b   : > { %v304_v63 = vld [vmem:[%s1984_s26 + $0x3f0] sm:$0xf]  ;;  %v306_v0 = vld [vmem:[%s1984_s26 + $0x400] sm:$0xf]  ;;  %303 = vst [vmem:[%s1988_s27 + $0xf8] sm:$0xf] %v302_v62 }
  0x3c   : > { %305 = vst [vmem:[%s1988_s27 + $0xfc] sm:$0xf] %v304_v63  ;;  %307 = vst [vmem:[%s1988_s27 + $0x100] sm:$0xf] %v306_v0  ;;  %v308_v1 = vld [vmem:[%s1984_s26 + $0x410] sm:$0xf] }
  0x3d   : > { %v310_v2 = vld [vmem:[%s1984_s26 + $0x420] sm:$0xf]  ;;  %v312_v3 = vld [vmem:[%s1984_s26 + $0x430] sm:$0xf]  ;;  %309 = vst [vmem:[%s1988_s27 + $0x104] sm:$0xf] %v308_v1 }
  0x3e   : > { %311 = vst [vmem:[%s1988_s27 + $0x108] sm:$0xf] %v310_v2  ;;  %313 = vst [vmem:[%s1988_s27 + $0x10c] sm:$0xf] %v312_v3  ;;  %v314_v4 = vld [vmem:[%s1984_s26 + $0x440] sm:$0xf] }
  0x3f   : > { %v316_v5 = vld [vmem:[%s1984_s26 + $0x450] sm:$0xf]  ;;  %v318_v6 = vld [vmem:[%s1984_s26 + $0x460] sm:$0xf]  ;;  %315 = vst [vmem:[%s1988_s27 + $0x110] sm:$0xf] %v314_v4 }
  0x40   : > { %317 = vst [vmem:[%s1988_s27 + $0x114] sm:$0xf] %v316_v5  ;;  %319 = vst [vmem:[%s1988_s27 + $0x118] sm:$0xf] %v318_v6  ;;  %v320_v7 = vld [vmem:[%s1984_s26 + $0x470] sm:$0xf] }
  0x41   : > { %v322_v8 = vld [vmem:[%s1984_s26 + $0x480] sm:$0xf]  ;;  %v324_v9 = vld [vmem:[%s1984_s26 + $0x490] sm:$0xf]  ;;  %321 = vst [vmem:[%s1988_s27 + $0x11c] sm:$0xf] %v320_v7 }
  0x42   : > { %323 = vst [vmem:[%s1988_s27 + $0x120] sm:$0xf] %v322_v8  ;;  %325 = vst [vmem:[%s1988_s27 + $0x124] sm:$0xf] %v324_v9  ;;  %v326_v10 = vld [vmem:[%s1984_s26 + $0x4a0] sm:$0xf] }
  0x43   : > { %v328_v11 = vld [vmem:[%s1984_s26 + $0x4b0] sm:$0xf]  ;;  %v330_v12 = vld [vmem:[%s1984_s26 + $0x4c0] sm:$0xf]  ;;  %327 = vst [vmem:[%s1988_s27 + $0x128] sm:$0xf] %v326_v10 }
  0x44   : > { %329 = vst [vmem:[%s1988_s27 + $0x12c] sm:$0xf] %v328_v11  ;;  %331 = vst [vmem:[%s1988_s27 + $0x130] sm:$0xf] %v330_v12  ;;  %v332_v13 = vld [vmem:[%s1984_s26 + $0x4d0] sm:$0xf] }
  0x45   : > { %v334_v14 = vld [vmem:[%s1984_s26 + $0x4e0] sm:$0xf]  ;;  %v336_v15 = vld [vmem:[%s1984_s26 + $0x4f0] sm:$0xf]  ;;  %333 = vst [vmem:[%s1988_s27 + $0x134] sm:$0xf] %v332_v13 }
  0x46   : > { %335 = vst [vmem:[%s1988_s27 + $0x138] sm:$0xf] %v334_v14  ;;  %337 = vst [vmem:[%s1988_s27 + $0x13c] sm:$0xf] %v336_v15  ;;  %v338_v16 = vld [vmem:[%s1984_s26 + $0x500] sm:$0xf] }
  0x47   : > { %v340_v17 = vld [vmem:[%s1984_s26 + $0x510] sm:$0xf]  ;;  %v342_v18 = vld [vmem:[%s1984_s26 + $0x520] sm:$0xf]  ;;  %339 = vst [vmem:[%s1988_s27 + $0x140] sm:$0xf] %v338_v16 }
  0x48   : > { %341 = vst [vmem:[%s1988_s27 + $0x144] sm:$0xf] %v340_v17  ;;  %343 = vst [vmem:[%s1988_s27 + $0x148] sm:$0xf] %v342_v18  ;;  %v344_v19 = vld [vmem:[%s1984_s26 + $0x530] sm:$0xf] }
  0x49   : > { %v346_v20 = vld [vmem:[%s1984_s26 + $0x540] sm:$0xf]  ;;  %v348_v21 = vld [vmem:[%s1984_s26 + $0x550] sm:$0xf]  ;;  %345 = vst [vmem:[%s1988_s27 + $0x14c] sm:$0xf] %v344_v19 }
  0x4a   : > { %347 = vst [vmem:[%s1988_s27 + $0x150] sm:$0xf] %v346_v20  ;;  %349 = vst [vmem:[%s1988_s27 + $0x154] sm:$0xf] %v348_v21  ;;  %v350_v22 = vld [vmem:[%s1984_s26 + $0x560] sm:$0xf] }
  0x4b   : > { %v352_v23 = vld [vmem:[%s1984_s26 + $0x570] sm:$0xf]  ;;  %v354_v24 = vld [vmem:[%s1984_s26 + $0x580] sm:$0xf]  ;;  %351 = vst [vmem:[%s1988_s27 + $0x158] sm:$0xf] %v350_v22 }
  0x4c   : > { %353 = vst [vmem:[%s1988_s27 + $0x15c] sm:$0xf] %v352_v23  ;;  %355 = vst [vmem:[%s1988_s27 + $0x160] sm:$0xf] %v354_v24  ;;  %v356_v25 = vld [vmem:[%s1984_s26 + $0x590] sm:$0xf] }
  0x4d   : > { %v358_v26 = vld [vmem:[%s1984_s26 + $0x5a0] sm:$0xf]  ;;  %v360_v27 = vld [vmem:[%s1984_s26 + $0x5b0] sm:$0xf]  ;;  %357 = vst [vmem:[%s1988_s27 + $0x164] sm:$0xf] %v356_v25 }
  0x4e   : > { %359 = vst [vmem:[%s1988_s27 + $0x168] sm:$0xf] %v358_v26  ;;  %361 = vst [vmem:[%s1988_s27 + $0x16c] sm:$0xf] %v360_v27  ;;  %v362_v28 = vld [vmem:[%s1984_s26 + $0x5c0] sm:$0xf] }
  0x4f   : > { %v364_v29 = vld [vmem:[%s1984_s26 + $0x5d0] sm:$0xf]  ;;  %v366_v30 = vld [vmem:[%s1984_s26 + $0x5e0] sm:$0xf]  ;;  %363 = vst [vmem:[%s1988_s27 + $0x170] sm:$0xf] %v362_v28 }
  0x50   : > { %365 = vst [vmem:[%s1988_s27 + $0x174] sm:$0xf] %v364_v29  ;;  %367 = vst [vmem:[%s1988_s27 + $0x178] sm:$0xf] %v366_v30  ;;  %v368_v31 = vld [vmem:[%s1984_s26 + $0x5f0] sm:$0xf] }
  0x51   : > { %v370_v32 = vld [vmem:[%s1984_s26 + $0x600] sm:$0xf]  ;;  %v372_v33 = vld [vmem:[%s1984_s26 + $0x610] sm:$0xf]  ;;  %369 = vst [vmem:[%s1988_s27 + $0x17c] sm:$0xf] %v368_v31 }
  0x52   : > { %371 = vst [vmem:[%s1988_s27 + $0x180] sm:$0xf] %v370_v32  ;;  %373 = vst [vmem:[%s1988_s27 + $0x184] sm:$0xf] %v372_v33  ;;  %v374_v34 = vld [vmem:[%s1984_s26 + $0x620] sm:$0xf] }
  0x53   : > { %v376_v35 = vld [vmem:[%s1984_s26 + $0x630] sm:$0xf]  ;;  %v378_v36 = vld [vmem:[%s1984_s26 + $0x640] sm:$0xf]  ;;  %375 = vst [vmem:[%s1988_s27 + $0x188] sm:$0xf] %v374_v34 }
  0x54   : > { %377 = vst [vmem:[%s1988_s27 + $0x18c] sm:$0xf] %v376_v35  ;;  %379 = vst [vmem:[%s1988_s27 + $0x190] sm:$0xf] %v378_v36  ;;  %v380_v37 = vld [vmem:[%s1984_s26 + $0x650] sm:$0xf] }
  0x55   : > { %v382_v38 = vld [vmem:[%s1984_s26 + $0x660] sm:$0xf]  ;;  %v384_v39 = vld [vmem:[%s1984_s26 + $0x670] sm:$0xf]  ;;  %381 = vst [vmem:[%s1988_s27 + $0x194] sm:$0xf] %v380_v37 }
  0x56   : > { %383 = vst [vmem:[%s1988_s27 + $0x198] sm:$0xf] %v382_v38  ;;  %385 = vst [vmem:[%s1988_s27 + $0x19c] sm:$0xf] %v384_v39  ;;  %v386_v40 = vld [vmem:[%s1984_s26 + $0x680] sm:$0xf] }
  0x57   : > { %v388_v41 = vld [vmem:[%s1984_s26 + $0x690] sm:$0xf]  ;;  %v390_v42 = vld [vmem:[%s1984_s26 + $0x6a0] sm:$0xf]  ;;  %387 = vst [vmem:[%s1988_s27 + $0x1a0] sm:$0xf] %v386_v40 }
  0x58   : > { %389 = vst [vmem:[%s1988_s27 + $0x1a4] sm:$0xf] %v388_v41  ;;  %391 = vst [vmem:[%s1988_s27 + $0x1a8] sm:$0xf] %v390_v42  ;;  %v392_v43 = vld [vmem:[%s1984_s26 + $0x6b0] sm:$0xf] }
  0x59   : > { %v394_v44 = vld [vmem:[%s1984_s26 + $0x6c0] sm:$0xf]  ;;  %v396_v45 = vld [vmem:[%s1984_s26 + $0x6d0] sm:$0xf]  ;;  %393 = vst [vmem:[%s1988_s27 + $0x1ac] sm:$0xf] %v392_v43 }
  0x5a   : > { %395 = vst [vmem:[%s1988_s27 + $0x1b0] sm:$0xf] %v394_v44  ;;  %397 = vst [vmem:[%s1988_s27 + $0x1b4] sm:$0xf] %v396_v45  ;;  %v398_v46 = vld [vmem:[%s1984_s26 + $0x6e0] sm:$0xf] }
  0x5b   : > { %v400_v47 = vld [vmem:[%s1984_s26 + $0x6f0] sm:$0xf]  ;;  %v402_v48 = vld [vmem:[%s1984_s26 + $0x700] sm:$0xf]  ;;  %399 = vst [vmem:[%s1988_s27 + $0x1b8] sm:$0xf] %v398_v46 }
  0x5c   : > { %401 = vst [vmem:[%s1988_s27 + $0x1bc] sm:$0xf] %v400_v47  ;;  %403 = vst [vmem:[%s1988_s27 + $0x1c0] sm:$0xf] %v402_v48  ;;  %v404_v49 = vld [vmem:[%s1984_s26 + $0x710] sm:$0xf] }
  0x5d   : > { %v406_v50 = vld [vmem:[%s1984_s26 + $0x720] sm:$0xf]  ;;  %v408_v51 = vld [vmem:[%s1984_s26 + $0x730] sm:$0xf]  ;;  %405 = vst [vmem:[%s1988_s27 + $0x1c4] sm:$0xf] %v404_v49 }
  0x5e   : > { %407 = vst [vmem:[%s1988_s27 + $0x1c8] sm:$0xf] %v406_v50  ;;  %409 = vst [vmem:[%s1988_s27 + $0x1cc] sm:$0xf] %v408_v51  ;;  %v410_v52 = vld [vmem:[%s1984_s26 + $0x740] sm:$0xf] }
  0x5f   : > { %v412_v53 = vld [vmem:[%s1984_s26 + $0x750] sm:$0xf]  ;;  %v414_v54 = vld [vmem:[%s1984_s26 + $0x760] sm:$0xf]  ;;  %411 = vst [vmem:[%s1988_s27 + $0x1d0] sm:$0xf] %v410_v52 }
  0x60   : > { %413 = vst [vmem:[%s1988_s27 + $0x1d4] sm:$0xf] %v412_v53  ;;  %415 = vst [vmem:[%s1988_s27 + $0x1d8] sm:$0xf] %v414_v54  ;;  %v416_v55 = vld [vmem:[%s1984_s26 + $0x770] sm:$0xf] }
  0x61   : > { %v418_v56 = vld [vmem:[%s1984_s26 + $0x780] sm:$0xf]  ;;  %v420_v57 = vld [vmem:[%s1984_s26 + $0x790] sm:$0xf]  ;;  %417 = vst [vmem:[%s1988_s27 + $0x1dc] sm:$0xf] %v416_v55 }
  0x62   : > { %419 = vst [vmem:[%s1988_s27 + $0x1e0] sm:$0xf] %v418_v56  ;;  %421 = vst [vmem:[%s1988_s27 + $0x1e4] sm:$0xf] %v420_v57  ;;  %v422_v58 = vld [vmem:[%s1984_s26 + $0x7a0] sm:$0xf] }
  0x63   : > { %v424_v59 = vld [vmem:[%s1984_s26 + $0x7b0] sm:$0xf]  ;;  %v426_v60 = vld [vmem:[%s1984_s26 + $0x7c0] sm:$0xf]  ;;  %423 = vst [vmem:[%s1988_s27 + $0x1e8] sm:$0xf] %v422_v58 }
  0x64   : > { %425 = vst [vmem:[%s1988_s27 + $0x1ec] sm:$0xf] %v424_v59  ;;  %427 = vst [vmem:[%s1988_s27 + $0x1f0] sm:$0xf] %v426_v60  ;;  %v428_v61 = vld [vmem:[%s1984_s26 + $0x7d0] sm:$0xf] }
  0x65   : > { %v430_v62 = vld [vmem:[%s1984_s26 + $0x7e0] sm:$0xf]  ;;  %v432_v63 = vld [vmem:[%s1984_s26 + $0x7f0] sm:$0xf]  ;;  %429 = vst [vmem:[%s1988_s27 + $0x1f4] sm:$0xf] %v428_v61 }
  0x66   : > { %431 = vst [vmem:[%s1988_s27 + $0x1f8] sm:$0xf] %v430_v62  ;;  %433 = vst [vmem:[%s1988_s27 + $0x1fc] sm:$0xf] %v432_v63 }
  0x67 PF: > { %p1603_p6 = scmp.ge.s32.totalorder %s1919_s16, 1  ;;  %p717_p7 = scmp.lt.s32.totalorder %s1919_s16, 5 }
  0x69   : > { %p718_p8 = pnand %p1603_p6, %p717_p7 }
  0x6a   : > { %s724_s28 = sand.u32 (!%p718_p8), 1, %s1903_s12   ;;  %v2250_v0 = vld [vmem:[%s2376_s0] sm:$0xff] (!%p718_p8)  ;;  %v2255_v1 = vld [vmem:[%s2376_s0 + $0x8] sm:$0xff] (!%p718_p8)  ;;  %v2295_v33 = vld [vmem:[%s2376_s0 + $0x10] sm:$0xff] (!%p718_p8)  ;;  %p763_p9 = scmp.lt.s32.totalorder (!%p718_p8), %s1911_s14, 3 }
  0x6b   : > { %721 = sbr.rel (%p718_p8) target bundleno = 397 (0x18d), region = 69  ;;  %s1604_s6 = sshll.u32 (!%p718_p8), %s724_s28, 9  ;;  %v1608_v2 = vcombine.high (!%p718_p8), %v2250_v0, %v2250_v0  ;;  %v1610_v3 = vcombine.high (!%p718_p8), %v2255_v1, %v2255_v1  ;;  %v2301_v35 = vld [vmem:[%s2376_s0 + $0x18] sm:$0xff] (!%p718_p8)  ;;  %v1607_v38 = vcombine.low (!%p718_p8), %v2250_v0, %v2250_v0  ;;  %v1609_v39 = vcombine.low (!%p718_p8), %v2255_v1, %v2255_v1 }
  0x6c   : > { %s2261_s7 = scalar_lea.vmem (!%p718_p8), [#allocation2], %s1604_s6  ;;  %v1612_v42 = vcombine.high (!%p718_p8), %v2295_v33, %v2295_v33  ;;  %v1614_v44 = vcombine.high (!%p718_p8), %v2301_v35, %v2301_v35 }
  0x6d   : > { %v1809_v4 = vld [vmem:[%s2261_s7 + $0x40] sm:$0xff] (!%p718_p8)   ;;  %1358 = vmatprep.mubr.bf16.mxu0 (!%p718_p8), %v1608_v2  ;;  %1398 = vmatprep.mubr.bf16.mxu1 (!%p718_p8), %v1610_v3  ;;  %v1813_v8 = vld [vmem:[%s2261_s7 + $0x48] sm:$0xff] (!%p718_p8)   ;;  %v1817_v12 = vld [vmem:[%s2261_s7 + $0x50] sm:$0xff] (!%p718_p8)  }
  0x6e   : > { %v1810_v5 = vld [vmem:[%s2261_s7 + $0xc0] sm:$0xff] (!%p718_p8)   ;;  %1681 = vmatprep.subr.bf16.mxu0 (!%p718_p8), %v1809_v4  ;;  %v1814_v9 = vld [vmem:[%s2261_s7 + $0xc8] sm:$0xff] (!%p718_p8)   ;;  %v1818_v13 = vld [vmem:[%s2261_s7 + $0xd0] sm:$0xff] (!%p718_p8)  }
  0x6f   : > { %v1811_v6 = vld [vmem:[%s2261_s7] sm:$0xff] (!%p718_p8)   ;;  %1703 = vmatprep.subr.bf16.mxu1 (!%p718_p8), %v1810_v5  ;;  %v1815_v10 = vld [vmem:[%s2261_s7 + $0x8] sm:$0xff] (!%p718_p8)   ;;  %v1819_v14 = vld [vmem:[%s2261_s7 + $0x10] sm:$0xff] (!%p718_p8)  }
  0x70   : > { %v1812_v7 = vld [vmem:[%s2261_s7 + $0x80] sm:$0xff] (!%p718_p8)   ;;  %1682 = vmatpush3.bf16.msra.mxu0 (!%p718_p8), %v1811_v6  ;;  %v1816_v11 = vld [vmem:[%s2261_s7 + $0x88] sm:$0xff] (!%p718_p8)   ;;  %v1820_v15 = vld [vmem:[%s2261_s7 + $0x90] sm:$0xff] (!%p718_p8)  }
  0x71   : > { %1704 = vmatpush3.bf16.msra.mxu1 (!%p718_p8), %v1812_v7  ;;  %1683 = vmatprep.subr.bf16.mxu0 (!%p718_p8), %v1813_v8  ;;  %v1821_v16 = vld [vmem:[%s2261_s7 + $0x58] sm:$0xff] (!%p718_p8)   ;;  %v1825_v20 = vld [vmem:[%s2261_s7 + $0x60] sm:$0xff] (!%p718_p8)   ;;  %v1829_v24 = vld [vmem:[%s2261_s7 + $0x68] sm:$0xff] (!%p718_p8)  }
  0x72   : > { %1705 = vmatprep.subr.bf16.mxu1 %v1814_v9  ;;  %v1822_v17 = vld [vmem:[%s2261_s7 + $0xd8] sm:$0xff]   ;;  %v1826_v21 = vld [vmem:[%s2261_s7 + $0xe0] sm:$0xff]   ;;  %v1830_v25 = vld [vmem:[%s2261_s7 + $0xe8] sm:$0xff]   ;;  %s2387_s14 = smov (!%p763_p9, %s1911_s14), 3 }
  0x73   : > { %v1823_v18 = vld [vmem:[%s2261_s7 + $0x18] sm:$0xff]   ;;  %v1827_v22 = vld [vmem:[%s2261_s7 + $0x20] sm:$0xff]   ;;  %v1831_v26 = vld [vmem:[%s2261_s7 + $0x28] sm:$0xff]   ;;  %s765_s19 = scalar_lea.vmem %s2378_s2, %s2387_s14  ;;  %s1605_s21 = sshll.u32 %s2387_s14, 3 }
  0x74   : > { %1684 = vmatpush3.bf16.msra.mxu0 %v1815_v10  ;;  %v1824_v19 = vld [vmem:[%s2261_s7 + $0x98] sm:$0xff]   ;;  %v1828_v23 = vld [vmem:[%s2261_s7 + $0xa0] sm:$0xff]   ;;  %v1832_v27 = vld [vmem:[%s2261_s7 + $0xa8] sm:$0xff]   ;;  %v1611_v10 = vcombine.low %v2295_v33, %v2295_v33  ;;  %s773_s24 = scalar_lea.vmem %s2379_s3, %s1605_s21 }
  0x75   : > { %1706 = vmatpush3.bf16.msra.mxu1 %v1816_v11  ;;  %1685 = vmatprep.subr.bf16.mxu0 %v1817_v12  ;;  %v1833_v28 = vld [vmem:[%s2261_s7 + $0x70] sm:$0xff]   ;;  %v1837_v32 = vld [vmem:[%s2261_s7 + $0x78] sm:$0xff]   ;;  %v1845_v40 = vld [vmem:[%s2261_s7 + $0x140] sm:$0xff]   ;;  %v1613_v11 = vcombine.low %v2301_v35, %v2301_v35 }
  0x76   : > { %1707 = vmatprep.subr.bf16.mxu1 %v1818_v13  ;;  %v1834_v29 = vld [vmem:[%s2261_s7 + $0xf0] sm:$0xff]   ;;  %v1838_v34 = vld [vmem:[%s2261_s7 + $0xf8] sm:$0xff]   ;;  %v1846_v41 = vld [vmem:[%s2261_s7 + $0x1c0] sm:$0xff]  }
  0x77   : > { %v1835_v30 = vld [vmem:[%s2261_s7 + $0x30] sm:$0xff]   ;;  %v1839_v36 = vld [vmem:[%s2261_s7 + $0x38] sm:$0xff]   ;;  %v1847_v43 = vld [vmem:[%s2261_s7 + $0x100] sm:$0xff]  }
  0x78   : > { %1686 = vmatpush3.bf16.msra.mxu0 %v1819_v14  ;;  %v1836_v31 = vld [vmem:[%s2261_s7 + $0xb0] sm:$0xff]   ;;  %v1840_v37 = vld [vmem:[%s2261_s7 + $0xb8] sm:$0xff]   ;;  %v1848_v45 = vld [vmem:[%s2261_s7 + $0x180] sm:$0xff]  }
  0x79   : > { %1708 = vmatpush3.bf16.msra.mxu1 %v1820_v15  ;;  %1687 = vmatprep.subr.bf16.mxu0 %v1821_v16  ;;  %v1849_v46 = vld [vmem:[%s2261_s7 + $0x148] sm:$0xff]   ;;  %v1853_v50 = vld [vmem:[%s2261_s7 + $0x150] sm:$0xff]   ;;  %v1857_v54 = vld [vmem:[%s2261_s7 + $0x158] sm:$0xff]  }
  0x7a   : > { %1709 = vmatprep.subr.bf16.mxu1 %v1822_v17  ;;  %v1850_v47 = vld [vmem:[%s2261_s7 + $0x1c8] sm:$0xff]   ;;  %v1854_v51 = vld [vmem:[%s2261_s7 + $0x1d0] sm:$0xff]   ;;  %v1858_v55 = vld [vmem:[%s2261_s7 + $0x1d8] sm:$0xff]  }
  0x7b   : > { %v1851_v48 = vld [vmem:[%s2261_s7 + $0x108] sm:$0xff]   ;;  %v1855_v52 = vld [vmem:[%s2261_s7 + $0x110] sm:$0xff]   ;;  %v1859_v56 = vld [vmem:[%s2261_s7 + $0x118] sm:$0xff]  }
  0x7c   : > { %1688 = vmatpush3.bf16.msra.mxu0 %v1823_v18  ;;  %v1852_v49 = vld [vmem:[%s2261_s7 + $0x188] sm:$0xff]   ;;  %v1856_v53 = vld [vmem:[%s2261_s7 + $0x190] sm:$0xff]   ;;  %v1860_v57 = vld [vmem:[%s2261_s7 + $0x198] sm:$0xff]  }
  0x7d   : > { %1710 = vmatpush3.bf16.msra.mxu1 %v1824_v19  ;;  %1689 = vmatprep.subr.bf16.mxu0 %v1825_v20  ;;  %v1861_v58 = vld [vmem:[%s2261_s7 + $0x160] sm:$0xff]   ;;  %v1865_v62 = vld [vmem:[%s2261_s7 + $0x168] sm:$0xff]   ;;  %v1869_v2 = vld [vmem:[%s2261_s7 + $0x170] sm:$0xff]  }
  0x7e   : > { %1711 = vmatprep.subr.bf16.mxu1 %v1826_v21  ;;  %v1862_v59 = vld [vmem:[%s2261_s7 + $0x1e0] sm:$0xff]   ;;  %v1866_v63 = vld [vmem:[%s2261_s7 + $0x1e8] sm:$0xff]   ;;  %v1870_v3 = vld [vmem:[%s2261_s7 + $0x1f0] sm:$0xff]  }
  0x7f   : > { %v1863_v60 = vld [vmem:[%s2261_s7 + $0x120] sm:$0xff]   ;;  %v1867_v0 = vld [vmem:[%s2261_s7 + $0x128] sm:$0xff]   ;;  %v1871_v4 = vld [vmem:[%s2261_s7 + $0x130] sm:$0xff]  }
  0x80   : > { %1690 = vmatpush3.bf16.msra.mxu0 %v1827_v22  ;;  %v1864_v61 = vld [vmem:[%s2261_s7 + $0x1a0] sm:$0xff]   ;;  %v1868_v1 = vld [vmem:[%s2261_s7 + $0x1a8] sm:$0xff]   ;;  %v1872_v5 = vld [vmem:[%s2261_s7 + $0x1b0] sm:$0xff]  }
  0x81   : > { %1712 = vmatpush3.bf16.msra.mxu1 %v1828_v23  ;;  %1691 = vmatprep.subr.bf16.mxu0 %v1829_v24  ;;  %v1873_v6 = vld [vmem:[%s2261_s7 + $0x178] sm:$0xff]   ;;  %v1606_v14 = vld [vmem:[%s765_s19] ss:$0 sm:$0xff] }
  0x82   : > { %1713 = vmatprep.subr.bf16.mxu1 %v1830_v25  ;;  %v1874_v7 = vld [vmem:[%s2261_s7 + $0x1f8] sm:$0xff]  }
  0x83   : > { %v1875_v8 = vld [vmem:[%s2261_s7 + $0x138] sm:$0xff]  }
  0x84   : > { %1692 = vmatpush3.bf16.msra.mxu0 %v1831_v26  ;;  %v1876_v9 = vld [vmem:[%s2261_s7 + $0x1b8] sm:$0xff]  }
  0x85   : > { %1714 = vmatpush3.bf16.msra.mxu1 %v1832_v27  ;;  %1693 = vmatprep.subr.bf16.mxu0 %v1833_v28 }
  0x86   : > { %1715 = vmatprep.subr.bf16.mxu1 %v1834_v29 }
  0x88   : > { %1694 = vmatpush3.bf16.msra.mxu0 %v1835_v30 }
  0x89   : > { %1716 = vmatpush3.bf16.msra.mxu1 %v1836_v31  ;;  %1695 = vmatprep.subr.bf16.mxu0 %v1837_v32 }
  0x8a   : > { %1717 = vmatprep.subr.bf16.mxu1 %v1838_v34 }
  0x8c   : > { %1696 = vmatpush3.bf16.msra.mxu0 %v1839_v36 }
  0x8d   : > { %1718 = vmatpush3.bf16.msra.mxu1 %v1840_v37  ;;  %1725 = vmatprep.subr.bf16.mxu0 %v1845_v40 }
  0x8e   : > { %1747 = vmatprep.subr.bf16.mxu1 %v1846_v41 }
  0x8f   : > { %1359 = vmatmul.mubr.bf16.vlgmr.msra.gmra.mrb[0].mxu0 %v1607_v38 }
  0x90   : > { %1399 = vmatmul.mubr.bf16.vlgmr.msra.gmra.mrb[0].mxu1 %v1609_v39  ;;  %1726 = vmatpush3.bf16.msra.mxu0 %v1847_v43 }
  0x91   : > { %1748 = vmatpush3.bf16.msra.mxu1 %v1848_v45  ;;  %1438 = vmatprep.mubr.bf16.mxu0 %v1612_v42 }
  0x92   : > { %1727 = vmatprep.subr.bf16.mxu0 %v1849_v46  ;;  %1478 = vmatprep.mubr.bf16.mxu1 %v1614_v44 }
  0x93   : > { %1749 = vmatprep.subr.bf16.mxu1 %v1850_v47 }
  0x94   : > { %1728 = vmatpush3.bf16.msra.mxu0 %v1851_v48 }
  0x95   : > { %1750 = vmatpush3.bf16.msra.mxu1 %v1852_v49  ;;  %1729 = vmatprep.subr.bf16.mxu0 %v1853_v50 }
  0x96   : > { %1751 = vmatprep.subr.bf16.mxu1 %v1854_v51 }
  0x98   : > { %1730 = vmatpush3.bf16.msra.mxu0 %v1855_v52 }
  0x99   : > { %1752 = vmatpush3.bf16.msra.mxu1 %v1856_v53  ;;  %1731 = vmatprep.subr.bf16.mxu0 %v1857_v54 }
  0x9a   : > { %1753 = vmatprep.subr.bf16.mxu1 %v1858_v55 }
  0x9c   : > { %1732 = vmatpush3.bf16.msra.mxu0 %v1859_v56 }
  0x9d   : > { %1754 = vmatpush3.bf16.msra.mxu1 %v1860_v57  ;;  %1733 = vmatprep.subr.bf16.mxu0 %v1861_v58 }
  0x9e   : > { %1755 = vmatprep.subr.bf16.mxu1 %v1862_v59 }
  0xa0   : > { %1734 = vmatpush3.bf16.msra.mxu0 %v1863_v60 }
  0xa1   : > { %1756 = vmatpush3.bf16.msra.mxu1 %v1864_v61  ;;  %1735 = vmatprep.subr.bf16.mxu0 %v1865_v62 }
  0xa2   : > { %1757 = vmatprep.subr.bf16.mxu1 %v1866_v63 }
  0xa4   : > { %1736 = vmatpush3.bf16.msra.mxu0 %v1867_v0 }
  0xa5   : > { %1758 = vmatpush3.bf16.msra.mxu1 %v1868_v1  ;;  %1737 = vmatprep.subr.bf16.mxu0 %v1869_v2 }
  0xa6   : > { %1759 = vmatprep.subr.bf16.mxu1 %v1870_v3 }
  0xa8   : > { %1738 = vmatpush3.bf16.msra.mxu0 %v1871_v4 }
  0xa9   : > { %1760 = vmatpush3.bf16.msra.mxu1 %v1872_v5  ;;  %1739 = vmatprep.subr.bf16.mxu0 %v1873_v6 }
  0xaa   : > { %1761 = vmatprep.subr.bf16.mxu1 %v1874_v7 }
  0xac   : > { %1740 = vmatpush3.bf16.msra.mxu0 %v1875_v8 }
  0xad   : > { %1762 = vmatpush3.bf16.msra.mxu1 %v1876_v9 }
  0xaf   : > { %1439 = vmatmul.mubr.bf16.vlgmr.msra.gmra.mrb[4].mxu0 %v1611_v10 }
  0xb0   : > { %1479 = vmatmul.mubr.bf16.vlgmr.msra.gmra.mrb[4].mxu1 %v1613_v11 }
 0x162   : > { %v1697_v12 = vpop.f32.mrb[0].mxu0 }
 0x163   : > { %v1719_v13 = vpop.f32.mrb[0].mxu1  ;;  %v1698_v15 = vpop.f32.mrb[1].mxu0 }
 0x164   : > { %v1699_v16 = vadd.f32 %v1698_v15, %v1697_v12  ;;  %v1720_v17 = vpop.f32.mrb[1].mxu1  ;;  %v1700_v18 = vpop.f32.mrb[2].mxu0 }
 0x165   : > { %v1721_v19 = vadd.f32 %v1720_v17, %v1719_v13  ;;  %v1722_v20 = vpop.f32.mrb[2].mxu1  ;;  %v1701_v21 = vpop.f32.mrb[3].mxu0 }
 0x166   : > { %v1361_v22 = vadd.f32 %v1699_v16, %v1606_v14  ;;  %v1723_v23 = vpop.f32.mrb[3].mxu1 }
 0x168   : > { %v1401_v24 = vadd.f32 %v1721_v19, %v1361_v22 }
 0x182   : > { %v1741_v25 = vpop.f32.mrb[4].mxu0 }
 0x183   : > { %v1763_v26 = vpop.f32.mrb[4].mxu1  ;;  %v1742_v27 = vpop.f32.mrb[5].mxu0 }
 0x184   : > { %v1743_v28 = vadd.f32 %v1742_v27, %v1741_v25  ;;  %v1764_v29 = vpop.f32.mrb[5].mxu1  ;;  %v1744_v30 = vpop.f32.mrb[6].mxu0 }
 0x185   : > { %v1765_v31 = vadd.f32 %v1764_v29, %v1763_v26  ;;  %v1766_v32 = vpop.f32.mrb[6].mxu1  ;;  %v1745_v33 = vpop.f32.mrb[7].mxu0 }
 0x186   : > { %v1441_v34 = vadd.f32 %v1743_v28, %v1401_v24  ;;  %v1767_v35 = vpop.f32.mrb[7].mxu1 }
 0x188   : > { %v1481_v36 = vadd.f32 %v1765_v31, %v1441_v34 }
 0x18a   : > { %v1486_v37 = vmax.f32 %v1481_v36, 0.0 }
 0x18c   : > { %1487 = vst [vmem:[%s773_s24] sm:$0xff] %v1486_v37 }
 0x18d PF: > { %s13_s16 = sadd.s32 1, %s1919_s16   ;;  %s2380_s12 = smov %s1907_s13 }
 0x18e   : > { %p10_p10 = scmp.ge.s32.totalorder %s13_s16, 6   ;;  %s2381_s13 = smov %s1976_s20 }
 0x18f   : > { %s2382_s14 = smov %s1915_s15  ;;  %s2383_s15 = smov %s2385_s17 }
 0x190   :  { %12 = sbr.rel (!%p10_p10) target bundleno = 3 (0x3), region = 114 }

// kernel: simple_autoencoder_forward.9
= control target key start
LH: loop header
LB: loop body
LE: loop exit
PB: predicated region body
PF: predicated region fallthrough
CT: control target
= control target key end

     0   :  { %s2165_s12 = smov 0   ;;  %s2167_s13 = smov 0   ;;  %s2643_s0 = inlined_call_operand.vmem [shape: bf16[8,1152], index: 0, kind: input, shape index: {}]   ;;  %s2644_s1 = inlined_call_operand.vmem [shape: bf16[1152,256], index: 1, kind: input, shape index: {}]   ;;  %s2645_s2 = inlined_call_operand.vmem [shape: f32[1,256], index: 2, kind: input, shape index: {}]   ;;  %s2646_s3 = inlined_call_operand.vmem [shape: f32[8,256], index: 3, kind: output, shape index: {}]  }
   0x1   :  { %s2169_s14 = smov 0   ;;  %s2171_s15 = smov 0  }
   0x2   :  { %s2173_s16 = smov 0  }
   0x3 LB: > { %s22_s17 = sadd.s32 1, %s2137_s15  ;;  %p65_p1 = scmp.ne.s32.totalorder %s2129_s13, %s2125_s12  ;;  %s2141_s16 = sphi %s2173_s16, %s13_s16   ;;  %s2137_s15 = sphi %s2171_s15, %s2650_s15   ;;  %s2133_s14 = sphi %s2169_s14, %s2649_s14   ;;  %s2129_s13 = sphi %s2167_s13, %s2648_s13   ;;  %s2125_s12 = sphi %s2165_s12, %s2647_s12  }
   0x4   : > { %p23_p0 = scmp.ge.s32.totalorder %s22_s17, 2  ;;  %p66_p2 = scmp.eq.s32.totalorder %s2141_s16, 0 }
   0x5   : > { %s58_s19 = sadd.s32 1, %s2129_s13  ;;  %p1773_p5 = scmp.ge.s32.totalorder %s2141_s16, 2 }
   0x6   : > { %s2652_s17 = smov (%p23_p0, %s22_s17), 0  ;;  %p67_p3 = por %p66_p2, %p65_p1 }
   0x7   : > { %s55_s18 = ssub.s32 %s2137_s15, %s2652_s17  ;;  %153 = sbr.rel (%p1773_p5) target bundleno = 114 (0x72), region = 20 }
   0x8   : > { %p56_p4 = scmp.eq.s32.totalorder %s55_s18, 0 }
   0xa   : > { %s2200_s20 = scalar_select %p56_p4, %s2129_s13, %s58_s19  }
   0xe   : > { %156 = sbr.rel (!%p67_p3) target bundleno = 114 (0x72), region = 24  ;;  %s158_s21 = sand.u32 (%p67_p3), 1, %s2129_s13  }
   0xf   : > { %s1774_s22 = sshll.u32 (%p67_p3), %s2137_s15, 2  ;;  %s1978_s23 = smul.u32 (%p67_p3), 576, %s158_s21 }
  0x10   : > { %s2208_s26 = scalar_lea.vmem (%p67_p3), %s2644_s1, %s1774_s22 }
  0x11   : > { %v178_v0 = vld [vmem:[%s2208_s26] sm:$0xf] (%p67_p3)  ;;  %v180_v1 = vld [vmem:[%s2208_s26 + $0x8] sm:$0xf] (%p67_p3)  ;;  %v182_v2 = vld [vmem:[%s2208_s26 + $0x10] sm:$0xf] (%p67_p3) }
  0x12   : > { %v184_v3 = vld [vmem:[%s2208_s26 + $0x18] sm:$0xf] (%p67_p3)  ;;  %v186_v4 = vld [vmem:[%s2208_s26 + $0x20] sm:$0xf] (%p67_p3)  ;;  %s2215_s27 = scalar_lea.vmem (%p67_p3), [#allocation2], %s1978_s23 }
  0x13   : > { %179 = vst [vmem:[%s2215_s27] sm:$0xf] (%p67_p3), %v178_v0  ;;  %181 = vst [vmem:[%s2215_s27 + $0x4] sm:$0xf] (%p67_p3), %v180_v1  ;;  %v188_v5 = vld [vmem:[%s2208_s26 + $0x28] sm:$0xf] (%p67_p3) }
  0x14   : > { %183 = vst [vmem:[%s2215_s27 + $0x8] sm:$0xf] (%p67_p3), %v182_v2  ;;  %185 = vst [vmem:[%s2215_s27 + $0xc] sm:$0xf] (%p67_p3), %v184_v3  ;;  %v190_v6 = vld [vmem:[%s2208_s26 + $0x30] sm:$0xf] (%p67_p3) }
  0x15   : > { %187 = vst [vmem:[%s2215_s27 + $0x10] sm:$0xf] %v186_v4  ;;  %v192_v7 = vld [vmem:[%s2208_s26 + $0x38] sm:$0xf]  ;;  %189 = vst [vmem:[%s2215_s27 + $0x14] sm:$0xf] %v188_v5 }
  0x16   : > { %191 = vst [vmem:[%s2215_s27 + $0x18] sm:$0xf] %v190_v6  ;;  %193 = vst [vmem:[%s2215_s27 + $0x1c] sm:$0xf] %v192_v7  ;;  %v194_v8 = vld [vmem:[%s2208_s26 + $0x40] sm:$0xf] }
  0x17   : > { %v196_v9 = vld [vmem:[%s2208_s26 + $0x48] sm:$0xf]  ;;  %v198_v10 = vld [vmem:[%s2208_s26 + $0x50] sm:$0xf]  ;;  %195 = vst [vmem:[%s2215_s27 + $0x20] sm:$0xf] %v194_v8 }
  0x18   : > { %197 = vst [vmem:[%s2215_s27 + $0x24] sm:$0xf] %v196_v9  ;;  %199 = vst [vmem:[%s2215_s27 + $0x28] sm:$0xf] %v198_v10  ;;  %v200_v11 = vld [vmem:[%s2208_s26 + $0x58] sm:$0xf] }
  0x19   : > { %v202_v12 = vld [vmem:[%s2208_s26 + $0x60] sm:$0xf]  ;;  %v204_v13 = vld [vmem:[%s2208_s26 + $0x68] sm:$0xf]  ;;  %201 = vst [vmem:[%s2215_s27 + $0x2c] sm:$0xf] %v200_v11 }
  0x1a   : > { %203 = vst [vmem:[%s2215_s27 + $0x30] sm:$0xf] %v202_v12  ;;  %205 = vst [vmem:[%s2215_s27 + $0x34] sm:$0xf] %v204_v13  ;;  %v206_v14 = vld [vmem:[%s2208_s26 + $0x70] sm:$0xf] }
  0x1b   : > { %v208_v15 = vld [vmem:[%s2208_s26 + $0x78] sm:$0xf]  ;;  %v210_v16 = vld [vmem:[%s2208_s26 + $0x80] sm:$0xf]  ;;  %207 = vst [vmem:[%s2215_s27 + $0x38] sm:$0xf] %v206_v14 }
  0x1c   : > { %209 = vst [vmem:[%s2215_s27 + $0x3c] sm:$0xf] %v208_v15  ;;  %211 = vst [vmem:[%s2215_s27 + $0x40] sm:$0xf] %v210_v16  ;;  %v212_v17 = vld [vmem:[%s2208_s26 + $0x88] sm:$0xf] }
  0x1d   : > { %v214_v18 = vld [vmem:[%s2208_s26 + $0x90] sm:$0xf]  ;;  %v216_v19 = vld [vmem:[%s2208_s26 + $0x98] sm:$0xf]  ;;  %213 = vst [vmem:[%s2215_s27 + $0x44] sm:$0xf] %v212_v17 }
  0x1e   : > { %215 = vst [vmem:[%s2215_s27 + $0x48] sm:$0xf] %v214_v18  ;;  %217 = vst [vmem:[%s2215_s27 + $0x4c] sm:$0xf] %v216_v19  ;;  %v218_v20 = vld [vmem:[%s2208_s26 + $0xa0] sm:$0xf] }
  0x1f   : > { %v220_v21 = vld [vmem:[%s2208_s26 + $0xa8] sm:$0xf]  ;;  %v222_v22 = vld [vmem:[%s2208_s26 + $0xb0] sm:$0xf]  ;;  %219 = vst [vmem:[%s2215_s27 + $0x50] sm:$0xf] %v218_v20 }
  0x20   : > { %221 = vst [vmem:[%s2215_s27 + $0x54] sm:$0xf] %v220_v21  ;;  %223 = vst [vmem:[%s2215_s27 + $0x58] sm:$0xf] %v222_v22  ;;  %v224_v23 = vld [vmem:[%s2208_s26 + $0xb8] sm:$0xf] }
  0x21   : > { %v226_v24 = vld [vmem:[%s2208_s26 + $0xc0] sm:$0xf]  ;;  %v228_v25 = vld [vmem:[%s2208_s26 + $0xc8] sm:$0xf]  ;;  %225 = vst [vmem:[%s2215_s27 + $0x5c] sm:$0xf] %v224_v23 }
  0x22   : > { %227 = vst [vmem:[%s2215_s27 + $0x60] sm:$0xf] %v226_v24  ;;  %229 = vst [vmem:[%s2215_s27 + $0x64] sm:$0xf] %v228_v25  ;;  %v230_v26 = vld [vmem:[%s2208_s26 + $0xd0] sm:$0xf] }
  0x23   : > { %v232_v27 = vld [vmem:[%s2208_s26 + $0xd8] sm:$0xf]  ;;  %v234_v28 = vld [vmem:[%s2208_s26 + $0xe0] sm:$0xf]  ;;  %231 = vst [vmem:[%s2215_s27 + $0x68] sm:$0xf] %v230_v26 }
  0x24   : > { %233 = vst [vmem:[%s2215_s27 + $0x6c] sm:$0xf] %v232_v27  ;;  %235 = vst [vmem:[%s2215_s27 + $0x70] sm:$0xf] %v234_v28  ;;  %v236_v29 = vld [vmem:[%s2208_s26 + $0xe8] sm:$0xf] }
  0x25   : > { %v238_v30 = vld [vmem:[%s2208_s26 + $0xf0] sm:$0xf]  ;;  %v240_v31 = vld [vmem:[%s2208_s26 + $0xf8] sm:$0xf]  ;;  %237 = vst [vmem:[%s2215_s27 + $0x74] sm:$0xf] %v236_v29 }
  0x26   : > { %239 = vst [vmem:[%s2215_s27 + $0x78] sm:$0xf] %v238_v30  ;;  %241 = vst [vmem:[%s2215_s27 + $0x7c] sm:$0xf] %v240_v31  ;;  %v242_v32 = vld [vmem:[%s2208_s26 + $0x100] sm:$0xf] }
  0x27   : > { %v244_v33 = vld [vmem:[%s2208_s26 + $0x108] sm:$0xf]  ;;  %v246_v34 = vld [vmem:[%s2208_s26 + $0x110] sm:$0xf]  ;;  %243 = vst [vmem:[%s2215_s27 + $0x80] sm:$0xf] %v242_v32 }
  0x28   : > { %245 = vst [vmem:[%s2215_s27 + $0x84] sm:$0xf] %v244_v33  ;;  %247 = vst [vmem:[%s2215_s27 + $0x88] sm:$0xf] %v246_v34  ;;  %v248_v35 = vld [vmem:[%s2208_s26 + $0x118] sm:$0xf] }
  0x29   : > { %v250_v36 = vld [vmem:[%s2208_s26 + $0x120] sm:$0xf]  ;;  %v252_v37 = vld [vmem:[%s2208_s26 + $0x128] sm:$0xf]  ;;  %249 = vst [vmem:[%s2215_s27 + $0x8c] sm:$0xf] %v248_v35 }
  0x2a   : > { %251 = vst [vmem:[%s2215_s27 + $0x90] sm:$0xf] %v250_v36  ;;  %253 = vst [vmem:[%s2215_s27 + $0x94] sm:$0xf] %v252_v37  ;;  %v254_v38 = vld [vmem:[%s2208_s26 + $0x130] sm:$0xf] }
  0x2b   : > { %v256_v39 = vld [vmem:[%s2208_s26 + $0x138] sm:$0xf]  ;;  %v258_v40 = vld [vmem:[%s2208_s26 + $0x140] sm:$0xf]  ;;  %255 = vst [vmem:[%s2215_s27 + $0x98] sm:$0xf] %v254_v38 }
  0x2c   : > { %257 = vst [vmem:[%s2215_s27 + $0x9c] sm:$0xf] %v256_v39  ;;  %259 = vst [vmem:[%s2215_s27 + $0xa0] sm:$0xf] %v258_v40  ;;  %v260_v41 = vld [vmem:[%s2208_s26 + $0x148] sm:$0xf] }
  0x2d   : > { %v262_v42 = vld [vmem:[%s2208_s26 + $0x150] sm:$0xf]  ;;  %v264_v43 = vld [vmem:[%s2208_s26 + $0x158] sm:$0xf]  ;;  %261 = vst [vmem:[%s2215_s27 + $0xa4] sm:$0xf] %v260_v41 }
  0x2e   : > { %263 = vst [vmem:[%s2215_s27 + $0xa8] sm:$0xf] %v262_v42  ;;  %265 = vst [vmem:[%s2215_s27 + $0xac] sm:$0xf] %v264_v43  ;;  %v266_v44 = vld [vmem:[%s2208_s26 + $0x160] sm:$0xf] }
  0x2f   : > { %v268_v45 = vld [vmem:[%s2208_s26 + $0x168] sm:$0xf]  ;;  %v270_v46 = vld [vmem:[%s2208_s26 + $0x170] sm:$0xf]  ;;  %267 = vst [vmem:[%s2215_s27 + $0xb0] sm:$0xf] %v266_v44 }
  0x30   : > { %269 = vst [vmem:[%s2215_s27 + $0xb4] sm:$0xf] %v268_v45  ;;  %271 = vst [vmem:[%s2215_s27 + $0xb8] sm:$0xf] %v270_v46  ;;  %v272_v47 = vld [vmem:[%s2208_s26 + $0x178] sm:$0xf] }
  0x31   : > { %v274_v48 = vld [vmem:[%s2208_s26 + $0x180] sm:$0xf]  ;;  %v276_v49 = vld [vmem:[%s2208_s26 + $0x188] sm:$0xf]  ;;  %273 = vst [vmem:[%s2215_s27 + $0xbc] sm:$0xf] %v272_v47 }
  0x32   : > { %275 = vst [vmem:[%s2215_s27 + $0xc0] sm:$0xf] %v274_v48  ;;  %277 = vst [vmem:[%s2215_s27 + $0xc4] sm:$0xf] %v276_v49  ;;  %v278_v50 = vld [vmem:[%s2208_s26 + $0x190] sm:$0xf] }
  0x33   : > { %v280_v51 = vld [vmem:[%s2208_s26 + $0x198] sm:$0xf]  ;;  %v282_v52 = vld [vmem:[%s2208_s26 + $0x1a0] sm:$0xf]  ;;  %279 = vst [vmem:[%s2215_s27 + $0xc8] sm:$0xf] %v278_v50 }
  0x34   : > { %281 = vst [vmem:[%s2215_s27 + $0xcc] sm:$0xf] %v280_v51  ;;  %283 = vst [vmem:[%s2215_s27 + $0xd0] sm:$0xf] %v282_v52  ;;  %v284_v53 = vld [vmem:[%s2208_s26 + $0x1a8] sm:$0xf] }
  0x35   : > { %v286_v54 = vld [vmem:[%s2208_s26 + $0x1b0] sm:$0xf]  ;;  %v288_v55 = vld [vmem:[%s2208_s26 + $0x1b8] sm:$0xf]  ;;  %285 = vst [vmem:[%s2215_s27 + $0xd4] sm:$0xf] %v284_v53 }
  0x36   : > { %287 = vst [vmem:[%s2215_s27 + $0xd8] sm:$0xf] %v286_v54  ;;  %289 = vst [vmem:[%s2215_s27 + $0xdc] sm:$0xf] %v288_v55  ;;  %v290_v56 = vld [vmem:[%s2208_s26 + $0x1c0] sm:$0xf] }
  0x37   : > { %v292_v57 = vld [vmem:[%s2208_s26 + $0x1c8] sm:$0xf]  ;;  %v294_v58 = vld [vmem:[%s2208_s26 + $0x1d0] sm:$0xf]  ;;  %291 = vst [vmem:[%s2215_s27 + $0xe0] sm:$0xf] %v290_v56 }
  0x38   : > { %293 = vst [vmem:[%s2215_s27 + $0xe4] sm:$0xf] %v292_v57  ;;  %295 = vst [vmem:[%s2215_s27 + $0xe8] sm:$0xf] %v294_v58  ;;  %v296_v59 = vld [vmem:[%s2208_s26 + $0x1d8] sm:$0xf] }
  0x39   : > { %v298_v60 = vld [vmem:[%s2208_s26 + $0x1e0] sm:$0xf]  ;;  %v300_v61 = vld [vmem:[%s2208_s26 + $0x1e8] sm:$0xf]  ;;  %297 = vst [vmem:[%s2215_s27 + $0xec] sm:$0xf] %v296_v59 }
  0x3a   : > { %299 = vst [vmem:[%s2215_s27 + $0xf0] sm:$0xf] %v298_v60  ;;  %301 = vst [vmem:[%s2215_s27 + $0xf4] sm:$0xf] %v300_v61  ;;  %v302_v62 = vld [vmem:[%s2208_s26 + $0x1f0] sm:$0xf] }
  0x3b   : > { %v304_v63 = vld [vmem:[%s2208_s26 + $0x1f8] sm:$0xf]  ;;  %v306_v0 = vld [vmem:[%s2208_s26 + $0x200] sm:$0xf]  ;;  %303 = vst [vmem:[%s2215_s27 + $0xf8] sm:$0xf] %v302_v62 }
  0x3c   : > { %305 = vst [vmem:[%s2215_s27 + $0xfc] sm:$0xf] %v304_v63  ;;  %307 = vst [vmem:[%s2215_s27 + $0x100] sm:$0xf] %v306_v0  ;;  %v308_v1 = vld [vmem:[%s2208_s26 + $0x208] sm:$0xf] }
  0x3d   : > { %v310_v2 = vld [vmem:[%s2208_s26 + $0x210] sm:$0xf]  ;;  %v312_v3 = vld [vmem:[%s2208_s26 + $0x218] sm:$0xf]  ;;  %309 = vst [vmem:[%s2215_s27 + $0x104] sm:$0xf] %v308_v1 }
  0x3e   : > { %311 = vst [vmem:[%s2215_s27 + $0x108] sm:$0xf] %v310_v2  ;;  %313 = vst [vmem:[%s2215_s27 + $0x10c] sm:$0xf] %v312_v3  ;;  %v314_v4 = vld [vmem:[%s2208_s26 + $0x220] sm:$0xf] }
  0x3f   : > { %v316_v5 = vld [vmem:[%s2208_s26 + $0x228] sm:$0xf]  ;;  %v318_v6 = vld [vmem:[%s2208_s26 + $0x230] sm:$0xf]  ;;  %315 = vst [vmem:[%s2215_s27 + $0x110] sm:$0xf] %v314_v4 }
  0x40   : > { %317 = vst [vmem:[%s2215_s27 + $0x114] sm:$0xf] %v316_v5  ;;  %319 = vst [vmem:[%s2215_s27 + $0x118] sm:$0xf] %v318_v6  ;;  %v320_v7 = vld [vmem:[%s2208_s26 + $0x238] sm:$0xf] }
  0x41   : > { %v322_v8 = vld [vmem:[%s2208_s26 + $0x240] sm:$0xf]  ;;  %v324_v9 = vld [vmem:[%s2208_s26 + $0x248] sm:$0xf]  ;;  %321 = vst [vmem:[%s2215_s27 + $0x11c] sm:$0xf] %v320_v7 }
  0x42   : > { %323 = vst [vmem:[%s2215_s27 + $0x120] sm:$0xf] %v322_v8  ;;  %325 = vst [vmem:[%s2215_s27 + $0x124] sm:$0xf] %v324_v9  ;;  %v326_v10 = vld [vmem:[%s2208_s26 + $0x250] sm:$0xf] }
  0x43   : > { %v328_v11 = vld [vmem:[%s2208_s26 + $0x258] sm:$0xf]  ;;  %v330_v12 = vld [vmem:[%s2208_s26 + $0x260] sm:$0xf]  ;;  %327 = vst [vmem:[%s2215_s27 + $0x128] sm:$0xf] %v326_v10 }
  0x44   : > { %329 = vst [vmem:[%s2215_s27 + $0x12c] sm:$0xf] %v328_v11  ;;  %331 = vst [vmem:[%s2215_s27 + $0x130] sm:$0xf] %v330_v12  ;;  %v332_v13 = vld [vmem:[%s2208_s26 + $0x268] sm:$0xf] }
  0x45   : > { %v334_v14 = vld [vmem:[%s2208_s26 + $0x270] sm:$0xf]  ;;  %v336_v15 = vld [vmem:[%s2208_s26 + $0x278] sm:$0xf]  ;;  %333 = vst [vmem:[%s2215_s27 + $0x134] sm:$0xf] %v332_v13 }
  0x46   : > { %335 = vst [vmem:[%s2215_s27 + $0x138] sm:$0xf] %v334_v14  ;;  %337 = vst [vmem:[%s2215_s27 + $0x13c] sm:$0xf] %v336_v15  ;;  %v338_v16 = vld [vmem:[%s2208_s26 + $0x280] sm:$0xf] }
  0x47   : > { %v340_v17 = vld [vmem:[%s2208_s26 + $0x288] sm:$0xf]  ;;  %v342_v18 = vld [vmem:[%s2208_s26 + $0x290] sm:$0xf]  ;;  %339 = vst [vmem:[%s2215_s27 + $0x140] sm:$0xf] %v338_v16 }
  0x48   : > { %341 = vst [vmem:[%s2215_s27 + $0x144] sm:$0xf] %v340_v17  ;;  %343 = vst [vmem:[%s2215_s27 + $0x148] sm:$0xf] %v342_v18  ;;  %v344_v19 = vld [vmem:[%s2208_s26 + $0x298] sm:$0xf] }
  0x49   : > { %v346_v20 = vld [vmem:[%s2208_s26 + $0x2a0] sm:$0xf]  ;;  %v348_v21 = vld [vmem:[%s2208_s26 + $0x2a8] sm:$0xf]  ;;  %345 = vst [vmem:[%s2215_s27 + $0x14c] sm:$0xf] %v344_v19 }
  0x4a   : > { %347 = vst [vmem:[%s2215_s27 + $0x150] sm:$0xf] %v346_v20  ;;  %349 = vst [vmem:[%s2215_s27 + $0x154] sm:$0xf] %v348_v21  ;;  %v350_v22 = vld [vmem:[%s2208_s26 + $0x2b0] sm:$0xf] }
  0x4b   : > { %v352_v23 = vld [vmem:[%s2208_s26 + $0x2b8] sm:$0xf]  ;;  %v354_v24 = vld [vmem:[%s2208_s26 + $0x2c0] sm:$0xf]  ;;  %351 = vst [vmem:[%s2215_s27 + $0x158] sm:$0xf] %v350_v22 }
  0x4c   : > { %353 = vst [vmem:[%s2215_s27 + $0x15c] sm:$0xf] %v352_v23  ;;  %355 = vst [vmem:[%s2215_s27 + $0x160] sm:$0xf] %v354_v24  ;;  %v356_v25 = vld [vmem:[%s2208_s26 + $0x2c8] sm:$0xf] }
  0x4d   : > { %v358_v26 = vld [vmem:[%s2208_s26 + $0x2d0] sm:$0xf]  ;;  %v360_v27 = vld [vmem:[%s2208_s26 + $0x2d8] sm:$0xf]  ;;  %357 = vst [vmem:[%s2215_s27 + $0x164] sm:$0xf] %v356_v25 }
  0x4e   : > { %359 = vst [vmem:[%s2215_s27 + $0x168] sm:$0xf] %v358_v26  ;;  %361 = vst [vmem:[%s2215_s27 + $0x16c] sm:$0xf] %v360_v27  ;;  %v362_v28 = vld [vmem:[%s2208_s26 + $0x2e0] sm:$0xf] }
  0x4f   : > { %v364_v29 = vld [vmem:[%s2208_s26 + $0x2e8] sm:$0xf]  ;;  %v366_v30 = vld [vmem:[%s2208_s26 + $0x2f0] sm:$0xf]  ;;  %363 = vst [vmem:[%s2215_s27 + $0x170] sm:$0xf] %v362_v28 }
  0x50   : > { %365 = vst [vmem:[%s2215_s27 + $0x174] sm:$0xf] %v364_v29  ;;  %367 = vst [vmem:[%s2215_s27 + $0x178] sm:$0xf] %v366_v30  ;;  %v368_v31 = vld [vmem:[%s2208_s26 + $0x2f8] sm:$0xf] }
  0x51   : > { %v370_v32 = vld [vmem:[%s2208_s26 + $0x300] sm:$0xf]  ;;  %v372_v33 = vld [vmem:[%s2208_s26 + $0x308] sm:$0xf]  ;;  %369 = vst [vmem:[%s2215_s27 + $0x17c] sm:$0xf] %v368_v31 }
  0x52   : > { %371 = vst [vmem:[%s2215_s27 + $0x180] sm:$0xf] %v370_v32  ;;  %373 = vst [vmem:[%s2215_s27 + $0x184] sm:$0xf] %v372_v33  ;;  %v374_v34 = vld [vmem:[%s2208_s26 + $0x310] sm:$0xf] }
  0x53   : > { %v376_v35 = vld [vmem:[%s2208_s26 + $0x318] sm:$0xf]  ;;  %v378_v36 = vld [vmem:[%s2208_s26 + $0x320] sm:$0xf]  ;;  %375 = vst [vmem:[%s2215_s27 + $0x188] sm:$0xf] %v374_v34 }
  0x54   : > { %377 = vst [vmem:[%s2215_s27 + $0x18c] sm:$0xf] %v376_v35  ;;  %379 = vst [vmem:[%s2215_s27 + $0x190] sm:$0xf] %v378_v36  ;;  %v380_v37 = vld [vmem:[%s2208_s26 + $0x328] sm:$0xf] }
  0x55   : > { %v382_v38 = vld [vmem:[%s2208_s26 + $0x330] sm:$0xf]  ;;  %v384_v39 = vld [vmem:[%s2208_s26 + $0x338] sm:$0xf]  ;;  %381 = vst [vmem:[%s2215_s27 + $0x194] sm:$0xf] %v380_v37 }
  0x56   : > { %383 = vst [vmem:[%s2215_s27 + $0x198] sm:$0xf] %v382_v38  ;;  %385 = vst [vmem:[%s2215_s27 + $0x19c] sm:$0xf] %v384_v39  ;;  %v386_v40 = vld [vmem:[%s2208_s26 + $0x340] sm:$0xf] }
  0x57   : > { %v388_v41 = vld [vmem:[%s2208_s26 + $0x348] sm:$0xf]  ;;  %v390_v42 = vld [vmem:[%s2208_s26 + $0x350] sm:$0xf]  ;;  %387 = vst [vmem:[%s2215_s27 + $0x1a0] sm:$0xf] %v386_v40 }
  0x58   : > { %389 = vst [vmem:[%s2215_s27 + $0x1a4] sm:$0xf] %v388_v41  ;;  %391 = vst [vmem:[%s2215_s27 + $0x1a8] sm:$0xf] %v390_v42  ;;  %v392_v43 = vld [vmem:[%s2208_s26 + $0x358] sm:$0xf] }
  0x59   : > { %v394_v44 = vld [vmem:[%s2208_s26 + $0x360] sm:$0xf]  ;;  %v396_v45 = vld [vmem:[%s2208_s26 + $0x368] sm:$0xf]  ;;  %393 = vst [vmem:[%s2215_s27 + $0x1ac] sm:$0xf] %v392_v43 }
  0x5a   : > { %395 = vst [vmem:[%s2215_s27 + $0x1b0] sm:$0xf] %v394_v44  ;;  %397 = vst [vmem:[%s2215_s27 + $0x1b4] sm:$0xf] %v396_v45  ;;  %v398_v46 = vld [vmem:[%s2208_s26 + $0x370] sm:$0xf] }
  0x5b   : > { %v400_v47 = vld [vmem:[%s2208_s26 + $0x378] sm:$0xf]  ;;  %v402_v48 = vld [vmem:[%s2208_s26 + $0x380] sm:$0xf]  ;;  %399 = vst [vmem:[%s2215_s27 + $0x1b8] sm:$0xf] %v398_v46 }
  0x5c   : > { %401 = vst [vmem:[%s2215_s27 + $0x1bc] sm:$0xf] %v400_v47  ;;  %403 = vst [vmem:[%s2215_s27 + $0x1c0] sm:$0xf] %v402_v48  ;;  %v404_v49 = vld [vmem:[%s2208_s26 + $0x388] sm:$0xf] }
  0x5d   : > { %v406_v50 = vld [vmem:[%s2208_s26 + $0x390] sm:$0xf]  ;;  %v408_v51 = vld [vmem:[%s2208_s26 + $0x398] sm:$0xf]  ;;  %405 = vst [vmem:[%s2215_s27 + $0x1c4] sm:$0xf] %v404_v49 }
  0x5e   : > { %407 = vst [vmem:[%s2215_s27 + $0x1c8] sm:$0xf] %v406_v50  ;;  %409 = vst [vmem:[%s2215_s27 + $0x1cc] sm:$0xf] %v408_v51  ;;  %v410_v52 = vld [vmem:[%s2208_s26 + $0x3a0] sm:$0xf] }
  0x5f   : > { %v412_v53 = vld [vmem:[%s2208_s26 + $0x3a8] sm:$0xf]  ;;  %v414_v54 = vld [vmem:[%s2208_s26 + $0x3b0] sm:$0xf]  ;;  %411 = vst [vmem:[%s2215_s27 + $0x1d0] sm:$0xf] %v410_v52 }
  0x60   : > { %413 = vst [vmem:[%s2215_s27 + $0x1d4] sm:$0xf] %v412_v53  ;;  %415 = vst [vmem:[%s2215_s27 + $0x1d8] sm:$0xf] %v414_v54  ;;  %v416_v55 = vld [vmem:[%s2208_s26 + $0x3b8] sm:$0xf] }
  0x61   : > { %v418_v56 = vld [vmem:[%s2208_s26 + $0x3c0] sm:$0xf]  ;;  %v420_v57 = vld [vmem:[%s2208_s26 + $0x3c8] sm:$0xf]  ;;  %417 = vst [vmem:[%s2215_s27 + $0x1dc] sm:$0xf] %v416_v55 }
  0x62   : > { %419 = vst [vmem:[%s2215_s27 + $0x1e0] sm:$0xf] %v418_v56  ;;  %421 = vst [vmem:[%s2215_s27 + $0x1e4] sm:$0xf] %v420_v57  ;;  %v422_v58 = vld [vmem:[%s2208_s26 + $0x3d0] sm:$0xf] }
  0x63   : > { %v424_v59 = vld [vmem:[%s2208_s26 + $0x3d8] sm:$0xf]  ;;  %v426_v60 = vld [vmem:[%s2208_s26 + $0x3e0] sm:$0xf]  ;;  %423 = vst [vmem:[%s2215_s27 + $0x1e8] sm:$0xf] %v422_v58 }
  0x64   : > { %425 = vst [vmem:[%s2215_s27 + $0x1ec] sm:$0xf] %v424_v59  ;;  %427 = vst [vmem:[%s2215_s27 + $0x1f0] sm:$0xf] %v426_v60  ;;  %v428_v61 = vld [vmem:[%s2208_s26 + $0x3e8] sm:$0xf] }
  0x65   : > { %v430_v62 = vld [vmem:[%s2208_s26 + $0x3f0] sm:$0xf]  ;;  %v432_v63 = vld [vmem:[%s2208_s26 + $0x3f8] sm:$0xf]  ;;  %429 = vst [vmem:[%s2215_s27 + $0x1f4] sm:$0xf] %v428_v61 }
  0x66   : > { %431 = vst [vmem:[%s2215_s27 + $0x1f8] sm:$0xf] %v430_v62  ;;  %433 = vst [vmem:[%s2215_s27 + $0x1fc] sm:$0xf] %v432_v63  ;;  %v434_v0 = vld [vmem:[%s2208_s26 + $0x400] sm:$0xf] }
  0x67   : > { %v436_v1 = vld [vmem:[%s2208_s26 + $0x408] sm:$0xf]  ;;  %v438_v2 = vld [vmem:[%s2208_s26 + $0x410] sm:$0xf]  ;;  %435 = vst [vmem:[%s2215_s27 + $0x200] sm:$0xf] %v434_v0 }
  0x68   : > { %437 = vst [vmem:[%s2215_s27 + $0x204] sm:$0xf] %v436_v1  ;;  %439 = vst [vmem:[%s2215_s27 + $0x208] sm:$0xf] %v438_v2  ;;  %v440_v3 = vld [vmem:[%s2208_s26 + $0x418] sm:$0xf] }
  0x69   : > { %v442_v4 = vld [vmem:[%s2208_s26 + $0x420] sm:$0xf]  ;;  %v444_v5 = vld [vmem:[%s2208_s26 + $0x428] sm:$0xf]  ;;  %441 = vst [vmem:[%s2215_s27 + $0x20c] sm:$0xf] %v440_v3 }
  0x6a   : > { %443 = vst [vmem:[%s2215_s27 + $0x210] sm:$0xf] %v442_v4  ;;  %445 = vst [vmem:[%s2215_s27 + $0x214] sm:$0xf] %v444_v5  ;;  %v446_v6 = vld [vmem:[%s2208_s26 + $0x430] sm:$0xf] }
  0x6b   : > { %v448_v7 = vld [vmem:[%s2208_s26 + $0x438] sm:$0xf]  ;;  %v450_v8 = vld [vmem:[%s2208_s26 + $0x440] sm:$0xf]  ;;  %447 = vst [vmem:[%s2215_s27 + $0x218] sm:$0xf] %v446_v6 }
  0x6c   : > { %449 = vst [vmem:[%s2215_s27 + $0x21c] sm:$0xf] %v448_v7  ;;  %451 = vst [vmem:[%s2215_s27 + $0x220] sm:$0xf] %v450_v8  ;;  %v452_v9 = vld [vmem:[%s2208_s26 + $0x448] sm:$0xf] }
  0x6d   : > { %v454_v10 = vld [vmem:[%s2208_s26 + $0x450] sm:$0xf]  ;;  %v456_v11 = vld [vmem:[%s2208_s26 + $0x458] sm:$0xf]  ;;  %453 = vst [vmem:[%s2215_s27 + $0x224] sm:$0xf] %v452_v9 }
  0x6e   : > { %455 = vst [vmem:[%s2215_s27 + $0x228] sm:$0xf] %v454_v10  ;;  %457 = vst [vmem:[%s2215_s27 + $0x22c] sm:$0xf] %v456_v11  ;;  %v458_v12 = vld [vmem:[%s2208_s26 + $0x460] sm:$0xf] }
  0x6f   : > { %v460_v13 = vld [vmem:[%s2208_s26 + $0x468] sm:$0xf]  ;;  %v462_v14 = vld [vmem:[%s2208_s26 + $0x470] sm:$0xf]  ;;  %459 = vst [vmem:[%s2215_s27 + $0x230] sm:$0xf] %v458_v12 }
  0x70   : > { %461 = vst [vmem:[%s2215_s27 + $0x234] sm:$0xf] %v460_v13  ;;  %463 = vst [vmem:[%s2215_s27 + $0x238] sm:$0xf] %v462_v14  ;;  %v464_v15 = vld [vmem:[%s2208_s26 + $0x478] sm:$0xf] }
  0x71   : > { %465 = vst [vmem:[%s2215_s27 + $0x23c] sm:$0xf] %v464_v15 }
  0x72 PF: > { %p1775_p6 = scmp.ge.s32.totalorder %s2141_s16, 1  ;;  %p781_p7 = scmp.lt.s32.totalorder %s2141_s16, 3 }
  0x74   : > { %p782_p8 = pnand %p1775_p6, %p781_p7 }
  0x75   : > { %s788_s28 = sand.u32 (!%p782_p8), 1, %s2125_s12   ;;  %v2506_v16 = vld [vmem:[%s2643_s0] sm:$0xff] (!%p782_p8)  ;;  %v2511_v17 = vld [vmem:[%s2643_s0 + $0x8] sm:$0xff] (!%p782_p8)  ;;  %v2549_v47 = vld [vmem:[%s2643_s0 + $0x10] sm:$0xff] (!%p782_p8)  ;;  %vm2144_vm0 = vmmov (!%p782_p8), 0   ;;  %p827_p9 = scmp.lt.s32.totalorder (!%p782_p8), %s2133_s14, 1 }
  0x76   : > { %785 = sbr.rel (%p782_p8) target bundleno = 436 (0x1b4), region = 69  ;;  %v1779_v18 = vcombine.high (!%p782_p8), %v2506_v16, %v2506_v16  ;;  %v1781_v19 = vcombine.high (!%p782_p8), %v2511_v17, %v2511_v17  ;;  %v2556_v50 = vld [vmem:[%s2643_s0 + $0x18] sm:$0xff] (!%p782_p8)  ;;  %v1778_v53 = vcombine.low (!%p782_p8), %v2506_v16, %v2506_v16  ;;  %v1783_v55 = vcombine.high (!%p782_p8), %v2549_v47, %v2549_v47 }
  0x77   : > { %s1979_s6 = smul.u32 (!%p782_p8), 576, %s788_s28  ;;  %v1780_v57 = vcombine.low (!%p782_p8), %v2511_v17, %v2511_v17  ;;  %v1785_v59 = vcombine.high (!%p782_p8), %v2556_v50, %v2556_v50 }
  0x78   : > { %1491 = vmatprep.mubr.bf16.mxu0 (!%p782_p8), %v1779_v18  ;;  %1531 = vmatprep.mubr.bf16.mxu1 (!%p782_p8), %v1781_v19 }
  0x79   : > { %s2517_s7 = scalar_lea.vmem (!%p782_p8), [#allocation2], %s1979_s6 }
  0x7a   : > { %v2022_v20 = vld [vmem:[%s2517_s7 + $0x40] sm:$0xff] (!%p782_p8)   ;;  %v2026_v24 = vld [vmem:[%s2517_s7 + $0x48] sm:$0xff] (!%p782_p8)   ;;  %v2030_v28 = vld [vmem:[%s2517_s7 + $0x50] sm:$0xff] (!%p782_p8)  }
  0x7b   : > { %v2023_v21 = vld [vmem:[%s2517_s7] sm:$0xff] (!%p782_p8)   ;;  %1861 = vmatprep.subr.bf16.mxu0 (!%p782_p8), %v2022_v20  ;;  %v2027_v25 = vld [vmem:[%s2517_s7 + $0x8] sm:$0xff] (!%p782_p8)   ;;  %v2031_v29 = vld [vmem:[%s2517_s7 + $0x10] sm:$0xff] (!%p782_p8)  }
  0x7c   : > { %v2024_v22 = vld [vmem:[%s2517_s7 + $0xc0] sm:$0xff] (!%p782_p8)   ;;  %1862 = vmatpush3.bf16.msra.mxu0 (!%p782_p8), %v2023_v21  ;;  %v2028_v26 = vld [vmem:[%s2517_s7 + $0xc8] sm:$0xff] (!%p782_p8)   ;;  %v2032_v30 = vld [vmem:[%s2517_s7 + $0xd0] sm:$0xff] (!%p782_p8)  }
  0x7d   : > { %v2025_v23 = vld [vmem:[%s2517_s7 + $0x80] sm:$0xff]   ;;  %1883 = vmatprep.subr.bf16.mxu1 %v2024_v22  ;;  %1863 = vmatprep.subr.bf16.mxu0 %v2026_v24  ;;  %v2029_v27 = vld [vmem:[%s2517_s7 + $0x88] sm:$0xff]   ;;  %v2033_v31 = vld [vmem:[%s2517_s7 + $0x90] sm:$0xff]   ;;  %s2654_s14 = smov (!%p827_p9, %s2133_s14), 1 }
  0x7e   : > { %1884 = vmatpush3.bf16.msra.mxu1 %v2025_v23  ;;  %v2034_v32 = vld [vmem:[%s2517_s7 + $0x58] sm:$0xff]   ;;  %v2038_v36 = vld [vmem:[%s2517_s7 + $0x60] sm:$0xff]   ;;  %v2042_v40 = vld [vmem:[%s2517_s7 + $0x68] sm:$0xff]   ;;  %s829_s22 = scalar_lea.vmem %s2645_s2, %s2654_s14  ;;  %s1776_s23 = sshll.u32 %s2654_s14, 3 }
  0x7f   : > { %1885 = vmatprep.subr.bf16.mxu1 %v2028_v26  ;;  %v2035_v33 = vld [vmem:[%s2517_s7 + $0x18] sm:$0xff]   ;;  %v2039_v37 = vld [vmem:[%s2517_s7 + $0x20] sm:$0xff]   ;;  %v2043_v41 = vld [vmem:[%s2517_s7 + $0x28] sm:$0xff]   ;;  %s837_s26 = scalar_lea.vmem %s2646_s3, %s1776_s23 }
  0x80   : > { %1864 = vmatpush3.bf16.msra.mxu0 %v2027_v25  ;;  %v2036_v34 = vld [vmem:[%s2517_s7 + $0xd8] sm:$0xff]   ;;  %v2040_v38 = vld [vmem:[%s2517_s7 + $0xe0] sm:$0xff]   ;;  %v2044_v42 = vld [vmem:[%s2517_s7 + $0xe8] sm:$0xff]   ;;  %v1782_v25 = vcombine.low %v2549_v47, %v2549_v47 }
  0x81   : > { %1865 = vmatprep.subr.bf16.mxu0 %v2030_v28  ;;  %v2037_v35 = vld [vmem:[%s2517_s7 + $0x98] sm:$0xff]   ;;  %v2041_v39 = vld [vmem:[%s2517_s7 + $0xa0] sm:$0xff]   ;;  %v2045_v43 = vld [vmem:[%s2517_s7 + $0xa8] sm:$0xff]   ;;  %v1784_v28 = vcombine.low %v2556_v50, %v2556_v50 }
  0x82   : > { %1886 = vmatpush3.bf16.msra.mxu1 %v2029_v27  ;;  %v2046_v44 = vld [vmem:[%s2517_s7 + $0x70] sm:$0xff]   ;;  %v2050_v49 = vld [vmem:[%s2517_s7 + $0x78] sm:$0xff]   ;;  %v2056_v56 = vld [vmem:[%s2517_s7 + $0x140] sm:$0xff]   ;;  %v2143_v27 = vmov 0.0  }
  0x83   : > { %1887 = vmatprep.subr.bf16.mxu1 %v2032_v30  ;;  %v2047_v45 = vld [vmem:[%s2517_s7 + $0x30] sm:$0xff]   ;;  %v2051_v51 = vld [vmem:[%s2517_s7 + $0x38] sm:$0xff]   ;;  %v2059_v58 = vld [vmem:[%s2517_s7 + $0x100] sm:$0xff]  }
  0x84   : > { %1866 = vmatpush3.bf16.msra.mxu0 %v2031_v29  ;;  %v2048_v46 = vld [vmem:[%s2517_s7 + $0xf0] sm:$0xff]   ;;  %v2052_v52 = vld [vmem:[%s2517_s7 + $0xf8] sm:$0xff]   ;;  %v2060_v60 = vld [vmem:[%s2517_s7 + $0x1c0] sm:$0xff]  }
  0x85   : > { %1867 = vmatprep.subr.bf16.mxu0 %v2034_v32  ;;  %v2049_v48 = vld [vmem:[%s2517_s7 + $0xb0] sm:$0xff]   ;;  %v2055_v54 = vld [vmem:[%s2517_s7 + $0xb8] sm:$0xff]   ;;  %v2061_v61 = vld [vmem:[%s2517_s7 + $0x180] sm:$0xff]  }
  0x86   : > { %1888 = vmatpush3.bf16.msra.mxu1 %v2033_v31  ;;  %v2062_v62 = vld [vmem:[%s2517_s7 + $0x148] sm:$0xff]   ;;  %v2066_v2 = vld [vmem:[%s2517_s7 + $0x150] sm:$0xff]   ;;  %v2070_v6 = vld [vmem:[%s2517_s7 + $0x158] sm:$0xff]  }
  0x87   : > { %1889 = vmatprep.subr.bf16.mxu1 %v2036_v34  ;;  %v2063_v63 = vld [vmem:[%s2517_s7 + $0x108] sm:$0xff]   ;;  %v2067_v3 = vld [vmem:[%s2517_s7 + $0x110] sm:$0xff]   ;;  %v2071_v7 = vld [vmem:[%s2517_s7 + $0x118] sm:$0xff]  }
  0x88   : > { %1868 = vmatpush3.bf16.msra.mxu0 %v2035_v33  ;;  %v2064_v0 = vld [vmem:[%s2517_s7 + $0x1c8] sm:$0xff]   ;;  %v2068_v4 = vld [vmem:[%s2517_s7 + $0x1d0] sm:$0xff]   ;;  %v2072_v8 = vld [vmem:[%s2517_s7 + $0x1d8] sm:$0xff]  }
  0x89   : > { %1869 = vmatprep.subr.bf16.mxu0 %v2038_v36  ;;  %v2065_v1 = vld [vmem:[%s2517_s7 + $0x188] sm:$0xff]   ;;  %v2069_v5 = vld [vmem:[%s2517_s7 + $0x190] sm:$0xff]   ;;  %v2073_v9 = vld [vmem:[%s2517_s7 + $0x198] sm:$0xff]  }
  0x8a   : > { %1890 = vmatpush3.bf16.msra.mxu1 %v2037_v35  ;;  %v2074_v10 = vld [vmem:[%s2517_s7 + $0x160] sm:$0xff]   ;;  %v2078_v14 = vld [vmem:[%s2517_s7 + $0x168] sm:$0xff]   ;;  %v2082_v18 = vld [vmem:[%s2517_s7 + $0x170] sm:$0xff]  }
  0x8b   : > { %1891 = vmatprep.subr.bf16.mxu1 %v2040_v38  ;;  %v2075_v11 = vld [vmem:[%s2517_s7 + $0x120] sm:$0xff]   ;;  %v2079_v15 = vld [vmem:[%s2517_s7 + $0x128] sm:$0xff]   ;;  %v2083_v19 = vld [vmem:[%s2517_s7 + $0x130] sm:$0xff]  }
  0x8c   : > { %1870 = vmatpush3.bf16.msra.mxu0 %v2039_v37  ;;  %v2076_v12 = vld [vmem:[%s2517_s7 + $0x1e0] sm:$0xff]   ;;  %v2080_v16 = vld [vmem:[%s2517_s7 + $0x1e8] sm:$0xff]   ;;  %v2084_v20 = vld [vmem:[%s2517_s7 + $0x1f0] sm:$0xff]  }
  0x8d   : > { %1871 = vmatprep.subr.bf16.mxu0 %v2042_v40  ;;  %v2077_v13 = vld [vmem:[%s2517_s7 + $0x1a0] sm:$0xff]   ;;  %v2081_v17 = vld [vmem:[%s2517_s7 + $0x1a8] sm:$0xff]   ;;  %v2085_v21 = vld [vmem:[%s2517_s7 + $0x1b0] sm:$0xff]  }
  0x8e   : > { %1892 = vmatpush3.bf16.msra.mxu1 %v2041_v39  ;;  %v2086_v22 = vld [vmem:[%s2517_s7 + $0x178] sm:$0xff]   ;;  %v2094_v29 = vld [vmem:[%s2517_s7 + $0x200] sm:$0xff]   ;;  %v2095_v30 = vld [vmem:[%s2517_s7 + $0x208] sm:$0xff]  }
  0x8f   : > { %1893 = vmatprep.subr.bf16.mxu1 %v2044_v42  ;;  %v2087_v23 = vld [vmem:[%s2517_s7 + $0x138] sm:$0xff]   ;;  %v2096_v31 = vld [vmem:[%s2517_s7 + $0x210] sm:$0xff]   ;;  %v2098_v33 = vld [vmem:[%s2517_s7 + $0x220] sm:$0xff]  }
  0x90   : > { %1872 = vmatpush3.bf16.msra.mxu0 %v2043_v41  ;;  %v2088_v24 = vld [vmem:[%s2517_s7 + $0x1f8] sm:$0xff]   ;;  %v2099_v34 = vld [vmem:[%s2517_s7 + $0x228] sm:$0xff]   ;;  %v2100_v35 = vld [vmem:[%s2517_s7 + $0x230] sm:$0xff]  }
  0x91   : > { %1873 = vmatprep.subr.bf16.mxu0 %v2046_v44  ;;  %v2091_v26 = vld [vmem:[%s2517_s7 + $0x1b8] sm:$0xff]   ;;  %v2102_v37 = vld [vmem:[%s2643_s0 + $0x20] ss:$0 sps:$4 sm:$0xff]  }
  0x92   : > { %1894 = vmatpush3.bf16.msra.mxu1 %v2045_v43  ;;  %v2097_v32 = vld [vmem:[%s2517_s7 + $0x218] sm:$0xff]   ;;  %v1777_v39 = vld [vmem:[%s829_s22] ss:$0 sm:$0xff] }
  0x93   : > { %1895 = vmatprep.subr.bf16.mxu1 %v2048_v46  ;;  %v2101_v36 = vld [vmem:[%s2517_s7 + $0x238] sm:$0xff]  }
  0x94   : > { %1874 = vmatpush3.bf16.msra.mxu0 %v2047_v45 }
  0x95   : > { %1875 = vmatprep.subr.bf16.mxu0 %v2050_v49 }
  0x96   : > { %1896 = vmatpush3.bf16.msra.mxu1 %v2049_v48 }
  0x97   : > { %1897 = vmatprep.subr.bf16.mxu1 %v2052_v52 }
  0x98   : > { %1876 = vmatpush3.bf16.msra.mxu0 %v2051_v51 }
  0x99   : > { %1905 = vmatprep.subr.bf16.mxu0 %v2056_v56 }
  0x9a   : > { %1898 = vmatpush3.bf16.msra.mxu1 %v2055_v54 }
  0x9b   : > { %1492 = vmatmul.mubr.bf16.vlgmr.msra.gmra.mrb[0].mxu0 %v1778_v53  ;;  %1927 = vmatprep.subr.bf16.mxu1 %v2060_v60 }
  0x9c   : > { %1906 = vmatpush3.bf16.msra.mxu0 %v2059_v58  ;;  %1571 = vmatprep.mubr.bf16.mxu0 %v1783_v55 }
  0x9d   : > { %1532 = vmatmul.mubr.bf16.vlgmr.msra.gmra.mrb[0].mxu1 %v1780_v57  ;;  %1907 = vmatprep.subr.bf16.mxu0 %v2062_v62 }
  0x9e   : > { %1928 = vmatpush3.bf16.msra.mxu1 %v2061_v61  ;;  %1611 = vmatprep.mubr.bf16.mxu1 %v1785_v59 }
  0x9f   : > { %1929 = vmatprep.subr.bf16.mxu1 %v2064_v0 }
  0xa0   : > { %1908 = vmatpush3.bf16.msra.mxu0 %v2063_v63 }
  0xa1   : > { %1909 = vmatprep.subr.bf16.mxu0 %v2066_v2 }
  0xa2   : > { %1930 = vmatpush3.bf16.msra.mxu1 %v2065_v1 }
  0xa3   : > { %1931 = vmatprep.subr.bf16.mxu1 %v2068_v4 }
  0xa4   : > { %1910 = vmatpush3.bf16.msra.mxu0 %v2067_v3 }
  0xa5   : > { %1911 = vmatprep.subr.bf16.mxu0 %v2070_v6 }
  0xa6   : > { %1932 = vmatpush3.bf16.msra.mxu1 %v2069_v5 }
  0xa7   : > { %1933 = vmatprep.subr.bf16.mxu1 %v2072_v8 }
  0xa8   : > { %1912 = vmatpush3.bf16.msra.mxu0 %v2071_v7 }
  0xa9   : > { %1913 = vmatprep.subr.bf16.mxu0 %v2074_v10 }
  0xaa   : > { %1934 = vmatpush3.bf16.msra.mxu1 %v2073_v9 }
  0xab   : > { %1935 = vmatprep.subr.bf16.mxu1 %v2076_v12 }
  0xac   : > { %1914 = vmatpush3.bf16.msra.mxu0 %v2075_v11 }
  0xad   : > { %1915 = vmatprep.subr.bf16.mxu0 %v2078_v14 }
  0xae   : > { %1936 = vmatpush3.bf16.msra.mxu1 %v2077_v13 }
  0xaf   : > { %1937 = vmatprep.subr.bf16.mxu1 %v2080_v16 }
  0xb0   : > { %1916 = vmatpush3.bf16.msra.mxu0 %v2079_v15 }
  0xb1   : > { %1917 = vmatprep.subr.bf16.mxu0 %v2082_v18 }
  0xb2   : > { %1938 = vmatpush3.bf16.msra.mxu1 %v2081_v17 }
  0xb3   : > { %1939 = vmatprep.subr.bf16.mxu1 %v2084_v20 }
  0xb4   : > { %1918 = vmatpush3.bf16.msra.mxu0 %v2083_v19 }
  0xb5   : > { %1919 = vmatprep.subr.bf16.mxu0 %v2086_v22 }
  0xb6   : > { %1940 = vmatpush3.bf16.msra.mxu1 %v2085_v21 }
  0xb7   : > { %1941 = vmatprep.subr.bf16.mxu1 %v2088_v24 }
  0xb8   : > { %1920 = vmatpush3.bf16.msra.mxu0 %v2087_v23 }
  0xb9   : > { %1958 = vmatprep.subr.bf16.mxu0 %v2143_v27 }
  0xba   : > { %1942 = vmatpush3.bf16.msra.mxu1 %v2091_v26 }
  0xbb   : > { %1572 = vmatmul.mubr.bf16.vlgmr.msra.gmra.mrb[4].mxu0 %v1782_v25 }
  0xbc   : > { %1959 = vmatpush3.bf16.msra.mxu0 %v2094_v29  ;;  %1974 = vmatprep.mubr.msk.bf16.mxu0 %vm2144_vm0, %v2143_v27 }
  0xbd   : > { %1612 = vmatmul.mubr.bf16.vlgmr.msra.gmra.mrb[4].mxu1 %v1784_v28  ;;  %1960 = vmatprep.subr.bf16.mxu0 %v2143_v27 }
  0xc0   : > { %1961 = vmatpush3.bf16.msra.mxu0 %v2095_v30 }
  0xc1   : > { %1962 = vmatprep.subr.bf16.mxu0 %v2143_v27 }
  0xc4   : > { %1963 = vmatpush3.bf16.msra.mxu0 %v2096_v31 }
  0xc5   : > { %1964 = vmatprep.subr.bf16.mxu0 %v2143_v27 }
  0xc8   : > { %1965 = vmatpush3.bf16.msra.mxu0 %v2097_v32 }
  0xc9   : > { %1966 = vmatprep.subr.bf16.mxu0 %v2143_v27 }
  0xcc   : > { %1967 = vmatpush3.bf16.msra.mxu0 %v2098_v33 }
  0xcd   : > { %1968 = vmatprep.subr.bf16.mxu0 %v2143_v27 }
  0xd0   : > { %1969 = vmatpush3.bf16.msra.mxu0 %v2099_v34 }
  0xd1   : > { %1970 = vmatprep.subr.bf16.mxu0 %v2143_v27 }
  0xd4   : > { %1971 = vmatpush3.bf16.msra.mxu0 %v2100_v35 }
  0xd5   : > { %1972 = vmatprep.subr.bf16.mxu0 %v2143_v27 }
  0xd8   : > { %1973 = vmatpush3.bf16.msra.mxu0 %v2101_v36 }
  0xdb   : > { %1975 = vmatmul.mubr.bf16.vlgmr.msra.gmra.mrb[8].mxu0 %v2102_v37 }
 0x16e   : > { %v1877_v38 = vpop.f32.mrb[0].mxu0 }
 0x16f   : > { %v1878_v40 = vpop.f32.mrb[1].mxu0 }
 0x170   : > { %v1879_v41 = vadd.f32 %v1878_v40, %v1877_v38  ;;  %v1880_v42 = vpop.f32.mrb[2].mxu0  ;;  %v1899_v43 = vpop.f32.mrb[0].mxu1 }
 0x171   : > { %v1881_v44 = vpop.f32.mrb[3].mxu0  ;;  %v1900_v45 = vpop.f32.mrb[1].mxu1 }
 0x172   : > { %v1494_v46 = vadd.f32 %v1879_v41, %v1777_v39  ;;  %v1901_v47 = vadd.f32 %v1900_v45, %v1899_v43  ;;  %v1902_v48 = vpop.f32.mrb[2].mxu1 }
 0x173   : > { %v1903_v49 = vpop.f32.mrb[3].mxu1 }
 0x174   : > { %v1534_v50 = vadd.f32 %v1901_v47, %v1494_v46 }
 0x18e   : > { %v1921_v51 = vpop.f32.mrb[4].mxu0 }
 0x18f   : > { %v1922_v52 = vpop.f32.mrb[5].mxu0 }
 0x190   : > { %v1923_v53 = vadd.f32 %v1922_v52, %v1921_v51  ;;  %v1924_v54 = vpop.f32.mrb[6].mxu0  ;;  %v1943_v55 = vpop.f32.mrb[4].mxu1 }
 0x191   : > { %v1925_v56 = vpop.f32.mrb[7].mxu0  ;;  %v1944_v57 = vpop.f32.mrb[5].mxu1 }
 0x192   : > { %v1574_v58 = vadd.f32 %v1923_v53, %v1534_v50  ;;  %v1945_v59 = vadd.f32 %v1944_v57, %v1943_v55  ;;  %v1946_v60 = vpop.f32.mrb[6].mxu1 }
 0x193   : > { %v1947_v61 = vpop.f32.mrb[7].mxu1 }
 0x194   : > { %v1614_v62 = vadd.f32 %v1945_v59, %v1574_v58 }
 0x1ae   : > { %v1653_v63 = vpop.f32.mrb[8].mxu0 }
 0x1af   : > { %v1654_v0 = vadd.f32 %v1653_v63, %v1614_v62  ;;  %v1976_v1 = vpop.f32.mrb[9].mxu0 }
 0x1b0   : > { %v1656_v2 = vpop.f32.mrb[10].mxu0 }
 0x1b1   : > { %v1659_v3 = vmax.f32 %v1654_v0, 0.0  ;;  %v1977_v4 = vpop.f32.mrb[11].mxu0 }
 0x1b3   : > { %1660 = vst [vmem:[%s837_s26] sm:$0xff] %v1659_v3 }
 0x1b4 PF: > { %s13_s16 = sadd.s32 1, %s2141_s16   ;;  %s2647_s12 = smov %s2129_s13 }
 0x1b5   : > { %p10_p10 = scmp.ge.s32.totalorder %s13_s16, 4   ;;  %s2648_s13 = smov %s2200_s20 }
 0x1b6   : > { %s2649_s14 = smov %s2137_s15  ;;  %s2650_s15 = smov %s2652_s17 }
 0x1b7   :  { %12 = sbr.rel (!%p10_p10) target bundleno = 3 (0x3), region = 114 }

// kernel: simple_autoencoder_forward.12
= control target key start
LH: loop header
LB: loop body
LE: loop exit
PB: predicated region body
PF: predicated region fallthrough
CT: control target
= control target key end

     0   :  { %s1516_s12 = smov 0   ;;  %s1518_s13 = smov 0   ;;  %s1795_s0 = inlined_call_operand.vmem [shape: bf16[512,256], index: 0, kind: input, shape index: {}]   ;;  %s1796_s1 = inlined_call_operand.vmem [shape: f32[1,256], index: 1, kind: input, shape index: {}]   ;;  %s1797_s2 = inlined_call_operand.vmem [shape: bf16[4,8,4,128], index: 2, kind: input, shape index: {}]   ;;  %s1798_s3 = inlined_call_operand.vmem [shape: f32[32,256], index: 3, kind: output, shape index: {}]  }
   0x1   :  { %s1520_s14 = smov 0   ;;  %s1522_s15 = smov 0  }
   0x2   :  { %s1524_s16 = smov 0  }
   0x3 LB: > { %s22_s17 = sadd.s32 1, %s1490_s15  ;;  %s1203_s18 = sadd.s32 4294967295, %s1494_s16   ;;  %s1494_s16 = sphi %s1524_s16, %s13_s16   ;;  %s1490_s15 = sphi %s1522_s15, %s1803_s15   ;;  %s1486_s14 = sphi %s1520_s14, %s1802_s14   ;;  %s1482_s13 = sphi %s1518_s13, %s1801_s13   ;;  %s1478_s12 = sphi %s1516_s12, %s1800_s12  }
   0x4   : > { %p23_p0 = scmp.ge.s32.totalorder %s22_s17, 2  ;;  %p65_p1 = scmp.ne.s32.totalorder %s1482_s13, %s1478_s12 }
   0x5   : > { %p66_p2 = scmp.eq.s32.totalorder %s1494_s16, 0  ;;  %p123_p4 = scmp.eq.s32.totalorder %s1203_s18, 1 }
   0x6   : > { %s1805_s17 = smov (%p23_p0, %s22_s17), 0  ;;  %s58_s20 = sadd.s32 1, %s1482_s13 }
   0x7   : > { %p67_p3 = por %p66_p2, %p65_p1  ;;  %s55_s19 = ssub.s32 %s1490_s15, %s1805_s17 }
   0x8   : > { %p56_p5 = scmp.eq.s32.totalorder %s55_s19, 0  ;;  %p1551_p6 = por %p123_p4, %p65_p1 }
   0x9   : > { %p1207_p7 = scmp.ge.s32.totalorder %s1494_s16, 2 }
   0xa   : > { %s1556_s22 = scalar_select %p56_p5, %s1482_s13, %s58_s20  }
   0xb   : > { %155 = sbr.rel (%p1207_p7) target bundleno = 64 (0x40), region = 20 }
  0x12   : > { %158 = sbr.rel (!%p67_p3) target bundleno = 64 (0x40), region = 24  ;;  %s160_s23 = sand.u32 (%p67_p3), 1, %s1482_s13  }
  0x13   : > { %s1209_s24 = sshll.u32 (%p67_p3), %s1490_s15, 2  ;;  %s1208_s25 = sshll.u32 (%p67_p3), %s160_s23, 8 }
  0x14   : > { %s1564_s28 = scalar_lea.vmem (%p67_p3), %s1795_s0, %s1209_s24  ;;  %s1568_s29 = scalar_lea.vmem (%p67_p3), [#allocation2], %s1208_s25 }
  0x15   : > { %v180_v0 = vld [vmem:[%s1564_s28] sm:$0xf] (%p67_p3)  ;;  %v182_v1 = vld [vmem:[%s1564_s28 + $0x8] sm:$0xf] (%p67_p3)  ;;  %v184_v2 = vld [vmem:[%s1564_s28 + $0x10] sm:$0xf] (%p67_p3) }
  0x16   : > { %181 = vst [vmem:[%s1568_s29] sm:$0xf] (%p67_p3), %v180_v0  ;;  %183 = vst [vmem:[%s1568_s29 + $0x4] sm:$0xf] (%p67_p3), %v182_v1  ;;  %v186_v3 = vld [vmem:[%s1564_s28 + $0x18] sm:$0xf] (%p67_p3) }
  0x17   : > { %v188_v4 = vld [vmem:[%s1564_s28 + $0x20] sm:$0xf] (%p67_p3)  ;;  %185 = vst [vmem:[%s1568_s29 + $0x8] sm:$0xf] (%p67_p3), %v184_v2  ;;  %187 = vst [vmem:[%s1568_s29 + $0xc] sm:$0xf] (%p67_p3), %v186_v3 }
  0x18   : > { %189 = vst [vmem:[%s1568_s29 + $0x10] sm:$0xf] (%p67_p3), %v188_v4  ;;  %v190_v5 = vld [vmem:[%s1564_s28 + $0x28] sm:$0xf] (%p67_p3)  ;;  %v192_v6 = vld [vmem:[%s1564_s28 + $0x30] sm:$0xf] (%p67_p3) }
  0x19   : > { %v194_v7 = vld [vmem:[%s1564_s28 + $0x38] sm:$0xf]  ;;  %191 = vst [vmem:[%s1568_s29 + $0x14] sm:$0xf] %v190_v5  ;;  %193 = vst [vmem:[%s1568_s29 + $0x18] sm:$0xf] %v192_v6 }
  0x1a   : > { %195 = vst [vmem:[%s1568_s29 + $0x1c] sm:$0xf] %v194_v7  ;;  %v196_v8 = vld [vmem:[%s1564_s28 + $0x40] sm:$0xf]  ;;  %v198_v9 = vld [vmem:[%s1564_s28 + $0x48] sm:$0xf] }
  0x1b   : > { %v200_v10 = vld [vmem:[%s1564_s28 + $0x50] sm:$0xf]  ;;  %197 = vst [vmem:[%s1568_s29 + $0x20] sm:$0xf] %v196_v8  ;;  %199 = vst [vmem:[%s1568_s29 + $0x24] sm:$0xf] %v198_v9 }
  0x1c   : > { %201 = vst [vmem:[%s1568_s29 + $0x28] sm:$0xf] %v200_v10  ;;  %v202_v11 = vld [vmem:[%s1564_s28 + $0x58] sm:$0xf]  ;;  %v204_v12 = vld [vmem:[%s1564_s28 + $0x60] sm:$0xf] }
  0x1d   : > { %v206_v13 = vld [vmem:[%s1564_s28 + $0x68] sm:$0xf]  ;;  %203 = vst [vmem:[%s1568_s29 + $0x2c] sm:$0xf] %v202_v11  ;;  %205 = vst [vmem:[%s1568_s29 + $0x30] sm:$0xf] %v204_v12 }
  0x1e   : > { %207 = vst [vmem:[%s1568_s29 + $0x34] sm:$0xf] %v206_v13  ;;  %v208_v14 = vld [vmem:[%s1564_s28 + $0x70] sm:$0xf]  ;;  %v210_v15 = vld [vmem:[%s1564_s28 + $0x78] sm:$0xf] }
  0x1f   : > { %v212_v16 = vld [vmem:[%s1564_s28 + $0x80] sm:$0xf]  ;;  %209 = vst [vmem:[%s1568_s29 + $0x38] sm:$0xf] %v208_v14  ;;  %211 = vst [vmem:[%s1568_s29 + $0x3c] sm:$0xf] %v210_v15 }
  0x20   : > { %213 = vst [vmem:[%s1568_s29 + $0x40] sm:$0xf] %v212_v16  ;;  %v214_v17 = vld [vmem:[%s1564_s28 + $0x88] sm:$0xf]  ;;  %v216_v18 = vld [vmem:[%s1564_s28 + $0x90] sm:$0xf] }
  0x21   : > { %v218_v19 = vld [vmem:[%s1564_s28 + $0x98] sm:$0xf]  ;;  %215 = vst [vmem:[%s1568_s29 + $0x44] sm:$0xf] %v214_v17  ;;  %217 = vst [vmem:[%s1568_s29 + $0x48] sm:$0xf] %v216_v18 }
  0x22   : > { %219 = vst [vmem:[%s1568_s29 + $0x4c] sm:$0xf] %v218_v19  ;;  %v220_v20 = vld [vmem:[%s1564_s28 + $0xa0] sm:$0xf]  ;;  %v222_v21 = vld [vmem:[%s1564_s28 + $0xa8] sm:$0xf] }
  0x23   : > { %v224_v22 = vld [vmem:[%s1564_s28 + $0xb0] sm:$0xf]  ;;  %221 = vst [vmem:[%s1568_s29 + $0x50] sm:$0xf] %v220_v20  ;;  %223 = vst [vmem:[%s1568_s29 + $0x54] sm:$0xf] %v222_v21 }
  0x24   : > { %225 = vst [vmem:[%s1568_s29 + $0x58] sm:$0xf] %v224_v22  ;;  %v226_v23 = vld [vmem:[%s1564_s28 + $0xb8] sm:$0xf]  ;;  %v228_v24 = vld [vmem:[%s1564_s28 + $0xc0] sm:$0xf] }
  0x25   : > { %v230_v25 = vld [vmem:[%s1564_s28 + $0xc8] sm:$0xf]  ;;  %227 = vst [vmem:[%s1568_s29 + $0x5c] sm:$0xf] %v226_v23  ;;  %229 = vst [vmem:[%s1568_s29 + $0x60] sm:$0xf] %v228_v24 }
  0x26   : > { %231 = vst [vmem:[%s1568_s29 + $0x64] sm:$0xf] %v230_v25  ;;  %v232_v26 = vld [vmem:[%s1564_s28 + $0xd0] sm:$0xf]  ;;  %v234_v27 = vld [vmem:[%s1564_s28 + $0xd8] sm:$0xf] }
  0x27   : > { %v236_v28 = vld [vmem:[%s1564_s28 + $0xe0] sm:$0xf]  ;;  %233 = vst [vmem:[%s1568_s29 + $0x68] sm:$0xf] %v232_v26  ;;  %235 = vst [vmem:[%s1568_s29 + $0x6c] sm:$0xf] %v234_v27 }
  0x28   : > { %237 = vst [vmem:[%s1568_s29 + $0x70] sm:$0xf] %v236_v28  ;;  %v238_v29 = vld [vmem:[%s1564_s28 + $0xe8] sm:$0xf]  ;;  %v240_v30 = vld [vmem:[%s1564_s28 + $0xf0] sm:$0xf] }
  0x29   : > { %v242_v31 = vld [vmem:[%s1564_s28 + $0xf8] sm:$0xf]  ;;  %239 = vst [vmem:[%s1568_s29 + $0x74] sm:$0xf] %v238_v29  ;;  %241 = vst [vmem:[%s1568_s29 + $0x78] sm:$0xf] %v240_v30 }
  0x2a   : > { %243 = vst [vmem:[%s1568_s29 + $0x7c] sm:$0xf] %v242_v31  ;;  %v244_v32 = vld [vmem:[%s1564_s28 + $0x100] sm:$0xf]  ;;  %v246_v33 = vld [vmem:[%s1564_s28 + $0x108] sm:$0xf] }
  0x2b   : > { %v248_v34 = vld [vmem:[%s1564_s28 + $0x110] sm:$0xf]  ;;  %245 = vst [vmem:[%s1568_s29 + $0x80] sm:$0xf] %v244_v32  ;;  %247 = vst [vmem:[%s1568_s29 + $0x84] sm:$0xf] %v246_v33 }
  0x2c   : > { %249 = vst [vmem:[%s1568_s29 + $0x88] sm:$0xf] %v248_v34  ;;  %v250_v35 = vld [vmem:[%s1564_s28 + $0x118] sm:$0xf]  ;;  %v252_v36 = vld [vmem:[%s1564_s28 + $0x120] sm:$0xf] }
  0x2d   : > { %v254_v37 = vld [vmem:[%s1564_s28 + $0x128] sm:$0xf]  ;;  %251 = vst [vmem:[%s1568_s29 + $0x8c] sm:$0xf] %v250_v35  ;;  %253 = vst [vmem:[%s1568_s29 + $0x90] sm:$0xf] %v252_v36 }
  0x2e   : > { %255 = vst [vmem:[%s1568_s29 + $0x94] sm:$0xf] %v254_v37  ;;  %v256_v38 = vld [vmem:[%s1564_s28 + $0x130] sm:$0xf]  ;;  %v258_v39 = vld [vmem:[%s1564_s28 + $0x138] sm:$0xf] }
  0x2f   : > { %v260_v40 = vld [vmem:[%s1564_s28 + $0x140] sm:$0xf]  ;;  %257 = vst [vmem:[%s1568_s29 + $0x98] sm:$0xf] %v256_v38  ;;  %259 = vst [vmem:[%s1568_s29 + $0x9c] sm:$0xf] %v258_v39 }
  0x30   : > { %261 = vst [vmem:[%s1568_s29 + $0xa0] sm:$0xf] %v260_v40  ;;  %v262_v41 = vld [vmem:[%s1564_s28 + $0x148] sm:$0xf]  ;;  %v264_v42 = vld [vmem:[%s1564_s28 + $0x150] sm:$0xf] }
  0x31   : > { %v266_v43 = vld [vmem:[%s1564_s28 + $0x158] sm:$0xf]  ;;  %263 = vst [vmem:[%s1568_s29 + $0xa4] sm:$0xf] %v262_v41  ;;  %265 = vst [vmem:[%s1568_s29 + $0xa8] sm:$0xf] %v264_v42 }
  0x32   : > { %267 = vst [vmem:[%s1568_s29 + $0xac] sm:$0xf] %v266_v43  ;;  %v268_v44 = vld [vmem:[%s1564_s28 + $0x160] sm:$0xf]  ;;  %v270_v45 = vld [vmem:[%s1564_s28 + $0x168] sm:$0xf] }
  0x33   : > { %v272_v46 = vld [vmem:[%s1564_s28 + $0x170] sm:$0xf]  ;;  %269 = vst [vmem:[%s1568_s29 + $0xb0] sm:$0xf] %v268_v44  ;;  %271 = vst [vmem:[%s1568_s29 + $0xb4] sm:$0xf] %v270_v45 }
  0x34   : > { %273 = vst [vmem:[%s1568_s29 + $0xb8] sm:$0xf] %v272_v46  ;;  %v274_v47 = vld [vmem:[%s1564_s28 + $0x178] sm:$0xf]  ;;  %v276_v48 = vld [vmem:[%s1564_s28 + $0x180] sm:$0xf] }
  0x35   : > { %v278_v49 = vld [vmem:[%s1564_s28 + $0x188] sm:$0xf]  ;;  %275 = vst [vmem:[%s1568_s29 + $0xbc] sm:$0xf] %v274_v47  ;;  %277 = vst [vmem:[%s1568_s29 + $0xc0] sm:$0xf] %v276_v48 }
  0x36   : > { %279 = vst [vmem:[%s1568_s29 + $0xc4] sm:$0xf] %v278_v49  ;;  %v280_v50 = vld [vmem:[%s1564_s28 + $0x190] sm:$0xf]  ;;  %v282_v51 = vld [vmem:[%s1564_s28 + $0x198] sm:$0xf] }
  0x37   : > { %v284_v52 = vld [vmem:[%s1564_s28 + $0x1a0] sm:$0xf]  ;;  %281 = vst [vmem:[%s1568_s29 + $0xc8] sm:$0xf] %v280_v50  ;;  %283 = vst [vmem:[%s1568_s29 + $0xcc] sm:$0xf] %v282_v51 }
  0x38   : > { %285 = vst [vmem:[%s1568_s29 + $0xd0] sm:$0xf] %v284_v52  ;;  %v286_v53 = vld [vmem:[%s1564_s28 + $0x1a8] sm:$0xf]  ;;  %v288_v54 = vld [vmem:[%s1564_s28 + $0x1b0] sm:$0xf] }
  0x39   : > { %v290_v55 = vld [vmem:[%s1564_s28 + $0x1b8] sm:$0xf]  ;;  %287 = vst [vmem:[%s1568_s29 + $0xd4] sm:$0xf] %v286_v53  ;;  %289 = vst [vmem:[%s1568_s29 + $0xd8] sm:$0xf] %v288_v54 }
  0x3a   : > { %291 = vst [vmem:[%s1568_s29 + $0xdc] sm:$0xf] %v290_v55  ;;  %v292_v56 = vld [vmem:[%s1564_s28 + $0x1c0] sm:$0xf]  ;;  %v294_v57 = vld [vmem:[%s1564_s28 + $0x1c8] sm:$0xf] }
  0x3b   : > { %v296_v58 = vld [vmem:[%s1564_s28 + $0x1d0] sm:$0xf]  ;;  %293 = vst [vmem:[%s1568_s29 + $0xe0] sm:$0xf] %v292_v56  ;;  %295 = vst [vmem:[%s1568_s29 + $0xe4] sm:$0xf] %v294_v57 }
  0x3c   : > { %297 = vst [vmem:[%s1568_s29 + $0xe8] sm:$0xf] %v296_v58  ;;  %v298_v59 = vld [vmem:[%s1564_s28 + $0x1d8] sm:$0xf]  ;;  %v300_v60 = vld [vmem:[%s1564_s28 + $0x1e0] sm:$0xf] }
  0x3d   : > { %v302_v61 = vld [vmem:[%s1564_s28 + $0x1e8] sm:$0xf]  ;;  %299 = vst [vmem:[%s1568_s29 + $0xec] sm:$0xf] %v298_v59  ;;  %301 = vst [vmem:[%s1568_s29 + $0xf0] sm:$0xf] %v300_v60 }
  0x3e   : > { %303 = vst [vmem:[%s1568_s29 + $0xf4] sm:$0xf] %v302_v61  ;;  %v304_v62 = vld [vmem:[%s1564_s28 + $0x1f0] sm:$0xf]  ;;  %v306_v63 = vld [vmem:[%s1564_s28 + $0x1f8] sm:$0xf] }
  0x3f   : > { %305 = vst [vmem:[%s1568_s29 + $0xf8] sm:$0xf] %v304_v62  ;;  %307 = vst [vmem:[%s1568_s29 + $0xfc] sm:$0xf] %v306_v63 }
  0x40 PF: > { %p1210_p8 = scmp.ge.s32.totalorder %s1494_s16, 1  ;;  %p463_p9 = scmp.lt.s32.totalorder %s1494_s16, 3 }
  0x42   : > { %p464_p10 = pnand %p1210_p8, %p463_p9 }
  0x44   : > { %467 = sbr.rel (%p464_p10) target bundleno = 352 (0x160), region = 69 }
  0x4b   : > { %s470_s30 = sand.u32 1, %s1478_s12   ;;  %v512_v0 = vld [vmem:[%s1797_s2] sm:$0xff]   ;;  %v1707_v1 = vld [vmem:[%s1797_s2 + $0x10] sm:$0xff]   ;;  %v1712_v2 = vld [vmem:[%s1797_s2 + $0x8] sm:$0xff]   ;;  %p508_p11 = scmp.lt.s32.totalorder %s1486_s14, 1 }
  0x4c   : > { %s1211_s6 = sshll.u32 %s470_s30, 8  ;;  %517 = vst [vmem:[#allocation4] sm:$0xff] %v512_v0   ;;  %v1445_v36 = vld [vmem:[%s1797_s2 + $0x18] sm:$0xff]   ;;  %v1448_v39 = vld [vmem:[%s1797_s2 + $0x20] sm:$0xff]   ;;  %v1449_v42 = vld [vmem:[%s1797_s2 + $0x30] sm:$0xff]   ;;  %s1212_s8 = sshll.u32 %s470_s30, 5 }
  0x4d   : > { %s1714_s11 = scalar_lea.vmem [#allocation2], %s1211_s6  ;;  %v1231_v40 = vcombine.low %v1712_v2, %v1445_v36  ;;  %v1232_v41 = vcombine.high %v1712_v2, %v1445_v36  ;;  %v1451_v43 = vld [vmem:[%s1797_s2 + $0x28] sm:$0xff]   ;;  %v1234_v44 = vcombine.high %v1448_v39, %v1449_v42  ;;  %v1452_v45 = vld [vmem:[%s1797_s2 + $0x38] sm:$0xff]   ;;  %v1233_v47 = vcombine.low %v1448_v39, %v1449_v42  ;;  %s500_s9 = scalar_lea.vmem [#allocation3], %s1212_s8 }
  0x4e   : > { %v1411_v3 = vld [vmem:[%s1714_s11 + $0x40] sm:$0xff]   ;;  %v1415_v7 = vld [vmem:[%s1714_s11 + $0x48] sm:$0xff]   ;;  %v1419_v11 = vld [vmem:[%s1714_s11 + $0x50] sm:$0xff]   ;;  %v1236_v46 = vcombine.high %v1451_v43, %v1452_v45  ;;  %v1235_v48 = vcombine.low %v1451_v43, %v1452_v45  ;;  %s509_s4 = scalar_select %p508_p11, %s1486_s14, 1 }
  0x4f   : > { %v1412_v4 = vld [vmem:[%s1714_s11 + $0xc0] sm:$0xff]   ;;  %1315 = vmatprep.subr.bf16.mxu0 %v1411_v3  ;;  %v1416_v8 = vld [vmem:[%s1714_s11 + $0xc8] sm:$0xff]   ;;  %v1420_v12 = vld [vmem:[%s1714_s11 + $0xd0] sm:$0xff]   ;;  %1031 = vmatprep.mubr.bf16.mxu1 %v1232_v41  ;;  %s1270_s12 = sshll.u32 (%p1551_p6), %s1486_s14, 3 }
  0x50   : > { %v1413_v5 = vld [vmem:[%s1714_s11] sm:$0xff]   ;;  %1343 = vmatprep.subr.bf16.mxu1 %v1412_v4  ;;  %v1417_v9 = vld [vmem:[%s1714_s11 + $0x8] sm:$0xff]   ;;  %v1421_v13 = vld [vmem:[%s1714_s11 + $0x10] sm:$0xff]   ;;  %s510_s7 = scalar_lea.vmem %s1796_s1, %s509_s4 }
  0x51   : > { %v1414_v6 = vld [vmem:[%s1714_s11 + $0x80] sm:$0xff]   ;;  %1316 = vmatpush3.bf16.msra.mxu0 %v1413_v5  ;;  %v1418_v10 = vld [vmem:[%s1714_s11 + $0x88] sm:$0xff]   ;;  %v1422_v14 = vld [vmem:[%s1714_s11 + $0x90] sm:$0xff]  }
  0x52   : > { %1344 = vmatpush3.bf16.msra.mxu1 %v1414_v6  ;;  %1317 = vmatprep.subr.bf16.mxu0 %v1415_v7  ;;  %v1423_v15 = vld [vmem:[%s1714_s11 + $0x58] sm:$0xff]   ;;  %v1427_v19 = vld [vmem:[%s1714_s11 + $0x60] sm:$0xff]   ;;  %v1431_v23 = vld [vmem:[%s1714_s11 + $0x68] sm:$0xff]  }
  0x53   : > { %1345 = vmatprep.subr.bf16.mxu1 %v1416_v8  ;;  %v1424_v16 = vld [vmem:[%s1714_s11 + $0xd8] sm:$0xff]   ;;  %v1428_v20 = vld [vmem:[%s1714_s11 + $0xe0] sm:$0xff]   ;;  %v1432_v24 = vld [vmem:[%s1714_s11 + $0xe8] sm:$0xff]  }
  0x54   : > { %v1425_v17 = vld [vmem:[%s1714_s11 + $0x18] sm:$0xff]   ;;  %v1429_v21 = vld [vmem:[%s1714_s11 + $0x20] sm:$0xff]   ;;  %v1433_v25 = vld [vmem:[%s1714_s11 + $0x28] sm:$0xff]  }
  0x55   : > { %1318 = vmatpush3.bf16.msra.mxu0 %v1417_v9  ;;  %v1426_v18 = vld [vmem:[%s1714_s11 + $0x98] sm:$0xff]   ;;  %v1430_v22 = vld [vmem:[%s1714_s11 + $0xa0] sm:$0xff]   ;;  %v1434_v26 = vld [vmem:[%s1714_s11 + $0xa8] sm:$0xff]  }
  0x56   : > { %1346 = vmatpush3.bf16.msra.mxu1 %v1418_v10  ;;  %1319 = vmatprep.subr.bf16.mxu0 %v1419_v11  ;;  %v1435_v27 = vld [vmem:[%s1714_s11 + $0x70] sm:$0xff]   ;;  %v1439_v31 = vld [vmem:[%s1714_s11 + $0x78] sm:$0xff]   ;;  %v639_v35 = vld [vmem:[#allocation4] sm:$0xff] }
  0x57   : > { %1347 = vmatprep.subr.bf16.mxu1 %v1420_v12  ;;  %v1436_v28 = vld [vmem:[%s1714_s11 + $0xf0] sm:$0xff]   ;;  %v1440_v32 = vld [vmem:[%s1714_s11 + $0xf8] sm:$0xff]   ;;  %v1229_v37 = vcombine.low %v639_v35, %v1707_v1  ;;  %v1230_v38 = vcombine.high %v639_v35, %v1707_v1  ;;  %v1228_v51 = vld [vmem:[%s510_s7] ss:$0 sm:$0xff] }
  0x58   : > { %v1437_v29 = vld [vmem:[%s1714_s11 + $0x30] sm:$0xff]   ;;  %v1441_v33 = vld [vmem:[%s1714_s11 + $0x38] sm:$0xff]  }
  0x59   : > { %1320 = vmatpush3.bf16.msra.mxu0 %v1421_v13  ;;  %v1438_v30 = vld [vmem:[%s1714_s11 + $0xb0] sm:$0xff]   ;;  %v1442_v34 = vld [vmem:[%s1714_s11 + $0xb8] sm:$0xff]   ;;  %982 = vmatprep.mubr.bf16.mxu0 %v1230_v38  ;;  %s1067_s11 = scalar_lea.vmem (%p1551_p6), %s1798_s3, %s1270_s12 }
  0x5a   : > { %1348 = vmatpush3.bf16.msra.mxu1 %v1422_v14  ;;  %1321 = vmatprep.subr.bf16.mxu0 %v1423_v15 }
  0x5b   : > { %1349 = vmatprep.subr.bf16.mxu1 %v1424_v16 }
  0x5d   : > { %1322 = vmatpush3.bf16.msra.mxu0 %v1425_v17 }
  0x5e   : > { %1350 = vmatpush3.bf16.msra.mxu1 %v1426_v18  ;;  %1323 = vmatprep.subr.bf16.mxu0 %v1427_v19 }
  0x5f   : > { %1351 = vmatprep.subr.bf16.mxu1 %v1428_v20 }
  0x61   : > { %1324 = vmatpush3.bf16.msra.mxu0 %v1429_v21 }
  0x62   : > { %1352 = vmatpush3.bf16.msra.mxu1 %v1430_v22  ;;  %1325 = vmatprep.subr.bf16.mxu0 %v1431_v23 }
  0x63   : > { %1353 = vmatprep.subr.bf16.mxu1 %v1432_v24 }
  0x65   : > { %1326 = vmatpush3.bf16.msra.mxu0 %v1433_v25 }
  0x66   : > { %1354 = vmatpush3.bf16.msra.mxu1 %v1434_v26  ;;  %1327 = vmatprep.subr.bf16.mxu0 %v1435_v27 }
  0x67   : > { %1355 = vmatprep.subr.bf16.mxu1 %v1436_v28 }
  0x69   : > { %1328 = vmatpush3.bf16.msra.mxu0 %v1437_v29 }
  0x6a   : > { %1356 = vmatpush3.bf16.msra.mxu1 %v1438_v30  ;;  %1329 = vmatprep.subr.bf16.mxu0 %v1439_v31 }
  0x6b   : > { %1357 = vmatprep.subr.bf16.mxu1 %v1440_v32 }
  0x6d   : > { %1330 = vmatpush3.bf16.msra.mxu0 %v1441_v33 }
  0x6e   : > { %1358 = vmatpush3.bf16.msra.mxu1 %v1442_v34 }
  0x70   : > { %983 = vmatmul.mubr.bf16.vlgmr.msra.gmra.mrb[0].mxu0 %v1229_v37 }
  0x71   : > { %1032 = vmatmul.mubr.bf16.vlgmr.msra.gmra.mrb[0].mxu1 %v1231_v40  ;;  %990 = vmatprep.mubr.bf16.mxu0 %v1234_v44 }
  0x72   : > { %1039 = vmatprep.mubr.bf16.mxu1 %v1236_v46 }
  0x78   : > { %991 = vmatmul.mubr.bf16.gmra.mrb[4].mxu0 %v1233_v47 }
  0x79   : > { %1040 = vmatmul.mubr.bf16.gmra.mrb[4].mxu1 %v1235_v48 }
 0x143   : > { %v1331_v49 = vpop.f32.mrb[0].mxu0 }
 0x144   : > { %v1359_v50 = vpop.f32.mrb[0].mxu1  ;;  %v1332_v52 = vpop.f32.mrb[1].mxu0 }
 0x145   : > { %v1333_v53 = vadd.f32 %v1332_v52, %v1331_v49  ;;  %v1360_v54 = vpop.f32.mrb[1].mxu1  ;;  %v1334_v55 = vpop.f32.mrb[2].mxu0 }
 0x146   : > { %v1361_v56 = vadd.f32 %v1360_v54, %v1359_v50  ;;  %v1362_v57 = vpop.f32.mrb[2].mxu1  ;;  %v1335_v58 = vpop.f32.mrb[3].mxu0 }
 0x147   : > { %v985_v59 = vadd.f32 %v1333_v53, %v1228_v51  ;;  %v1336_v60 = vadd.f32 %v1335_v58, %v1334_v55  ;;  %v1363_v61 = vpop.f32.mrb[3].mxu1 }
 0x148   : > { %v1364_v62 = vadd.f32 %v1363_v61, %v1362_v57 }
 0x149   : > { %v1034_v63 = vadd.f32 %v1361_v56, %v985_v59  ;;  %v988_v0 = vadd.f32 %v1336_v60, %v1228_v51 }
 0x14b   : > { %v1048_v1 = vmax.f32 %v1034_v63, 0.0  ;;  %v1037_v2 = vadd.f32 %v1364_v62, %v988_v0  ;;  %v1337_v3 = vpop.f32.mrb[4].mxu0 }
 0x14c   : > { %v1365_v4 = vpop.f32.mrb[4].mxu1  ;;  %v1338_v5 = vpop.f32.mrb[5].mxu0 }
 0x14d   : > { %1052 = vst [vmem:[%s500_s9] sm:$0xff] %v1048_v1  ;;  %v1049_v6 = vmax.f32 %v1037_v2, 0.0  ;;  %v1339_v7 = vadd.f32 %v1338_v5, %v1337_v3  ;;  %v1366_v8 = vpop.f32.mrb[5].mxu1  ;;  %v1340_v9 = vpop.f32.mrb[6].mxu0 }
 0x14e   : > { %v1367_v10 = vadd.f32 %v1366_v8, %v1365_v4  ;;  %v1368_v11 = vpop.f32.mrb[6].mxu1  ;;  %v1341_v12 = vpop.f32.mrb[7].mxu0 }
 0x14f   : > { %1053 = vst [vmem:[%s500_s9 + $0x8] sm:$0xff] %v1049_v6  ;;  %v993_v13 = vadd.f32 %v1339_v7, %v1228_v51  ;;  %v1342_v14 = vadd.f32 %v1341_v12, %v1340_v9  ;;  %v1369_v15 = vpop.f32.mrb[7].mxu1 }
 0x150   : > { %v1370_v16 = vadd.f32 %v1369_v15, %v1368_v11 }
 0x151   : > { %v1042_v17 = vadd.f32 %v1367_v10, %v993_v13  ;;  %v996_v18 = vadd.f32 %v1342_v14, %v1228_v51  ;;  %1062 = sbr.rel (!%p1551_p6) target bundleno = 352 (0x160), region = 77 }
 0x153   : > { %v1050_v19 = vmax.f32 %v1042_v17, 0.0  ;;  %v1045_v20 = vadd.f32 %v1370_v16, %v996_v18 }
 0x154   : > { %v1101_v22 = vld [vmem:[%s500_s9] sm:$0xff] (%p1551_p6) }
 0x155   : > { %1054 = vst [vmem:[%s500_s9 + $0x10] sm:$0xff] %v1050_v19  ;;  %v1051_v21 = vmax.f32 %v1045_v20, 0.0  ;;  %1102 = vst [vmem:[%s1067_s11] sm:$0xff] (%p1551_p6), %v1101_v22 }
 0x156   : > { %v1103_v23 = vld [vmem:[%s500_s9 + $0x8] sm:$0xff] (%p1551_p6) }
 0x157   : > { %1055 = vst [vmem:[%s500_s9 + $0x18] sm:$0xff] %v1051_v21  ;;  %1104 = vst [vmem:[%s1067_s11 + $0x10] sm:$0xff] (%p1551_p6), %v1103_v23 }
 0x15c   : > { %v1105_v24 = vld [vmem:[%s500_s9 + $0x10] sm:$0xff] }
 0x15d   : > { %1106 = vst [vmem:[%s1067_s11 + $0x20] sm:$0xff] %v1105_v24 }
 0x15e   : > { %v1107_v25 = vld [vmem:[%s500_s9 + $0x18] sm:$0xff] }
 0x15f   : > { %1108 = vst [vmem:[%s1067_s11 + $0x30] sm:$0xff] %v1107_v25 }
 0x160 PF: > { %s13_s16 = sadd.s32 1, %s1494_s16   ;;  %s1800_s12 = smov %s1482_s13 }
 0x161   : > { %p10_p12 = scmp.ge.s32.totalorder %s13_s16, 4   ;;  %s1801_s13 = smov %s1556_s22 }
 0x162   : > { %s1802_s14 = smov %s1490_s15  ;;  %s1803_s15 = smov %s1805_s17 }
 0x163   :  { %12 = sbr.rel (!%p10_p12) target bundleno = 3 (0x3), region = 182 }

// kernel: simple_autoencoder_forward.11
= control target key start
LH: loop header
LB: loop body
LE: loop exit
PB: predicated region body
PF: predicated region fallthrough
CT: control target
= control target key end

     0   :  { %s877_s1 = inlined_call_operand.vmem [shape: bf16[256,128], index: 1, kind: input, shape index: {}]   ;;  %s878_s0 = inlined_call_operand.vmem [shape: bf16[128,256], index: 0, kind: input, shape index: {}]   ;;  %s879_s2 = inlined_call_operand.vmem [shape: f32[1,128], index: 2, kind: input, shape index: {}]   ;;  %s880_s3 = inlined_call_operand.vmem [shape: f32[128,128], index: 3, kind: output, shape index: {}]  }
   0x1   :  { %v588_v0 = vld [vmem:[%s877_s1 + $0x40] sm:$0xff]   ;;  %v590_v2 = vld [vmem:[%s877_s1 + $0x48] sm:$0xff]   ;;  %v592_v4 = vld [vmem:[%s877_s1 + $0x50] sm:$0xff]  }
   0x2   :  { %v589_v1 = vld [vmem:[%s877_s1] sm:$0xff]   ;;  %508 = vmatprep.subr.bf16.mxu0 %v588_v0  ;;  %572 = vmatprep.subr.bf16.mxu1 %v588_v0  ;;  %v591_v3 = vld [vmem:[%s877_s1 + $0x8] sm:$0xff]   ;;  %v593_v5 = vld [vmem:[%s877_s1 + $0x10] sm:$0xff]  }
   0x3   :  { %509 = vmatpush3.bf16.msra.mxu0 %v589_v1  ;;  %580 = vmatpush3.bf16.msra.mxu1 %v589_v1  ;;  %v594_v6 = vld [vmem:[%s877_s1 + $0x58] sm:$0xff]   ;;  %v596_v8 = vld [vmem:[%s877_s1 + $0x60] sm:$0xff]   ;;  %v598_v10 = vld [vmem:[%s877_s1 + $0x68] sm:$0xff]  }
   0x4   :  { %510 = vmatprep.subr.bf16.mxu0 %v590_v2  ;;  %573 = vmatprep.subr.bf16.mxu1 %v590_v2  ;;  %v595_v7 = vld [vmem:[%s877_s1 + $0x18] sm:$0xff]   ;;  %v597_v9 = vld [vmem:[%s877_s1 + $0x20] sm:$0xff]   ;;  %v599_v13 = vld [vmem:[%s877_s1 + $0x28] sm:$0xff]  }
   0x5   :  { %v606_v11 = vld [vmem:[%s878_s0 + $0x4] ss:$8 sps:$4 sm:$0xff]   ;;  %v600_v14 = vld [vmem:[%s877_s1 + $0x70] sm:$0xff]   ;;  %v602_v16 = vld [vmem:[%s877_s1 + $0x78] sm:$0xff]  }
   0x6   :  { %v609_v12 = vld [vmem:[%s878_s0 + $0x44] ss:$8 sps:$4 sm:$0xff]   ;;  %278 = vmatprep.mubr.bf16.mxu0 %v606_v11  ;;  %v601_v15 = vld [vmem:[%s877_s1 + $0x30] sm:$0xff]   ;;  %v603_v17 = vld [vmem:[%s877_s1 + $0x38] sm:$0xff]  }
   0x7   :  { %511 = vmatpush3.bf16.msra.mxu0 %v591_v3  ;;  %581 = vmatpush3.bf16.msra.mxu1 %v591_v3  ;;  %v604_v18 = vld [vmem:[%s878_s0] ss:$8 sps:$4 sm:$0xff]   ;;  %v610_v20 = vld [vmem:[%s878_s0 + $0x14] ss:$8 sps:$4 sm:$0xff]   ;;  %v614_v22 = vld [vmem:[%s878_s0 + $0x10] ss:$8 sps:$4 sm:$0xff]  }
   0x8   :  { %512 = vmatprep.subr.bf16.mxu0 %v592_v4  ;;  %574 = vmatprep.subr.bf16.mxu1 %v592_v4  ;;  %v607_v19 = vld [vmem:[%s878_s0 + $0x40] ss:$8 sps:$4 sm:$0xff]   ;;  %v612_v21 = vld [vmem:[%s878_s0 + $0x54] ss:$8 sps:$4 sm:$0xff]   ;;  %v615_v23 = vld [vmem:[%s878_s0 + $0x50] ss:$8 sps:$4 sm:$0xff]  }
   0x9   :  { %310 = vmatprep.mubr.bf16.mxu1 %v609_v12  ;;  %v616_v24 = vld [vmem:[%s878_s0 + $0x24] ss:$8 sps:$4 sm:$0xff]   ;;  %v620_v26 = vld [vmem:[%s878_s0 + $0x20] ss:$8 sps:$4 sm:$0xff]   ;;  %v622_v28 = vld [vmem:[%s878_s0 + $0x34] ss:$8 sps:$4 sm:$0xff]  }
   0xa   :  { %v618_v25 = vld [vmem:[%s878_s0 + $0x64] ss:$8 sps:$4 sm:$0xff]   ;;  %v621_v27 = vld [vmem:[%s878_s0 + $0x60] ss:$8 sps:$4 sm:$0xff]   ;;  %v624_v29 = vld [vmem:[%s878_s0 + $0x74] ss:$8 sps:$4 sm:$0xff]  }
   0xb   :  { %513 = vmatpush3.bf16.msra.mxu0 %v593_v5  ;;  %582 = vmatpush3.bf16.msra.mxu1 %v593_v5  ;;  %v626_v30 = vld [vmem:[%s878_s0 + $0x30] ss:$8 sps:$4 sm:$0xff]   ;;  %v811_v34 = vld [vmem:[%s879_s2] ss:$0 sm:$0xff] }
   0xc   :  { %514 = vmatprep.subr.bf16.mxu0 %v594_v6  ;;  %575 = vmatprep.subr.bf16.mxu1 %v594_v6  ;;  %v627_v31 = vld [vmem:[%s878_s0 + $0x70] ss:$8 sps:$4 sm:$0xff]  }
   0xf   :  { %515 = vmatpush3.bf16.msra.mxu0 %v595_v7  ;;  %583 = vmatpush3.bf16.msra.mxu1 %v595_v7 }
  0x10   :  { %516 = vmatprep.subr.bf16.mxu0 %v596_v8  ;;  %576 = vmatprep.subr.bf16.mxu1 %v596_v8 }
  0x13   :  { %517 = vmatpush3.bf16.msra.mxu0 %v597_v9  ;;  %584 = vmatpush3.bf16.msra.mxu1 %v597_v9 }
  0x14   :  { %518 = vmatprep.subr.bf16.mxu0 %v598_v10  ;;  %577 = vmatprep.subr.bf16.mxu1 %v598_v10 }
  0x17   :  { %519 = vmatpush3.bf16.msra.mxu0 %v599_v13  ;;  %585 = vmatpush3.bf16.msra.mxu1 %v599_v13 }
  0x18   :  { %520 = vmatprep.subr.bf16.mxu0 %v600_v14  ;;  %578 = vmatprep.subr.bf16.mxu1 %v600_v14 }
  0x1b   :  { %521 = vmatpush3.bf16.msra.mxu0 %v601_v15  ;;  %586 = vmatpush3.bf16.msra.mxu1 %v601_v15 }
  0x1c   :  { %522 = vmatprep.subr.bf16.mxu0 %v602_v16  ;;  %579 = vmatprep.subr.bf16.mxu1 %v602_v16 }
  0x1f   :  { %523 = vmatpush3.bf16.msra.mxu0 %v603_v17  ;;  %587 = vmatpush3.bf16.msra.mxu1 %v603_v17 }
  0x22   :  { %279 = vmatmul.mubr.bf16.vlgmr.msra.gmra.mrb[0].mxu0 %v604_v18  ;;  %311 = vmatmul.mubr.bf16.vlgmr.msra.gmra.mrb[0].mxu1 %v607_v19 }
  0x23   :  { %286 = vmatprep.mubr.bf16.mxu0 %v610_v20  ;;  %318 = vmatprep.mubr.bf16.mxu1 %v612_v21 }
  0x2a   :  { %287 = vmatmul.mubr.bf16.gmra.mrb[4].mxu0 %v614_v22  ;;  %319 = vmatmul.mubr.bf16.gmra.mrb[4].mxu1 %v615_v23 }
  0x2b   :  { %294 = vmatprep.mubr.bf16.mxu0 %v616_v24  ;;  %326 = vmatprep.mubr.bf16.mxu1 %v618_v25 }
  0x32   :  { %295 = vmatmul.mubr.bf16.gmra.mrb[8].mxu0 %v620_v26  ;;  %327 = vmatmul.mubr.bf16.gmra.mrb[8].mxu1 %v621_v27 }
  0x33   :  { %302 = vmatprep.mubr.bf16.mxu0 %v622_v28  ;;  %334 = vmatprep.mubr.bf16.mxu1 %v624_v29 }
  0x3a   :  { %303 = vmatmul.mubr.bf16.gmra.mrb[12].mxu0 %v626_v30  ;;  %335 = vmatmul.mubr.bf16.gmra.mrb[12].mxu1 %v627_v31 }
  0xf5   :  { %v524_v32 = vpop.f32.mrb[0].mxu0  ;;  %v548_v33 = vpop.f32.mrb[0].mxu1 }
  0xf6   :  { %v525_v35 = vpop.f32.mrb[1].mxu0  ;;  %v549_v36 = vpop.f32.mrb[1].mxu1 }
  0xf7   :  { %v526_v37 = vadd.f32 %v525_v35, %v524_v32  ;;  %v550_v38 = vadd.f32 %v549_v36, %v548_v33  ;;  %v527_v39 = vpop.f32.mrb[2].mxu0  ;;  %v551_v40 = vpop.f32.mrb[2].mxu1 }
  0xf8   :  { %v528_v41 = vpop.f32.mrb[3].mxu0  ;;  %v552_v42 = vpop.f32.mrb[3].mxu1 }
  0xf9   :  { %v281_v43 = vadd.f32 %v526_v37, %v811_v34  ;;  %v313_v44 = vadd.f32 %v550_v38, %v811_v34  ;;  %v529_v45 = vadd.f32 %v528_v41, %v527_v39  ;;  %v553_v46 = vadd.f32 %v552_v42, %v551_v40 }
  0xfb   :  { %v492_v47 = vmul.f32 -1.442695, %v281_v43  ;;  %v500_v48 = vmul.f32 -1.442695, %v313_v44  ;;  %v284_v49 = vadd.f32 %v529_v45, %v811_v34  ;;  %v316_v50 = vadd.f32 %v553_v46, %v811_v34 }
  0xfd   :  { %628 = vpow2.f32 %v492_v47  ;;  %v493_v51 = vmul.f32 -1.442695, %v284_v49  ;;  %v501_v52 = vmul.f32 -1.442695, %v316_v50  ;;  %v530_v53 = vpop.f32.mrb[4].mxu0  ;;  %v554_v54 = vpop.f32.mrb[4].mxu1 }
  0xfe   :  { %630 = vpow2.f32 %v500_v48  ;;  %v531_v55 = vpop.f32.mrb[5].mxu0  ;;  %v555_v56 = vpop.f32.mrb[5].mxu1 }
  0xff   :  { %632 = vpow2.f32 %v493_v51  ;;  %v532_v57 = vadd.f32 %v531_v55, %v530_v53  ;;  %v556_v58 = vadd.f32 %v555_v56, %v554_v54  ;;  %v533_v59 = vpop.f32.mrb[6].mxu0  ;;  %v557_v60 = vpop.f32.mrb[6].mxu1 }
 0x100   :  { %634 = vpow2.f32 %v501_v52  ;;  %v534_v61 = vpop.f32.mrb[7].mxu0  ;;  %v558_v62 = vpop.f32.mrb[7].mxu1 }
 0x101   :  { %v289_v63 = vadd.f32 %v532_v57, %v811_v34  ;;  %v321_v0 = vadd.f32 %v556_v58, %v811_v34  ;;  %v535_v1 = vadd.f32 %v534_v61, %v533_v59  ;;  %v559_v2 = vadd.f32 %v558_v62, %v557_v60 }
 0x103   :  { %v494_v3 = vmul.f32 -1.442695, %v289_v63  ;;  %v502_v4 = vmul.f32 -1.442695, %v321_v0  ;;  %v292_v5 = vadd.f32 %v535_v1, %v811_v34  ;;  %v324_v6 = vadd.f32 %v559_v2, %v811_v34 }
 0x105   :  { %636 = vpow2.f32 %v494_v3  ;;  %v495_v7 = vmul.f32 -1.442695, %v292_v5  ;;  %v503_v8 = vmul.f32 -1.442695, %v324_v6  ;;  %v536_v9 = vpop.f32.mrb[8].mxu0  ;;  %v560_v10 = vpop.f32.mrb[8].mxu1 }
 0x106   :  { %638 = vpow2.f32 %v502_v4  ;;  %v537_v11 = vpop.f32.mrb[9].mxu0  ;;  %v561_v12 = vpop.f32.mrb[9].mxu1 }
 0x107   :  { %v629_v13 = vpop.eup %628  ;;  %640 = vpow2.f32 %v495_v7  ;;  %v538_v14 = vadd.f32 %v537_v11, %v536_v9  ;;  %v562_v15 = vadd.f32 %v561_v12, %v560_v10  ;;  %v539_v16 = vpop.f32.mrb[10].mxu0 }
 0x108   :  { %v563_v17 = vpop.f32.mrb[10].mxu1  ;;  %v631_v18 = vpop.eup %630  ;;  %v391_v19 = vadd.f32 1.0, %v629_v13  ;;  %642 = vpow2.f32 %v503_v8 }
 0x109   :  { %v540_v20 = vpop.f32.mrb[11].mxu0  ;;  %v564_v21 = vpop.f32.mrb[11].mxu1  ;;  %v399_v23 = vadd.f32 1.0, %v631_v18  ;;  %v297_v24 = vadd.f32 %v538_v14, %v811_v34  ;;  %v329_v25 = vadd.f32 %v562_v15, %v811_v34 }
 0x10a   :  { %v633_v22 = vpop.eup %632  ;;  %v541_v26 = vadd.f32 %v540_v20, %v539_v16  ;;  %644 = vrcp.f32 %v391_v19  ;;  %v565_v29 = vadd.f32 %v564_v21, %v563_v17 }
 0x10b   :  { %v635_v27 = vpop.eup %634  ;;  %v392_v28 = vadd.f32 1.0, %v633_v22  ;;  %646 = vrcp.f32 %v399_v23  ;;  %v496_v31 = vmul.f32 -1.442695, %v297_v24  ;;  %v504_v32 = vmul.f32 -1.442695, %v329_v25 }
 0x10c   :  { %v400_v30 = vadd.f32 1.0, %v635_v27  ;;  %v300_v33 = vadd.f32 %v541_v26, %v811_v34  ;;  %v332_v35 = vadd.f32 %v565_v29, %v811_v34 }
 0x10d   :  { %648 = vrcp.f32 %v392_v28  ;;  %v542_v36 = vpop.f32.mrb[12].mxu0  ;;  %v566_v37 = vpop.f32.mrb[12].mxu1 }
 0x10e   :  { %650 = vrcp.f32 %v400_v30  ;;  %v497_v38 = vmul.f32 -1.442695, %v300_v33  ;;  %v505_v39 = vmul.f32 -1.442695, %v332_v35  ;;  %v543_v40 = vpop.f32.mrb[13].mxu0  ;;  %v567_v41 = vpop.f32.mrb[13].mxu1 }
 0x10f   :  { %652 = vpow2.f32 %v496_v31  ;;  %v637_v42 = vpop.eup %636  ;;  %v544_v43 = vadd.f32 %v543_v40, %v542_v36  ;;  %v568_v44 = vadd.f32 %v567_v41, %v566_v37  ;;  %v545_v45 = vpop.f32.mrb[14].mxu0 }
 0x110   :  { %654 = vpow2.f32 %v504_v32  ;;  %v569_v46 = vpop.f32.mrb[14].mxu1  ;;  %v639_v47 = vpop.eup %638  ;;  %v393_v48 = vadd.f32 1.0, %v637_v42 }
 0x111   :  { %656 = vpow2.f32 %v497_v38  ;;  %v546_v49 = vpop.f32.mrb[15].mxu0  ;;  %v570_v50 = vpop.f32.mrb[15].mxu1  ;;  %v401_v52 = vadd.f32 1.0, %v639_v47  ;;  %v305_v53 = vadd.f32 %v544_v43, %v811_v34  ;;  %v337_v54 = vadd.f32 %v568_v44, %v811_v34 }
 0x112   :  { %v641_v51 = vpop.eup %640  ;;  %658 = vpow2.f32 %v505_v39  ;;  %v547_v57 = vadd.f32 %v546_v49, %v545_v45  ;;  %v571_v58 = vadd.f32 %v570_v50, %v569_v46 }
 0x113   :  { %v643_v55 = vpop.eup %642  ;;  %660 = vrcp.f32 %v393_v48  ;;  %v394_v56 = vadd.f32 1.0, %v641_v51  ;;  %v498_v60 = vmul.f32 -1.442695, %v305_v53  ;;  %v506_v61 = vmul.f32 -1.442695, %v337_v54 }
 0x114   :  { %662 = vrcp.f32 %v401_v52  ;;  %v402_v59 = vadd.f32 1.0, %v643_v55  ;;  %v645_v62 = vpop.eup %644  ;;  %v308_v63 = vadd.f32 %v547_v57, %v811_v34  ;;  %v340_v0 = vadd.f32 %v571_v58, %v811_v34 }
 0x115   :  { %664 = vrcp.f32 %v394_v56  ;;  %v647_v1 = vpop.eup %646  ;;  %439 = vst [vmem:[%s880_s3] sm:$0xff] %v645_v62 }
 0x116   :  { %666 = vrcp.f32 %v402_v59  ;;  %447 = vst [vmem:[%s880_s3 + $0x40] sm:$0xff] %v647_v1  ;;  %v499_v3 = vmul.f32 -1.442695, %v308_v63  ;;  %v507_v4 = vmul.f32 -1.442695, %v340_v0 }
 0x117   :  { %v649_v2 = vpop.eup %648  ;;  %668 = vpow2.f32 %v498_v60 }
 0x118   :  { %v651_v5 = vpop.eup %650  ;;  %440 = vst [vmem:[%s880_s3 + $0x8] sm:$0xff] %v649_v2  ;;  %670 = vpow2.f32 %v506_v61 }
 0x119   :  { %v653_v34 = vpop.eup %652  ;;  %448 = vst [vmem:[%s880_s3 + $0x48] sm:$0xff] %v651_v5  ;;  %672 = vpow2.f32 %v499_v3 }
 0x11a   :  { %v655_v6 = vpop.eup %654  ;;  %v395_v7 = vadd.f32 1.0, %v653_v34  ;;  %674 = vpow2.f32 %v507_v4 }
 0x11b   :  { %v657_v8 = vpop.eup %656  ;;  %v403_v9 = vadd.f32 1.0, %v655_v6 }
 0x11c   :  { %v659_v10 = vpop.eup %658  ;;  %676 = vrcp.f32 %v395_v7  ;;  %v396_v11 = vadd.f32 1.0, %v657_v8 }
 0x11d   :  { %v661_v12 = vpop.eup %660  ;;  %678 = vrcp.f32 %v403_v9  ;;  %v404_v13 = vadd.f32 1.0, %v659_v10 }
 0x11e   :  { %v663_v14 = vpop.eup %662  ;;  %441 = vst [vmem:[%s880_s3 + $0x10] sm:$0xff] %v661_v12  ;;  %680 = vrcp.f32 %v396_v11 }
 0x11f   :  { %v665_v15 = vpop.eup %664  ;;  %449 = vst [vmem:[%s880_s3 + $0x50] sm:$0xff] %v663_v14  ;;  %682 = vrcp.f32 %v404_v13 }
 0x120   :  { %v667_v16 = vpop.eup %666  ;;  %442 = vst [vmem:[%s880_s3 + $0x18] sm:$0xff] %v665_v15 }
 0x121   :  { %v669_v17 = vpop.eup %668  ;;  %450 = vst [vmem:[%s880_s3 + $0x58] sm:$0xff] %v667_v16 }
 0x122   :  { %v671_v18 = vpop.eup %670  ;;  %v397_v19 = vadd.f32 1.0, %v669_v17 }
 0x123   :  { %v673_v20 = vpop.eup %672  ;;  %v405_v21 = vadd.f32 1.0, %v671_v18 }
 0x124   :  { %v675_v22 = vpop.eup %674  ;;  %684 = vrcp.f32 %v397_v19  ;;  %v398_v23 = vadd.f32 1.0, %v673_v20 }
 0x125   :  { %686 = vrcp.f32 %v405_v21  ;;  %v406_v24 = vadd.f32 1.0, %v675_v22 }
 0x126   :  { %v677_v25 = vpop.eup %676  ;;  %688 = vrcp.f32 %v398_v23 }
 0x127   :  { %v679_v26 = vpop.eup %678  ;;  %443 = vst [vmem:[%s880_s3 + $0x20] sm:$0xff] %v677_v25  ;;  %690 = vrcp.f32 %v406_v24 }
 0x128   :  { %v681_v27 = vpop.eup %680  ;;  %451 = vst [vmem:[%s880_s3 + $0x60] sm:$0xff] %v679_v26 }
 0x129   :  { %v683_v28 = vpop.eup %682  ;;  %444 = vst [vmem:[%s880_s3 + $0x28] sm:$0xff] %v681_v27 }
 0x12a   :  { %452 = vst [vmem:[%s880_s3 + $0x68] sm:$0xff] %v683_v28 }
 0x12e   :  { %v685_v29 = vpop.eup %684 }
 0x12f   :  { %v687_v30 = vpop.eup %686  ;;  %445 = vst [vmem:[%s880_s3 + $0x30] sm:$0xff] %v685_v29 }
 0x130   :  { %v689_v31 = vpop.eup %688  ;;  %453 = vst [vmem:[%s880_s3 + $0x70] sm:$0xff] %v687_v30 }
 0x131   :  { %v691_v32 = vpop.eup %690  ;;  %446 = vst [vmem:[%s880_s3 + $0x38] sm:$0xff] %v689_v31 }
 0x132   :  { %454 = vst [vmem:[%s880_s3 + $0x78] sm:$0xff] %v691_v32 }

</bundles_post_ra>
